<compile_context>
chip_gen: v7x
topology: tpu7x:2x2x1
jax: 0.10.0
libtpu: 0.0.40
codegen_flags: <defaults>
</compile_context>

<pallas_src>
import functools

import jax
import jax.numpy as jnp
from jax.experimental import pallas as pl
from jax.experimental.pallas import tpu as pltpu


# ----------------------------------------------------------------------------
# In-kernel building blocks.
# ----------------------------------------------------------------------------
def _pool2x2(y, nb, h, w, c):
    """2x2 / stride-2 max pool, splitting one axis at a time."""
    y = y.reshape(nb, h // 2, 2, w, c)
    y = jnp.max(y, axis=2)                      # pool H (layout-free split)
    y = y.reshape(nb, h // 2, w // 2, 2, c)
    y = jnp.max(y, axis=3)                      # pool W
    return y


def _conv3x3(act, pad_ref, w_ref, s_ref, c_ref, nb, h, w, cin, cout):
    """3x3 'same' conv + folded BN + ReLU on a VMEM-resident activation.

    The conv is 9 per-tap MXU matmuls accumulated in f32 (no im2col scratch,
    no lane-misaligned column stores).  Only the 1-px zero halo of pad_ref
    is rewritten per call; the interior is fully overwritten by `act`.
    """
    zrow = jnp.zeros((nb, 1, w + 2, cin), pad_ref.dtype)
    zcol = jnp.zeros((nb, h, 1, cin), pad_ref.dtype)
    pad_ref[:, 0:1, :, :] = zrow                    # top halo row
    pad_ref[:, h + 1:h + 2, :, :] = zrow            # bottom halo row
    pad_ref[:, 1:h + 1, 0:1, :] = zcol              # left halo col
    pad_ref[:, 1:h + 1, w + 1:w + 2, :] = zcol      # right halo col
    pad_ref[:, 1:h + 1, 1:w + 1, :] = act.astype(pad_ref.dtype)

    m = nb * h * w
    acc = jnp.zeros((m, cout), jnp.float32)
    for t in range(9):                              # static unroll: 9 taps
        dy, dx = t // 3, t % 3
        lhs = pad_ref[:, dy:dy + h, dx:dx + w, :].reshape(m, cin)
        acc = acc + jnp.dot(lhs, w_ref[t * cin:(t + 1) * cin, :],
                            preferred_element_type=jnp.float32)
    y = jnp.maximum(acc * s_ref[...] + c_ref[...], 0.0)
    return y.reshape(nb, h, w, cout)


# ----------------------------------------------------------------------------
# Fused forward kernel: conv1..conv4 (+BN+ReLU+pool) + fc1/fc2/fc3.
# ----------------------------------------------------------------------------
def fused_cnn_kernel(xc_ref,
                     w1_ref, s1_ref, c1_ref,
                     w2_ref, s2_ref, c2_ref,
                     w3_ref, s3_ref, c3_ref,
                     w4_ref, s4_ref, c4_ref,
                     f1w_ref, f1b_ref, f2w_ref, f2b_ref, f3w_ref, f3b_ref,
                     o_ref,
                     pad2, pad3, pad4,
                     *, NB, H, W, Cin):
    # conv1: im2col of the tiny raw input was built in the wrapper -> one
    # MXU matmul with K = 9*Cin.
    xc = xc_ref[...].reshape(NB * H * W, 9 * Cin)
    y1 = jnp.dot(xc, w1_ref[...], preferred_element_type=jnp.float32)
    y1 = jnp.maximum(y1 * s1_ref[...] + c1_ref[...], 0.0)
    a1 = _pool2x2(y1.reshape(NB, H, W, 32), NB, H, W, 32)

    H2, W2 = H // 2, W // 2
    y2 = _conv3x3(a1, pad2, w2_ref, s2_ref, c2_ref, NB, H2, W2, 32, 64)
    a2 = _pool2x2(y2, NB, H2, W2, 64)

    H3, W3 = H // 4, W // 4
    y3 = _conv3x3(a2, pad3, w3_ref, s3_ref, c3_ref, NB, H3, W3, 64, 128)
    a3 = _pool2x2(y3, NB, H3, W3, 128)

    H4, W4 = H // 8, W // 8
    y4 = _conv3x3(a3, pad4, w4_ref, s4_ref, c4_ref, NB, H4, W4, 128, 128)

    # MLP head (fc1 weight rows pre-permuted so the NHWC flatten matches
    # PyTorch's NCHW x.view(N, -1); fc3 zero-padded to a lane-dense width).
    flat = y4.reshape(NB, H4 * W4 * 128).astype(f1w_ref.dtype)
    h = jnp.dot(flat, f1w_ref[...], preferred_element_type=jnp.float32) + f1b_ref[...]
    h = jnp.maximum(h, 0.0)
    h = jnp.dot(h.astype(f2w_ref.dtype), f2w_ref[...],
                preferred_element_type=jnp.float32) + f2b_ref[...]
    h = jnp.maximum(h, 0.0)
    o = jnp.dot(h.astype(f3w_ref.dtype), f3w_ref[...],
                preferred_element_type=jnp.float32) + f3b_ref[...]
    o_ref[...] = o.reshape(o_ref.shape).astype(o_ref.dtype)


# ----------------------------------------------------------------------------
# Wrapper.
# ----------------------------------------------------------------------------
def _pick_batch_block(N, H, W, Cin, vmem_budget_bytes):
    """Largest divisor of N that (a) leaves >= 2 grid steps so the 'parallel'
    axis can shard across two TensorCores (v7x), (b) is <= 32 so large
    batches still fill the MXU M dim (v6e/v7x), and (c) fits the VMEM budget."""
    # Rough per-sample f32 footprint: double-buffered im2col input block
    # (2 * 9*Cin * H*W) + live activations / halo scratch (~96 * H*W).
    per_sample = 4 * H * W * (2 * 9 * Cin + 96)
    cap = max(1, min(32, vmem_budget_bytes // max(per_sample, 1)))
    best = 1
    for nb in range(1, N + 1):
        if nb > cap:
            break
        if N % nb == 0 and (N // nb >= 2 or N == 1):
            best = nb
    return best


def flexible_cnn_forward(x_nchw, params, *, use_bf16_mxu=False, batch_block=None):
    """Full FlexibleCNN forward in one fused pallas_call (NCHW in, logits out)."""
    N, Cin, H, W = x_nchw.shape
    assert H % 8 == 0 and W % 8 == 0, "spatial dims must be divisible by 8"
    num_classes = params["fc3"][0].shape[-1]
    nc_pad = 128 * pl.cdiv(num_classes, 128)            # lane-dense logits
    mxu_dtype = jnp.bfloat16 if use_bf16_mxu else jnp.float32

    # Generation-aware VMEM limit (v7x: 64 MiB physical, v5e/v6e: 128 MiB).
    try:
        vmem_cap = int(pltpu.get_tpu_info().vmem_capacity_bytes)
    except Exception:
        vmem_cap = 64 * 1024 * 1024                     # conservative fallback
    vmem_limit = min(max(vmem_cap // 2, 32 * 1024 * 1024), 64 * 1024 * 1024)

    NB = batch_block if batch_block is not None else _pick_batch_block(
        N, H, W, Cin, (vmem_limit * 3) // 5)
    assert N % NB == 0, "batch must be divisible by the chosen batch block"
    grid = (N // NB,)

    # --- wrapper-side prep touches only the tiny raw input and the weights ---
    x = jnp.transpose(x_nchw, (0, 2, 3, 1))                        # -> NHWC
    xp = jnp.pad(x, ((0, 0), (1, 1), (1, 1), (0, 0)))
    x_cols = jnp.concatenate(
        [xp[:, dy:dy + H, dx:dx + W, :] for dy in range(3) for dx in range(3)],
        axis=-1).reshape(N, H * W, 9 * Cin).astype(mxu_dtype)      # conv1 im2col

    def conv_p(name, cin):
        w, s, b = params[name]
        return (w.reshape(9 * cin, w.shape[-1]).astype(mxu_dtype),  # tap-major K
                s.reshape(1, -1).astype(jnp.float32),
                b.reshape(1, -1).astype(jnp.float32))

    w1, s1, c1 = conv_p("conv1", Cin)
    w2, s2, c2 = conv_p("conv2", 32)
    w3, s3, c3 = conv_p("conv3", 64)
    w4, s4, c4 = conv_p("conv4", 128)

    H2, W2, H3, W3, H4, W4 = H // 2, W // 2, H // 4, W // 4, H // 8, W // 8
    (f1w, f1b), (f2w, f2b), (f3w, f3b) = params["fc1"], params["fc2"], params["fc3"]
    # fc1 rows: PyTorch (C,H,W) flatten order -> NHWC (H,W,C) order, once.
    f1w = f1w.reshape(128, H4, W4, f1w.shape[-1]).transpose(1, 2, 0, 3)
    f1w = f1w.reshape(H4 * W4 * 128, -1).astype(mxu_dtype)
    f2w = f2w.astype(mxu_dtype)
    f1b = f1b.reshape(1, -1).astype(jnp.float32)
    f2b = f2b.reshape(1, -1).astype(jnp.float32)
    # fc3: zero-pad the logits dim to a lane-dense multiple of 128.
    f3w_p = jnp.zeros((f3w.shape[0], nc_pad), jnp.float32)
    f3w_p = f3w_p.at[:, :num_classes].set(f3w).astype(mxu_dtype)
    f3b_p = jnp.zeros((1, nc_pad), jnp.float32).at[:, :num_classes].set(
        f3b.reshape(1, -1))

    def const_spec(a):
        # Constant block index -> fetched once, resident across grid steps.
        # (pipeline_mode=pl.Buffered(1) could also single-buffer them; the
        # extra VMEM headroom is not needed at these shapes.)
        return pl.BlockSpec(a.shape, lambda n: (0,) * a.ndim)

    kern = functools.partial(fused_cnn_kernel, NB=NB, H=H, W=W, Cin=Cin)

    out = pl.pallas_call(
        kern,
        out_shape=jax.ShapeDtypeStruct((N, 1, nc_pad), jnp.float32),
        grid=grid,
        in_specs=[
            pl.BlockSpec((NB, H * W, 9 * Cin), lambda n: (n, 0, 0)),
            const_spec(w1), const_spec(s1), const_spec(c1),
            const_spec(w2), const_spec(s2), const_spec(c2),
            const_spec(w3), const_spec(s3), const_spec(c3),
            const_spec(w4), const_spec(s4), const_spec(c4),
            const_spec(f1w), const_spec(f1b), const_spec(f2w), const_spec(f2b),
            const_spec(f3w_p), const_spec(f3b_p),
        ],
        out_specs=pl.BlockSpec((NB, 1, nc_pad), lambda n: (n, 0, 0)),
        scratch_shapes=[
            pltpu.VMEM((NB, H2 + 2, W2 + 2, 32), mxu_dtype),       # pad2 halo
            pltpu.VMEM((NB, H3 + 2, W3 + 2, 64), mxu_dtype),       # pad3 halo
            pltpu.VMEM((NB, H4 + 2, W4 + 2, 128), mxu_dtype),      # pad4 halo
        ],
        compiler_params=pltpu.CompilerParams(
            dimension_semantics=("parallel",),
            vmem_limit_bytes=vmem_limit),
    )(x_cols,
      w1, s1, c1, w2, s2, c2, w3, s3, c3, w4, s4, c4,
      f1w, f1b, f2w, f2b, f3w_p, f3b_p)

    return out.reshape(N, nc_pad)[:, :num_classes]


# ----------------------------------------------------------------------------
# Parameter init (deterministic, shapes follow the nn.Module __init__).
# ----------------------------------------------------------------------------
def fold_bn(gamma, beta, mean, var, eps=1e-5):
    scale = gamma / jnp.sqrt(var + eps)
    bias = beta - mean * scale
    return scale, bias


def init_params(key, in_ch, num_classes, H, W):
    ks = jax.random.split(key, 32)
    ki = iter(range(32))

    def conv_w(k, cin, cout):
        return jax.random.normal(k, (3, 3, cin, cout), jnp.float32) / jnp.sqrt(9.0 * cin)

    def bn(kg, kb, km, kv, c):
        gamma = 0.5 + jax.random.uniform(kg, (c,), jnp.float32)
        beta = 0.1 * jax.random.normal(kb, (c,), jnp.float32)
        mean = 0.1 * jax.random.normal(km, (c,), jnp.float32)
        var = 0.5 + jax.random.uniform(kv, (c,), jnp.float32)
        return fold_bn(gamma, beta, mean, var)

    def lin(kw, kb, fin, fout):
        w = jax.random.normal(kw, (fin, fout), jnp.float32) / jnp.sqrt(float(fin))
        b = 0.1 * jax.random.normal(kb, (fout,), jnp.float32)
        return w, b

    p = {}
    chans = [in_ch, 32, 64, 128, 128]
    for i in range(4):
        w = conv_w(ks[next(ki)], chans[i], chans[i + 1])
        s, b = bn(ks[next(ki)], ks[next(ki)], ks[next(ki)], ks[next(ki)], chans[i + 1])
        p[f"conv{i+1}"] = (w, s, b)

    flat = 128 * (H // 8) * (W // 8)   # pool1 x2 + pool2 => /8 spatially
    p["fc1"] = lin(ks[next(ki)], ks[next(ki)], flat, 256)
    p["fc2"] = lin(ks[next(ki)], ks[next(ki)], 256, 128)
    p["fc3"] = lin(ks[next(ki)], ks[next(ki)], 128, num_classes)
    return p


# ----------------------------------------------------------------------------
# Pure-JAX reference for a correctness check (PyTorch semantics, f32).
# ----------------------------------------------------------------------------
def flexible_cnn_reference(x_nchw, params):
    x = jnp.transpose(x_nchw, (0, 2, 3, 1))
    pools = (True, True, True, False)
    for i, pool in enumerate(pools):
        w, s, b = params[f"conv{i+1}"]
        y = jax.lax.conv_general_dilated(
            x, w, (1, 1), "SAME",
            dimension_numbers=("NHWC", "HWIO", "NHWC"))
        y = jnp.maximum(y * s + b, 0.0)
        if pool:
            y = jax.lax.reduce_window(y, -jnp.inf, jax.lax.max,
                                      (1, 2, 2, 1), (1, 2, 2, 1), "VALID")
        x = y
    x = jnp.transpose(x, (0, 3, 1, 2)).reshape(x.shape[0], -1)   # NCHW flatten
    (w1, b1), (w2, b2), (w3, b3) = params["fc1"], params["fc2"], params["fc3"]
    h = jnp.maximum(x @ w1 + b1, 0.0)
    h = jnp.maximum(h @ w2 + b2, 0.0)
    return h @ w3 + b3


if __name__ == "__main__":
    N, C, H, W = 2, 4, 16, 16
    num_classes = 10

    key = jax.random.PRNGKey(0)
    kx, kp = jax.random.split(key)
    x = jax.random.normal(kx, (N, C, H, W), jnp.float32)          # NCHW like PyTorch
    params = init_params(kp, C, num_classes, H, W)

    fwd = jax.jit(flexible_cnn_forward)
    out = jax.block_until_ready(fwd(x, params))
    ref = jax.block_until_ready(flexible_cnn_reference(x, params))

    assert out.shape == (N, num_classes), out.shape
    max_diff = float(jnp.max(jnp.abs(out - ref)))
    assert jnp.allclose(out, ref, rtol=1e-2, atol=1e-3), f"mismatch: max abs diff {max_diff}"
    print("KERNEL_OK")
</pallas_src>

<mosaic_0001>
module attributes {stable_mosaic.version = 11 : i64} {
  func.func @fused_cnn_kernel(%arg0: i32, %arg1: memref<1x256x36xf32, #tpu.memory_space<vmem>>, %arg2: memref<36x32xf32, #tpu.memory_space<vmem>>, %arg3: memref<1x32xf32, #tpu.memory_space<vmem>>, %arg4: memref<1x32xf32, #tpu.memory_space<vmem>>, %arg5: memref<288x64xf32, #tpu.memory_space<vmem>>, %arg6: memref<1x64xf32, #tpu.memory_space<vmem>>, %arg7: memref<1x64xf32, #tpu.memory_space<vmem>>, %arg8: memref<576x128xf32, #tpu.memory_space<vmem>>, %arg9: memref<1x128xf32, #tpu.memory_space<vmem>>, %arg10: memref<1x128xf32, #tpu.memory_space<vmem>>, %arg11: memref<1152x128xf32, #tpu.memory_space<vmem>>, %arg12: memref<1x128xf32, #tpu.memory_space<vmem>>, %arg13: memref<1x128xf32, #tpu.memory_space<vmem>>, %arg14: memref<512x256xf32, #tpu.memory_space<vmem>>, %arg15: memref<1x256xf32, #tpu.memory_space<vmem>>, %arg16: memref<256x128xf32, #tpu.memory_space<vmem>>, %arg17: memref<1x128xf32, #tpu.memory_space<vmem>>, %arg18: memref<128x128xf32, #tpu.memory_space<vmem>>, %arg19: memref<1x128xf32, #tpu.memory_space<vmem>>, %arg20: memref<1x1x128xf32, #tpu.memory_space<vmem>>, %arg21: memref<1x10x10x32xf32, #tpu.memory_space<vmem>>, %arg22: memref<1x6x6x64xf32, #tpu.memory_space<vmem>>, %arg23: memref<1x4x4x128xf32, #tpu.memory_space<vmem>>) attributes {dimension_semantics = [#tpu.dimension_semantics<parallel>], iteration_bounds = array<i64: 2>, scalar_prefetch = 0 : i64, scratch_operands = 3 : i64, tpu.core_type = #tpu.core_type<tc>, window_params = [{transform_indices = @transform_0, window_bounds = array<i64: 1, 256, 36>}, {pipeline_mode = #tpu.pipeline_mode<synchronous>, transform_indices = @transform_1, window_bounds = array<i64: 36, 32>}, {pipeline_mode = #tpu.pipeline_mode<synchronous>, transform_indices = @transform_2, window_bounds = array<i64: 1, 32>}, {pipeline_mode = #tpu.pipeline_mode<synchronous>, transform_indices = @transform_3, window_bounds = array<i64: 1, 32>}, {pipeline_mode = #tpu.pipeline_mode<synchronous>, transform_indices = @transform_4, window_bounds = array<i64: 288, 64>}, {pipeline_mode = #tpu.pipeline_mode<synchronous>, transform_indices = @transform_5, window_bounds = array<i64: 1, 64>}, {pipeline_mode = #tpu.pipeline_mode<synchronous>, transform_indices = @transform_6, window_bounds = array<i64: 1, 64>}, {pipeline_mode = #tpu.pipeline_mode<synchronous>, transform_indices = @transform_7, window_bounds = array<i64: 576, 128>}, {pipeline_mode = #tpu.pipeline_mode<synchronous>, transform_indices = @transform_8, window_bounds = array<i64: 1, 128>}, {pipeline_mode = #tpu.pipeline_mode<synchronous>, transform_indices = @transform_9, window_bounds = array<i64: 1, 128>}, {pipeline_mode = #tpu.pipeline_mode<synchronous>, transform_indices = @transform_10, window_bounds = array<i64: 1152, 128>}, {pipeline_mode = #tpu.pipeline_mode<synchronous>, transform_indices = @transform_11, window_bounds = array<i64: 1, 128>}, {pipeline_mode = #tpu.pipeline_mode<synchronous>, transform_indices = @transform_12, window_bounds = array<i64: 1, 128>}, {pipeline_mode = #tpu.pipeline_mode<synchronous>, transform_indices = @transform_13, window_bounds = array<i64: 512, 256>}, {pipeline_mode = #tpu.pipeline_mode<synchronous>, transform_indices = @transform_14, window_bounds = array<i64: 1, 256>}, {pipeline_mode = #tpu.pipeline_mode<synchronous>, transform_indices = @transform_15, window_bounds = array<i64: 256, 128>}, {pipeline_mode = #tpu.pipeline_mode<synchronous>, transform_indices = @transform_16, window_bounds = array<i64: 1, 128>}, {pipeline_mode = #tpu.pipeline_mode<synchronous>, transform_indices = @transform_17, window_bounds = array<i64: 128, 128>}, {pipeline_mode = #tpu.pipeline_mode<synchronous>, transform_indices = @transform_18, window_bounds = array<i64: 1, 128>}, {transform_indices = @transform_19, window_bounds = array<i64: 1, 1, 128>}]} {
    %c0 = arith.constant 0 : index
    %c0_0 = arith.constant 0 : index
    %c0_1 = arith.constant 0 : index
    %0 = vector.load %arg1[%c0, %c0_0, %c0_1] : memref<1x256x36xf32, #tpu.memory_space<vmem>>, vector<1x256x36xf32>
    %1 = vector.shape_cast %0 : vector<1x256x36xf32> to vector<256x36xf32>
    %c0_2 = arith.constant 0 : index
    %c0_3 = arith.constant 0 : index
    %2 = vector.load %arg2[%c0_2, %c0_3] : memref<36x32xf32, #tpu.memory_space<vmem>>, vector<36x32xf32>
    %cst = arith.constant dense<0.000000e+00> : vector<256x32xf32>
    %3 = tpu.matmul %1, %2, %cst {dimension_numbers = #tpu.dot_dimension_numbers<[1], [0], [0], [1], [0, 0, 1, 1], [], []>} : vector<256x36xf32>, vector<36x32xf32>, vector<256x32xf32> -> vector<256x32xf32>
    %c0_4 = arith.constant 0 : index
    %c0_5 = arith.constant 0 : index
    %4 = vector.load %arg3[%c0_4, %c0_5] : memref<1x32xf32, #tpu.memory_space<vmem>>, vector<1x32xf32>
    %5 = vector.broadcast %4 : vector<1x32xf32> to vector<256x32xf32>
    %6 = arith.mulf %3, %5 : vector<256x32xf32>
    %c0_6 = arith.constant 0 : index
    %c0_7 = arith.constant 0 : index
    %7 = vector.load %arg4[%c0_6, %c0_7] : memref<1x32xf32, #tpu.memory_space<vmem>>, vector<1x32xf32>
    %8 = vector.broadcast %7 : vector<1x32xf32> to vector<256x32xf32>
    %9 = arith.addf %6, %8 : vector<256x32xf32>
    %cst_8 = arith.constant 0.000000e+00 : f32
    %10 = vector.broadcast %cst_8 : f32 to vector<256x32xf32>
    %11 = arith.maximumf %9, %10 : vector<256x32xf32>
    %12 = vector.shape_cast %11 : vector<256x32xf32> to vector<1x16x16x32xf32>
    %13 = vector.shape_cast %12 : vector<1x16x16x32xf32> to vector<1x8x2x16x32xf32>
    %cst_9 = arith.constant dense<0xFF800000> : vector<1x8x16x32xf32>
    %14 = vector.multi_reduction <maximumf>, %13, %cst_9 [2] : vector<1x8x2x16x32xf32> to vector<1x8x16x32xf32>
    %15 = vector.shape_cast %14 : vector<1x8x16x32xf32> to vector<1x8x8x2x32xf32>
    %cst_10 = arith.constant dense<0xFF800000> : vector<1x8x8x32xf32>
    %16 = vector.multi_reduction <maximumf>, %15, %cst_10 [3] : vector<1x8x8x2x32xf32> to vector<1x8x8x32xf32>
    %cst_11 = arith.constant 0.000000e+00 : f32
    %17 = vector.broadcast %cst_11 : f32 to vector<1x1x10x32xf32>
    %cst_12 = arith.constant 0.000000e+00 : f32
    %18 = vector.broadcast %cst_12 : f32 to vector<1x8x1x32xf32>
    %c0_13 = arith.constant 0 : index
    %c0_14 = arith.constant 0 : index
    %c0_15 = arith.constant 0 : index
    %c0_16 = arith.constant 0 : index
    %19 = vector.load %arg21[%c0_13, %c0_14, %c0_15, %c0_16] : memref<1x10x10x32xf32, #tpu.memory_space<vmem>>, vector<1x1x10x32xf32>
    tpu.vector_store %arg21[%c0_13, %c0_14, %c0_15, %c0_16], %17 {strides = array<i32>} : memref<1x10x10x32xf32, #tpu.memory_space<vmem>>, vector<1x1x10x32xf32>,
    %c0_17 = arith.constant 0 : index
    %c9 = arith.constant 9 : index
    %c0_18 = arith.constant 0 : index
    %c0_19 = arith.constant 0 : index
    %20 = vector.load %arg21[%c0_17, %c9, %c0_18, %c0_19] : memref<1x10x10x32xf32, #tpu.memory_space<vmem>>, vector<1x1x10x32xf32>
    tpu.vector_store %arg21[%c0_17, %c9, %c0_18, %c0_19], %17 {strides = array<i32>} : memref<1x10x10x32xf32, #tpu.memory_space<vmem>>, vector<1x1x10x32xf32>,
    %c0_20 = arith.constant 0 : index
    %c1 = arith.constant 1 : index
    %c0_21 = arith.constant 0 : index
    %c0_22 = arith.constant 0 : index
    %21 = vector.load %arg21[%c0_20, %c1, %c0_21, %c0_22] : memref<1x10x10x32xf32, #tpu.memory_space<vmem>>, vector<1x8x1x32xf32>
    tpu.vector_store %arg21[%c0_20, %c1, %c0_21, %c0_22], %18 {strides = array<i32>} : memref<1x10x10x32xf32, #tpu.memory_space<vmem>>, vector<1x8x1x32xf32>,
    %c0_23 = arith.constant 0 : index
    %c1_24 = arith.constant 1 : index
    %c9_25 = arith.constant 9 : index
    %c0_26 = arith.constant 0 : index
    %22 = vector.load %arg21[%c0_23, %c1_24, %c9_25, %c0_26] : memref<1x10x10x32xf32, #tpu.memory_space<vmem>>, vector<1x8x1x32xf32>
    tpu.vector_store %arg21[%c0_23, %c1_24, %c9_25, %c0_26], %18 {strides = array<i32>} : memref<1x10x10x32xf32, #tpu.memory_space<vmem>>, vector<1x8x1x32xf32>,
    %c0_27 = arith.constant 0 : index
    %c1_28 = arith.constant 1 : index
    %c1_29 = arith.constant 1 : index
    %c0_30 = arith.constant 0 : index
    %23 = vector.load %arg21[%c0_27, %c1_28, %c1_29, %c0_30] : memref<1x10x10x32xf32, #tpu.memory_space<vmem>>, vector<1x8x8x32xf32>
    tpu.vector_store %arg21[%c0_27, %c1_28, %c1_29, %c0_30], %16 {strides = array<i32>} : memref<1x10x10x32xf32, #tpu.memory_space<vmem>>, vector<1x8x8x32xf32>,
    %cst_31 = arith.constant 0.000000e+00 : f32
    %24 = vector.broadcast %cst_31 : f32 to vector<64x64xf32>
    %c0_32 = arith.constant 0 : index
    %c0_33 = arith.constant 0 : index
    %c0_34 = arith.constant 0 : index
    %c0_35 = arith.constant 0 : index
    %25 = vector.load %arg21[%c0_32, %c0_33, %c0_34, %c0_35] : memref<1x10x10x32xf32, #tpu.memory_space<vmem>>, vector<1x8x8x32xf32>
    %26 = vector.shape_cast %25 : vector<1x8x8x32xf32> to vector<64x32xf32>
    %c0_36 = arith.constant 0 : index
    %c0_37 = arith.constant 0 : index
    %27 = vector.load %arg5[%c0_36, %c0_37] : memref<288x64xf32, #tpu.memory_space<vmem>>, vector<32x64xf32>
    %cst_38 = arith.constant dense<0.000000e+00> : vector<64x64xf32>
    %28 = tpu.matmul %26, %27, %cst_38 {dimension_numbers = #tpu.dot_dimension_numbers<[1], [0], [0], [1], [0, 0, 1, 1], [], []>} : vector<64x32xf32>, vector<32x64xf32>, vector<64x64xf32> -> vector<64x64xf32>
    %29 = arith.addf %24, %28 : vector<64x64xf32>
    %c0_39 = arith.constant 0 : index
    %c0_40 = arith.constant 0 : index
    %c1_41 = arith.constant 1 : index
    %c0_42 = arith.constant 0 : index
    %30 = vector.load %arg21[%c0_39, %c0_40, %c1_41, %c0_42] : memref<1x10x10x32xf32, #tpu.memory_space<vmem>>, vector<1x8x8x32xf32>
    %31 = vector.shape_cast %30 : vector<1x8x8x32xf32> to vector<64x32xf32>
    %c32 = arith.constant 32 : index
    %c0_43 = arith.constant 0 : index
    %32 = vector.load %arg5[%c32, %c0_43] : memref<288x64xf32, #tpu.memory_space<vmem>>, vector<32x64xf32>
    %cst_44 = arith.constant dense<0.000000e+00> : vector<64x64xf32>
    %33 = tpu.matmul %31, %32, %cst_44 {dimension_numbers = #tpu.dot_dimension_numbers<[1], [0], [0], [1], [0, 0, 1, 1], [], []>} : vector<64x32xf32>, vector<32x64xf32>, vector<64x64xf32> -> vector<64x64xf32>
    %34 = arith.addf %29, %33 : vector<64x64xf32>
    %c0_45 = arith.constant 0 : index
    %c0_46 = arith.constant 0 : index
    %c2 = arith.constant 2 : index
    %c0_47 = arith.constant 0 : index
    %35 = vector.load %arg21[%c0_45, %c0_46, %c2, %c0_47] : memref<1x10x10x32xf32, #tpu.memory_space<vmem>>, vector<1x8x8x32xf32>
    %36 = vector.shape_cast %35 : vector<1x8x8x32xf32> to vector<64x32xf32>
    %c64 = arith.constant 64 : index
    %c0_48 = arith.constant 0 : index
    %37 = vector.load %arg5[%c64, %c0_48] : memref<288x64xf32, #tpu.memory_space<vmem>>, vector<32x64xf32>
    %cst_49 = arith.constant dense<0.000000e+00> : vector<64x64xf32>
    %38 = tpu.matmul %36, %37, %cst_49 {dimension_numbers = #tpu.dot_dimension_numbers<[1], [0], [0], [1], [0, 0, 1, 1], [], []>} : vector<64x32xf32>, vector<32x64xf32>, vector<64x64xf32> -> vector<64x64xf32>
    %39 = arith.addf %34, %38 : vector<64x64xf32>
    %c0_50 = arith.constant 0 : index
    %c1_51 = arith.constant 1 : index
    %c0_52 = arith.constant 0 : index
    %c0_53 = arith.constant 0 : index
    %40 = vector.load %arg21[%c0_50, %c1_51, %c0_52, %c0_53] : memref<1x10x10x32xf32, #tpu.memory_space<vmem>>, vector<1x8x8x32xf32>
    %41 = vector.shape_cast %40 : vector<1x8x8x32xf32> to vector<64x32xf32>
    %c96 = arith.constant 96 : index
    %c0_54 = arith.constant 0 : index
    %42 = vector.load %arg5[%c96, %c0_54] : memref<288x64xf32, #tpu.memory_space<vmem>>, vector<32x64xf32>
    %cst_55 = arith.constant dense<0.000000e+00> : vector<64x64xf32>
    %43 = tpu.matmul %41, %42, %cst_55 {dimension_numbers = #tpu.dot_dimension_numbers<[1], [0], [0], [1], [0, 0, 1, 1], [], []>} : vector<64x32xf32>, vector<32x64xf32>, vector<64x64xf32> -> vector<64x64xf32>
    %44 = arith.addf %39, %43 : vector<64x64xf32>
    %c0_56 = arith.constant 0 : index
    %c1_57 = arith.constant 1 : index
    %c1_58 = arith.constant 1 : index
    %c0_59 = arith.constant 0 : index
    %45 = vector.load %arg21[%c0_56, %c1_57, %c1_58, %c0_59] : memref<1x10x10x32xf32, #tpu.memory_space<vmem>>, vector<1x8x8x32xf32>
    %46 = vector.shape_cast %45 : vector<1x8x8x32xf32> to vector<64x32xf32>
    %c128 = arith.constant 128 : index
    %c0_60 = arith.constant 0 : index
    %47 = vector.load %arg5[%c128, %c0_60] : memref<288x64xf32, #tpu.memory_space<vmem>>, vector<32x64xf32>
    %cst_61 = arith.constant dense<0.000000e+00> : vector<64x64xf32>
    %48 = tpu.matmul %46, %47, %cst_61 {dimension_numbers = #tpu.dot_dimension_numbers<[1], [0], [0], [1], [0, 0, 1, 1], [], []>} : vector<64x32xf32>, vector<32x64xf32>, vector<64x64xf32> -> vector<64x64xf32>
    %49 = arith.addf %44, %48 : vector<64x64xf32>
    %c0_62 = arith.constant 0 : index
    %c1_63 = arith.constant 1 : index
    %c2_64 = arith.constant 2 : index
    %c0_65 = arith.constant 0 : index
    %50 = vector.load %arg21[%c0_62, %c1_63, %c2_64, %c0_65] : memref<1x10x10x32xf32, #tpu.memory_space<vmem>>, vector<1x8x8x32xf32>
    %51 = vector.shape_cast %50 : vector<1x8x8x32xf32> to vector<64x32xf32>
    %c160 = arith.constant 160 : index
    %c0_66 = arith.constant 0 : index
    %52 = vector.load %arg5[%c160, %c0_66] : memref<288x64xf32, #tpu.memory_space<vmem>>, vector<32x64xf32>
    %cst_67 = arith.constant dense<0.000000e+00> : vector<64x64xf32>
    %53 = tpu.matmul %51, %52, %cst_67 {dimension_numbers = #tpu.dot_dimension_numbers<[1], [0], [0], [1], [0, 0, 1, 1], [], []>} : vector<64x32xf32>, vector<32x64xf32>, vector<64x64xf32> -> vector<64x64xf32>
    %54 = arith.addf %49, %53 : vector<64x64xf32>
    %c0_68 = arith.constant 0 : index
    %c2_69 = arith.constant 2 : index
    %c0_70 = arith.constant 0 : index
    %c0_71 = arith.constant 0 : index
    %55 = vector.load %arg21[%c0_68, %c2_69, %c0_70, %c0_71] : memref<1x10x10x32xf32, #tpu.memory_space<vmem>>, vector<1x8x8x32xf32>
    %56 = vector.shape_cast %55 : vector<1x8x8x32xf32> to vector<64x32xf32>
    %c192 = arith.constant 192 : index
    %c0_72 = arith.constant 0 : index
    %57 = vector.load %arg5[%c192, %c0_72] : memref<288x64xf32, #tpu.memory_space<vmem>>, vector<32x64xf32>
    %cst_73 = arith.constant dense<0.000000e+00> : vector<64x64xf32>
    %58 = tpu.matmul %56, %57, %cst_73 {dimension_numbers = #tpu.dot_dimension_numbers<[1], [0], [0], [1], [0, 0, 1, 1], [], []>} : vector<64x32xf32>, vector<32x64xf32>, vector<64x64xf32> -> vector<64x64xf32>
    %59 = arith.addf %54, %58 : vector<64x64xf32>
    %c0_74 = arith.constant 0 : index
    %c2_75 = arith.constant 2 : index
    %c1_76 = arith.constant 1 : index
    %c0_77 = arith.constant 0 : index
    %60 = vector.load %arg21[%c0_74, %c2_75, %c1_76, %c0_77] : memref<1x10x10x32xf32, #tpu.memory_space<vmem>>, vector<1x8x8x32xf32>
    %61 = vector.shape_cast %60 : vector<1x8x8x32xf32> to vector<64x32xf32>
    %c224 = arith.constant 224 : index
    %c0_78 = arith.constant 0 : index
    %62 = vector.load %arg5[%c224, %c0_78] : memref<288x64xf32, #tpu.memory_space<vmem>>, vector<32x64xf32>
    %cst_79 = arith.constant dense<0.000000e+00> : vector<64x64xf32>
    %63 = tpu.matmul %61, %62, %cst_79 {dimension_numbers = #tpu.dot_dimension_numbers<[1], [0], [0], [1], [0, 0, 1, 1], [], []>} : vector<64x32xf32>, vector<32x64xf32>, vector<64x64xf32> -> vector<64x64xf32>
    %64 = arith.addf %59, %63 : vector<64x64xf32>
    %c0_80 = arith.constant 0 : index
    %c2_81 = arith.constant 2 : index
    %c2_82 = arith.constant 2 : index
    %c0_83 = arith.constant 0 : index
    %65 = vector.load %arg21[%c0_80, %c2_81, %c2_82, %c0_83] : memref<1x10x10x32xf32, #tpu.memory_space<vmem>>, vector<1x8x8x32xf32>
    %66 = vector.shape_cast %65 : vector<1x8x8x32xf32> to vector<64x32xf32>
    %c256 = arith.constant 256 : index
    %c0_84 = arith.constant 0 : index
    %67 = vector.load %arg5[%c256, %c0_84] : memref<288x64xf32, #tpu.memory_space<vmem>>, vector<32x64xf32>
    %cst_85 = arith.constant dense<0.000000e+00> : vector<64x64xf32>
    %68 = tpu.matmul %66, %67, %cst_85 {dimension_numbers = #tpu.dot_dimension_numbers<[1], [0], [0], [1], [0, 0, 1, 1], [], []>} : vector<64x32xf32>, vector<32x64xf32>, vector<64x64xf32> -> vector<64x64xf32>
    %69 = arith.addf %64, %68 : vector<64x64xf32>
    %c0_86 = arith.constant 0 : index
    %c0_87 = arith.constant 0 : index
    %70 = vector.load %arg6[%c0_86, %c0_87] : memref<1x64xf32, #tpu.memory_space<vmem>>, vector<1x64xf32>
    %71 = vector.broadcast %70 : vector<1x64xf32> to vector<64x64xf32>
    %72 = arith.mulf %69, %71 : vector<64x64xf32>
    %c0_88 = arith.constant 0 : index
    %c0_89 = arith.constant 0 : index
    %73 = vector.load %arg7[%c0_88, %c0_89] : memref<1x64xf32, #tpu.memory_space<vmem>>, vector<1x64xf32>
    %74 = vector.broadcast %73 : vector<1x64xf32> to vector<64x64xf32>
    %75 = arith.addf %72, %74 : vector<64x64xf32>
    %cst_90 = arith.constant 0.000000e+00 : f32
    %76 = vector.broadcast %cst_90 : f32 to vector<64x64xf32>
    %77 = arith.maximumf %75, %76 : vector<64x64xf32>
    %78 = vector.shape_cast %77 : vector<64x64xf32> to vector<1x8x8x64xf32>
    %79 = vector.shape_cast %78 : vector<1x8x8x64xf32> to vector<1x4x2x8x64xf32>
    %cst_91 = arith.constant dense<0xFF800000> : vector<1x4x8x64xf32>
    %80 = vector.multi_reduction <maximumf>, %79, %cst_91 [2] : vector<1x4x2x8x64xf32> to vector<1x4x8x64xf32>
    %81 = vector.shape_cast %80 : vector<1x4x8x64xf32> to vector<1x4x4x2x64xf32>
    %cst_92 = arith.constant dense<0xFF800000> : vector<1x4x4x64xf32>
    %82 = vector.multi_reduction <maximumf>, %81, %cst_92 [3] : vector<1x4x4x2x64xf32> to vector<1x4x4x64xf32>
    %cst_93 = arith.constant 0.000000e+00 : f32
    %83 = vector.broadcast %cst_93 : f32 to vector<1x1x6x64xf32>
    %cst_94 = arith.constant 0.000000e+00 : f32
    %84 = vector.broadcast %cst_94 : f32 to vector<1x4x1x64xf32>
    %c0_95 = arith.constant 0 : index
    %c0_96 = arith.constant 0 : index
    %c0_97 = arith.constant 0 : index
    %c0_98 = arith.constant 0 : index
    %85 = vector.load %arg22[%c0_95, %c0_96, %c0_97, %c0_98] : memref<1x6x6x64xf32, #tpu.memory_space<vmem>>, vector<1x1x6x64xf32>
    tpu.vector_store %arg22[%c0_95, %c0_96, %c0_97, %c0_98], %83 {strides = array<i32>} : memref<1x6x6x64xf32, #tpu.memory_space<vmem>>, vector<1x1x6x64xf32>,
    %c0_99 = arith.constant 0 : index
    %c5 = arith.constant 5 : index
    %c0_100 = arith.constant 0 : index
    %c0_101 = arith.constant 0 : index
    %86 = vector.load %arg22[%c0_99, %c5, %c0_100, %c0_101] : memref<1x6x6x64xf32, #tpu.memory_space<vmem>>, vector<1x1x6x64xf32>
    tpu.vector_store %arg22[%c0_99, %c5, %c0_100, %c0_101], %83 {strides = array<i32>} : memref<1x6x6x64xf32, #tpu.memory_space<vmem>>, vector<1x1x6x64xf32>,
    %c0_102 = arith.constant 0 : index
    %c1_103 = arith.constant 1 : index
    %c0_104 = arith.constant 0 : index
    %c0_105 = arith.constant 0 : index
    %87 = vector.load %arg22[%c0_102, %c1_103, %c0_104, %c0_105] : memref<1x6x6x64xf32, #tpu.memory_space<vmem>>, vector<1x4x1x64xf32>
    tpu.vector_store %arg22[%c0_102, %c1_103, %c0_104, %c0_105], %84 {strides = array<i32>} : memref<1x6x6x64xf32, #tpu.memory_space<vmem>>, vector<1x4x1x64xf32>,
    %c0_106 = arith.constant 0 : index
    %c1_107 = arith.constant 1 : index
    %c5_108 = arith.constant 5 : index
    %c0_109 = arith.constant 0 : index
    %88 = vector.load %arg22[%c0_106, %c1_107, %c5_108, %c0_109] : memref<1x6x6x64xf32, #tpu.memory_space<vmem>>, vector<1x4x1x64xf32>
    tpu.vector_store %arg22[%c0_106, %c1_107, %c5_108, %c0_109], %84 {strides = array<i32>} : memref<1x6x6x64xf32, #tpu.memory_space<vmem>>, vector<1x4x1x64xf32>,
    %c0_110 = arith.constant 0 : index
    %c1_111 = arith.constant 1 : index
    %c1_112 = arith.constant 1 : index
    %c0_113 = arith.constant 0 : index
    %89 = vector.load %arg22[%c0_110, %c1_111, %c1_112, %c0_113] : memref<1x6x6x64xf32, #tpu.memory_space<vmem>>, vector<1x4x4x64xf32>
    tpu.vector_store %arg22[%c0_110, %c1_111, %c1_112, %c0_113], %82 {strides = array<i32>} : memref<1x6x6x64xf32, #tpu.memory_space<vmem>>, vector<1x4x4x64xf32>,
    %cst_114 = arith.constant 0.000000e+00 : f32
    %90 = vector.broadcast %cst_114 : f32 to vector<16x128xf32>
    %c0_115 = arith.constant 0 : index
    %c0_116 = arith.constant 0 : index
    %c0_117 = arith.constant 0 : index
    %c0_118 = arith.constant 0 : index
    %91 = vector.load %arg22[%c0_115, %c0_116, %c0_117, %c0_118] : memref<1x6x6x64xf32, #tpu.memory_space<vmem>>, vector<1x4x4x64xf32>
    %92 = vector.shape_cast %91 : vector<1x4x4x64xf32> to vector<16x64xf32>
    %c0_119 = arith.constant 0 : index
    %c0_120 = arith.constant 0 : index
    %93 = vector.load %arg8[%c0_119, %c0_120] : memref<576x128xf32, #tpu.memory_space<vmem>>, vector<64x128xf32>
    %cst_121 = arith.constant dense<0.000000e+00> : vector<16x128xf32>
    %94 = tpu.matmul %92, %93, %cst_121 {dimension_numbers = #tpu.dot_dimension_numbers<[1], [0], [0], [1], [0, 0, 1, 1], [], []>} : vector<16x64xf32>, vector<64x128xf32>, vector<16x128xf32> -> vector<16x128xf32>
    %95 = arith.addf %90, %94 : vector<16x128xf32>
    %c0_122 = arith.constant 0 : index
    %c0_123 = arith.constant 0 : index
    %c1_124 = arith.constant 1 : index
    %c0_125 = arith.constant 0 : index
    %96 = vector.load %arg22[%c0_122, %c0_123, %c1_124, %c0_125] : memref<1x6x6x64xf32, #tpu.memory_space<vmem>>, vector<1x4x4x64xf32>
    %97 = vector.shape_cast %96 : vector<1x4x4x64xf32> to vector<16x64xf32>
    %c64_126 = arith.constant 64 : index
    %c0_127 = arith.constant 0 : index
    %98 = vector.load %arg8[%c64_126, %c0_127] : memref<576x128xf32, #tpu.memory_space<vmem>>, vector<64x128xf32>
    %cst_128 = arith.constant dense<0.000000e+00> : vector<16x128xf32>
    %99 = tpu.matmul %97, %98, %cst_128 {dimension_numbers = #tpu.dot_dimension_numbers<[1], [0], [0], [1], [0, 0, 1, 1], [], []>} : vector<16x64xf32>, vector<64x128xf32>, vector<16x128xf32> -> vector<16x128xf32>
    %100 = arith.addf %95, %99 : vector<16x128xf32>
    %c0_129 = arith.constant 0 : index
    %c0_130 = arith.constant 0 : index
    %c2_131 = arith.constant 2 : index
    %c0_132 = arith.constant 0 : index
    %101 = vector.load %arg22[%c0_129, %c0_130, %c2_131, %c0_132] : memref<1x6x6x64xf32, #tpu.memory_space<vmem>>, vector<1x4x4x64xf32>
    %102 = vector.shape_cast %101 : vector<1x4x4x64xf32> to vector<16x64xf32>
    %c128_133 = arith.constant 128 : index
    %c0_134 = arith.constant 0 : index
    %103 = vector.load %arg8[%c128_133, %c0_134] : memref<576x128xf32, #tpu.memory_space<vmem>>, vector<64x128xf32>
    %cst_135 = arith.constant dense<0.000000e+00> : vector<16x128xf32>
    %104 = tpu.matmul %102, %103, %cst_135 {dimension_numbers = #tpu.dot_dimension_numbers<[1], [0], [0], [1], [0, 0, 1, 1], [], []>} : vector<16x64xf32>, vector<64x128xf32>, vector<16x128xf32> -> vector<16x128xf32>
    %105 = arith.addf %100, %104 : vector<16x128xf32>
    %c0_136 = arith.constant 0 : index
    %c1_137 = arith.constant 1 : index
    %c0_138 = arith.constant 0 : index
    %c0_139 = arith.constant 0 : index
    %106 = vector.load %arg22[%c0_136, %c1_137, %c0_138, %c0_139] : memref<1x6x6x64xf32, #tpu.memory_space<vmem>>, vector<1x4x4x64xf32>
    %107 = vector.shape_cast %106 : vector<1x4x4x64xf32> to vector<16x64xf32>
    %c192_140 = arith.constant 192 : index
    %c0_141 = arith.constant 0 : index
    %108 = vector.load %arg8[%c192_140, %c0_141] : memref<576x128xf32, #tpu.memory_space<vmem>>, vector<64x128xf32>
    %cst_142 = arith.constant dense<0.000000e+00> : vector<16x128xf32>
    %109 = tpu.matmul %107, %108, %cst_142 {dimension_numbers = #tpu.dot_dimension_numbers<[1], [0], [0], [1], [0, 0, 1, 1], [], []>} : vector<16x64xf32>, vector<64x128xf32>, vector<16x128xf32> -> vector<16x128xf32>
    %110 = arith.addf %105, %109 : vector<16x128xf32>
    %c0_143 = arith.constant 0 : index
    %c1_144 = arith.constant 1 : index
    %c1_145 = arith.constant 1 : index
    %c0_146 = arith.constant 0 : index
    %111 = vector.load %arg22[%c0_143, %c1_144, %c1_145, %c0_146] : memref<1x6x6x64xf32, #tpu.memory_space<vmem>>, vector<1x4x4x64xf32>
    %112 = vector.shape_cast %111 : vector<1x4x4x64xf32> to vector<16x64xf32>
    %c256_147 = arith.constant 256 : index
    %c0_148 = arith.constant 0 : index
    %113 = vector.load %arg8[%c256_147, %c0_148] : memref<576x128xf32, #tpu.memory_space<vmem>>, vector<64x128xf32>
    %cst_149 = arith.constant dense<0.000000e+00> : vector<16x128xf32>
    %114 = tpu.matmul %112, %113, %cst_149 {dimension_numbers = #tpu.dot_dimension_numbers<[1], [0], [0], [1], [0, 0, 1, 1], [], []>} : vector<16x64xf32>, vector<64x128xf32>, vector<16x128xf32> -> vector<16x128xf32>
    %115 = arith.addf %110, %114 : vector<16x128xf32>
    %c0_150 = arith.constant 0 : index
    %c1_151 = arith.constant 1 : index
    %c2_152 = arith.constant 2 : index
    %c0_153 = arith.constant 0 : index
    %116 = vector.load %arg22[%c0_150, %c1_151, %c2_152, %c0_153] : memref<1x6x6x64xf32, #tpu.memory_space<vmem>>, vector<1x4x4x64xf32>
    %117 = vector.shape_cast %116 : vector<1x4x4x64xf32> to vector<16x64xf32>
    %c320 = arith.constant 320 : index
    %c0_154 = arith.constant 0 : index
    %118 = vector.load %arg8[%c320, %c0_154] : memref<576x128xf32, #tpu.memory_space<vmem>>, vector<64x128xf32>
    %cst_155 = arith.constant dense<0.000000e+00> : vector<16x128xf32>
    %119 = tpu.matmul %117, %118, %cst_155 {dimension_numbers = #tpu.dot_dimension_numbers<[1], [0], [0], [1], [0, 0, 1, 1], [], []>} : vector<16x64xf32>, vector<64x128xf32>, vector<16x128xf32> -> vector<16x128xf32>
    %120 = arith.addf %115, %119 : vector<16x128xf32>
    %c0_156 = arith.constant 0 : index
    %c2_157 = arith.constant 2 : index
    %c0_158 = arith.constant 0 : index
    %c0_159 = arith.constant 0 : index
    %121 = vector.load %arg22[%c0_156, %c2_157, %c0_158, %c0_159] : memref<1x6x6x64xf32, #tpu.memory_space<vmem>>, vector<1x4x4x64xf32>
    %122 = vector.shape_cast %121 : vector<1x4x4x64xf32> to vector<16x64xf32>
    %c384 = arith.constant 384 : index
    %c0_160 = arith.constant 0 : index
    %123 = vector.load %arg8[%c384, %c0_160] : memref<576x128xf32, #tpu.memory_space<vmem>>, vector<64x128xf32>
    %cst_161 = arith.constant dense<0.000000e+00> : vector<16x128xf32>
    %124 = tpu.matmul %122, %123, %cst_161 {dimension_numbers = #tpu.dot_dimension_numbers<[1], [0], [0], [1], [0, 0, 1, 1], [], []>} : vector<16x64xf32>, vector<64x128xf32>, vector<16x128xf32> -> vector<16x128xf32>
    %125 = arith.addf %120, %124 : vector<16x128xf32>
    %c0_162 = arith.constant 0 : index
    %c2_163 = arith.constant 2 : index
    %c1_164 = arith.constant 1 : index
    %c0_165 = arith.constant 0 : index
    %126 = vector.load %arg22[%c0_162, %c2_163, %c1_164, %c0_165] : memref<1x6x6x64xf32, #tpu.memory_space<vmem>>, vector<1x4x4x64xf32>
    %127 = vector.shape_cast %126 : vector<1x4x4x64xf32> to vector<16x64xf32>
    %c448 = arith.constant 448 : index
    %c0_166 = arith.constant 0 : index
    %128 = vector.load %arg8[%c448, %c0_166] : memref<576x128xf32, #tpu.memory_space<vmem>>, vector<64x128xf32>
    %cst_167 = arith.constant dense<0.000000e+00> : vector<16x128xf32>
    %129 = tpu.matmul %127, %128, %cst_167 {dimension_numbers = #tpu.dot_dimension_numbers<[1], [0], [0], [1], [0, 0, 1, 1], [], []>} : vector<16x64xf32>, vector<64x128xf32>, vector<16x128xf32> -> vector<16x128xf32>
    %130 = arith.addf %125, %129 : vector<16x128xf32>
    %c0_168 = arith.constant 0 : index
    %c2_169 = arith.constant 2 : index
    %c2_170 = arith.constant 2 : index
    %c0_171 = arith.constant 0 : index
    %131 = vector.load %arg22[%c0_168, %c2_169, %c2_170, %c0_171] : memref<1x6x6x64xf32, #tpu.memory_space<vmem>>, vector<1x4x4x64xf32>
    %132 = vector.shape_cast %131 : vector<1x4x4x64xf32> to vector<16x64xf32>
    %c512 = arith.constant 512 : index
    %c0_172 = arith.constant 0 : index
    %133 = vector.load %arg8[%c512, %c0_172] : memref<576x128xf32, #tpu.memory_space<vmem>>, vector<64x128xf32>
    %cst_173 = arith.constant dense<0.000000e+00> : vector<16x128xf32>
    %134 = tpu.matmul %132, %133, %cst_173 {dimension_numbers = #tpu.dot_dimension_numbers<[1], [0], [0], [1], [0, 0, 1, 1], [], []>} : vector<16x64xf32>, vector<64x128xf32>, vector<16x128xf32> -> vector<16x128xf32>
    %135 = arith.addf %130, %134 : vector<16x128xf32>
    %c0_174 = arith.constant 0 : index
    %c0_175 = arith.constant 0 : index
    %136 = vector.load %arg9[%c0_174, %c0_175] : memref<1x128xf32, #tpu.memory_space<vmem>>, vector<1x128xf32>
    %137 = vector.broadcast %136 : vector<1x128xf32> to vector<16x128xf32>
    %138 = arith.mulf %135, %137 : vector<16x128xf32>
    %c0_176 = arith.constant 0 : index
    %c0_177 = arith.constant 0 : index
    %139 = vector.load %arg10[%c0_176, %c0_177] : memref<1x128xf32, #tpu.memory_space<vmem>>, vector<1x128xf32>
    %140 = vector.broadcast %139 : vector<1x128xf32> to vector<16x128xf32>
    %141 = arith.addf %138, %140 : vector<16x128xf32>
    %cst_178 = arith.constant 0.000000e+00 : f32
    %142 = vector.broadcast %cst_178 : f32 to vector<16x128xf32>
    %143 = arith.maximumf %141, %142 : vector<16x128xf32>
    %144 = vector.shape_cast %143 : vector<16x128xf32> to vector<1x4x4x128xf32>
    %145 = vector.shape_cast %144 : vector<1x4x4x128xf32> to vector<1x2x2x4x128xf32>
    %cst_179 = arith.constant dense<0xFF800000> : vector<1x2x4x128xf32>
    %146 = vector.multi_reduction <maximumf>, %145, %cst_179 [2] : vector<1x2x2x4x128xf32> to vector<1x2x4x128xf32>
    %147 = vector.shape_cast %146 : vector<1x2x4x128xf32> to vector<1x2x2x2x128xf32>
    %cst_180 = arith.constant dense<0xFF800000> : vector<1x2x2x128xf32>
    %148 = vector.multi_reduction <maximumf>, %147, %cst_180 [3] : vector<1x2x2x2x128xf32> to vector<1x2x2x128xf32>
    %cst_181 = arith.constant 0.000000e+00 : f32
    %149 = vector.broadcast %cst_181 : f32 to vector<1x1x4x128xf32>
    %cst_182 = arith.constant 0.000000e+00 : f32
    %150 = vector.broadcast %cst_182 : f32 to vector<1x2x1x128xf32>
    %c0_183 = arith.constant 0 : index
    %c0_184 = arith.constant 0 : index
    %c0_185 = arith.constant 0 : index
    %c0_186 = arith.constant 0 : index
    %151 = vector.load %arg23[%c0_183, %c0_184, %c0_185, %c0_186] : memref<1x4x4x128xf32, #tpu.memory_space<vmem>>, vector<1x1x4x128xf32>
    tpu.vector_store %arg23[%c0_183, %c0_184, %c0_185, %c0_186], %149 {strides = array<i32>} : memref<1x4x4x128xf32, #tpu.memory_space<vmem>>, vector<1x1x4x128xf32>,
    %c0_187 = arith.constant 0 : index
    %c3 = arith.constant 3 : index
    %c0_188 = arith.constant 0 : index
    %c0_189 = arith.constant 0 : index
    %152 = vector.load %arg23[%c0_187, %c3, %c0_188, %c0_189] : memref<1x4x4x128xf32, #tpu.memory_space<vmem>>, vector<1x1x4x128xf32>
    tpu.vector_store %arg23[%c0_187, %c3, %c0_188, %c0_189], %149 {strides = array<i32>} : memref<1x4x4x128xf32, #tpu.memory_space<vmem>>, vector<1x1x4x128xf32>,
    %c0_190 = arith.constant 0 : index
    %c1_191 = arith.constant 1 : index
    %c0_192 = arith.constant 0 : index
    %c0_193 = arith.constant 0 : index
    %153 = vector.load %arg23[%c0_190, %c1_191, %c0_192, %c0_193] : memref<1x4x4x128xf32, #tpu.memory_space<vmem>>, vector<1x2x1x128xf32>
    tpu.vector_store %arg23[%c0_190, %c1_191, %c0_192, %c0_193], %150 {strides = array<i32>} : memref<1x4x4x128xf32, #tpu.memory_space<vmem>>, vector<1x2x1x128xf32>,
    %c0_194 = arith.constant 0 : index
    %c1_195 = arith.constant 1 : index
    %c3_196 = arith.constant 3 : index
    %c0_197 = arith.constant 0 : index
    %154 = vector.load %arg23[%c0_194, %c1_195, %c3_196, %c0_197] : memref<1x4x4x128xf32, #tpu.memory_space<vmem>>, vector<1x2x1x128xf32>
    tpu.vector_store %arg23[%c0_194, %c1_195, %c3_196, %c0_197], %150 {strides = array<i32>} : memref<1x4x4x128xf32, #tpu.memory_space<vmem>>, vector<1x2x1x128xf32>,
    %c0_198 = arith.constant 0 : index
    %c1_199 = arith.constant 1 : index
    %c1_200 = arith.constant 1 : index
    %c0_201 = arith.constant 0 : index
    %155 = vector.load %arg23[%c0_198, %c1_199, %c1_200, %c0_201] : memref<1x4x4x128xf32, #tpu.memory_space<vmem>>, vector<1x2x2x128xf32>
    tpu.vector_store %arg23[%c0_198, %c1_199, %c1_200, %c0_201], %148 {strides = array<i32>} : memref<1x4x4x128xf32, #tpu.memory_space<vmem>>, vector<1x2x2x128xf32>,
    %cst_202 = arith.constant 0.000000e+00 : f32
    %156 = vector.broadcast %cst_202 : f32 to vector<4x128xf32>
    %c0_203 = arith.constant 0 : index
    %c0_204 = arith.constant 0 : index
    %c0_205 = arith.constant 0 : index
    %c0_206 = arith.constant 0 : index
    %157 = vector.load %arg23[%c0_203, %c0_204, %c0_205, %c0_206] : memref<1x4x4x128xf32, #tpu.memory_space<vmem>>, vector<1x2x2x128xf32>
    %158 = vector.shape_cast %157 : vector<1x2x2x128xf32> to vector<4x128xf32>
    %c0_207 = arith.constant 0 : index
    %c0_208 = arith.constant 0 : index
    %159 = vector.load %arg11[%c0_207, %c0_208] : memref<1152x128xf32, #tpu.memory_space<vmem>>, vector<128x128xf32>
    %cst_209 = arith.constant dense<0.000000e+00> : vector<4x128xf32>
    %160 = tpu.matmul %158, %159, %cst_209 {dimension_numbers = #tpu.dot_dimension_numbers<[1], [0], [0], [1], [0, 0, 1, 1], [], []>} : vector<4x128xf32>, vector<128x128xf32>, vector<4x128xf32> -> vector<4x128xf32>
    %161 = arith.addf %156, %160 : vector<4x128xf32>
    %c0_210 = arith.constant 0 : index
    %c0_211 = arith.constant 0 : index
    %c1_212 = arith.constant 1 : index
    %c0_213 = arith.constant 0 : index
    %162 = vector.load %arg23[%c0_210, %c0_211, %c1_212, %c0_213] : memref<1x4x4x128xf32, #tpu.memory_space<vmem>>, vector<1x2x2x128xf32>
    %163 = vector.shape_cast %162 : vector<1x2x2x128xf32> to vector<4x128xf32>
    %c128_214 = arith.constant 128 : index
    %c0_215 = arith.constant 0 : index
    %164 = vector.load %arg11[%c128_214, %c0_215] : memref<1152x128xf32, #tpu.memory_space<vmem>>, vector<128x128xf32>
    %cst_216 = arith.constant dense<0.000000e+00> : vector<4x128xf32>
    %165 = tpu.matmul %163, %164, %cst_216 {dimension_numbers = #tpu.dot_dimension_numbers<[1], [0], [0], [1], [0, 0, 1, 1], [], []>} : vector<4x128xf32>, vector<128x128xf32>, vector<4x128xf32> -> vector<4x128xf32>
    %166 = arith.addf %161, %165 : vector<4x128xf32>
    %c0_217 = arith.constant 0 : index
    %c0_218 = arith.constant 0 : index
    %c2_219 = arith.constant 2 : index
    %c0_220 = arith.constant 0 : index
    %167 = vector.load %arg23[%c0_217, %c0_218, %c2_219, %c0_220] : memref<1x4x4x128xf32, #tpu.memory_space<vmem>>, vector<1x2x2x128xf32>
    %168 = vector.shape_cast %167 : vector<1x2x2x128xf32> to vector<4x128xf32>
    %c256_221 = arith.constant 256 : index
    %c0_222 = arith.constant 0 : index
    %169 = vector.load %arg11[%c256_221, %c0_222] : memref<1152x128xf32, #tpu.memory_space<vmem>>, vector<128x128xf32>
    %cst_223 = arith.constant dense<0.000000e+00> : vector<4x128xf32>
    %170 = tpu.matmul %168, %169, %cst_223 {dimension_numbers = #tpu.dot_dimension_numbers<[1], [0], [0], [1], [0, 0, 1, 1], [], []>} : vector<4x128xf32>, vector<128x128xf32>, vector<4x128xf32> -> vector<4x128xf32>
    %171 = arith.addf %166, %170 : vector<4x128xf32>
    %c0_224 = arith.constant 0 : index
    %c1_225 = arith.constant 1 : index
    %c0_226 = arith.constant 0 : index
    %c0_227 = arith.constant 0 : index
    %172 = vector.load %arg23[%c0_224, %c1_225, %c0_226, %c0_227] : memref<1x4x4x128xf32, #tpu.memory_space<vmem>>, vector<1x2x2x128xf32>
    %173 = vector.shape_cast %172 : vector<1x2x2x128xf32> to vector<4x128xf32>
    %c384_228 = arith.constant 384 : index
    %c0_229 = arith.constant 0 : index
    %174 = vector.load %arg11[%c384_228, %c0_229] : memref<1152x128xf32, #tpu.memory_space<vmem>>, vector<128x128xf32>
    %cst_230 = arith.constant dense<0.000000e+00> : vector<4x128xf32>
    %175 = tpu.matmul %173, %174, %cst_230 {dimension_numbers = #tpu.dot_dimension_numbers<[1], [0], [0], [1], [0, 0, 1, 1], [], []>} : vector<4x128xf32>, vector<128x128xf32>, vector<4x128xf32> -> vector<4x128xf32>
    %176 = arith.addf %171, %175 : vector<4x128xf32>
    %c0_231 = arith.constant 0 : index
    %c1_232 = arith.constant 1 : index
    %c1_233 = arith.constant 1 : index
    %c0_234 = arith.constant 0 : index
    %177 = vector.load %arg23[%c0_231, %c1_232, %c1_233, %c0_234] : memref<1x4x4x128xf32, #tpu.memory_space<vmem>>, vector<1x2x2x128xf32>
    %178 = vector.shape_cast %177 : vector<1x2x2x128xf32> to vector<4x128xf32>
    %c512_235 = arith.constant 512 : index
    %c0_236 = arith.constant 0 : index
    %179 = vector.load %arg11[%c512_235, %c0_236] : memref<1152x128xf32, #tpu.memory_space<vmem>>, vector<128x128xf32>
    %cst_237 = arith.constant dense<0.000000e+00> : vector<4x128xf32>
    %180 = tpu.matmul %178, %179, %cst_237 {dimension_numbers = #tpu.dot_dimension_numbers<[1], [0], [0], [1], [0, 0, 1, 1], [], []>} : vector<4x128xf32>, vector<128x128xf32>, vector<4x128xf32> -> vector<4x128xf32>
    %181 = arith.addf %176, %180 : vector<4x128xf32>
    %c0_238 = arith.constant 0 : index
    %c1_239 = arith.constant 1 : index
    %c2_240 = arith.constant 2 : index
    %c0_241 = arith.constant 0 : index
    %182 = vector.load %arg23[%c0_238, %c1_239, %c2_240, %c0_241] : memref<1x4x4x128xf32, #tpu.memory_space<vmem>>, vector<1x2x2x128xf32>
    %183 = vector.shape_cast %182 : vector<1x2x2x128xf32> to vector<4x128xf32>
    %c640 = arith.constant 640 : index
    %c0_242 = arith.constant 0 : index
    %184 = vector.load %arg11[%c640, %c0_242] : memref<1152x128xf32, #tpu.memory_space<vmem>>, vector<128x128xf32>
    %cst_243 = arith.constant dense<0.000000e+00> : vector<4x128xf32>
    %185 = tpu.matmul %183, %184, %cst_243 {dimension_numbers = #tpu.dot_dimension_numbers<[1], [0], [0], [1], [0, 0, 1, 1], [], []>} : vector<4x128xf32>, vector<128x128xf32>, vector<4x128xf32> -> vector<4x128xf32>
    %186 = arith.addf %181, %185 : vector<4x128xf32>
    %c0_244 = arith.constant 0 : index
    %c2_245 = arith.constant 2 : index
    %c0_246 = arith.constant 0 : index
    %c0_247 = arith.constant 0 : index
    %187 = vector.load %arg23[%c0_244, %c2_245, %c0_246, %c0_247] : memref<1x4x4x128xf32, #tpu.memory_space<vmem>>, vector<1x2x2x128xf32>
    %188 = vector.shape_cast %187 : vector<1x2x2x128xf32> to vector<4x128xf32>
    %c768 = arith.constant 768 : index
    %c0_248 = arith.constant 0 : index
    %189 = vector.load %arg11[%c768, %c0_248] : memref<1152x128xf32, #tpu.memory_space<vmem>>, vector<128x128xf32>
    %cst_249 = arith.constant dense<0.000000e+00> : vector<4x128xf32>
    %190 = tpu.matmul %188, %189, %cst_249 {dimension_numbers = #tpu.dot_dimension_numbers<[1], [0], [0], [1], [0, 0, 1, 1], [], []>} : vector<4x128xf32>, vector<128x128xf32>, vector<4x128xf32> -> vector<4x128xf32>
    %191 = arith.addf %186, %190 : vector<4x128xf32>
    %c0_250 = arith.constant 0 : index
    %c2_251 = arith.constant 2 : index
    %c1_252 = arith.constant 1 : index
    %c0_253 = arith.constant 0 : index
    %192 = vector.load %arg23[%c0_250, %c2_251, %c1_252, %c0_253] : memref<1x4x4x128xf32, #tpu.memory_space<vmem>>, vector<1x2x2x128xf32>
    %193 = vector.shape_cast %192 : vector<1x2x2x128xf32> to vector<4x128xf32>
    %c896 = arith.constant 896 : index
    %c0_254 = arith.constant 0 : index
    %194 = vector.load %arg11[%c896, %c0_254] : memref<1152x128xf32, #tpu.memory_space<vmem>>, vector<128x128xf32>
    %cst_255 = arith.constant dense<0.000000e+00> : vector<4x128xf32>
    %195 = tpu.matmul %193, %194, %cst_255 {dimension_numbers = #tpu.dot_dimension_numbers<[1], [0], [0], [1], [0, 0, 1, 1], [], []>} : vector<4x128xf32>, vector<128x128xf32>, vector<4x128xf32> -> vector<4x128xf32>
    %196 = arith.addf %191, %195 : vector<4x128xf32>
    %c0_256 = arith.constant 0 : index
    %c2_257 = arith.constant 2 : index
    %c2_258 = arith.constant 2 : index
    %c0_259 = arith.constant 0 : index
    %197 = vector.load %arg23[%c0_256, %c2_257, %c2_258, %c0_259] : memref<1x4x4x128xf32, #tpu.memory_space<vmem>>, vector<1x2x2x128xf32>
    %198 = vector.shape_cast %197 : vector<1x2x2x128xf32> to vector<4x128xf32>
    %c1024 = arith.constant 1024 : index
    %c0_260 = arith.constant 0 : index
    %199 = vector.load %arg11[%c1024, %c0_260] : memref<1152x128xf32, #tpu.memory_space<vmem>>, vector<128x128xf32>
    %cst_261 = arith.constant dense<0.000000e+00> : vector<4x128xf32>
    %200 = tpu.matmul %198, %199, %cst_261 {dimension_numbers = #tpu.dot_dimension_numbers<[1], [0], [0], [1], [0, 0, 1, 1], [], []>} : vector<4x128xf32>, vector<128x128xf32>, vector<4x128xf32> -> vector<4x128xf32>
    %201 = arith.addf %196, %200 : vector<4x128xf32>
    %c0_262 = arith.constant 0 : index
    %c0_263 = arith.constant 0 : index
    %202 = vector.load %arg12[%c0_262, %c0_263] : memref<1x128xf32, #tpu.memory_space<vmem>>, vector<1x128xf32>
    %203 = vector.broadcast %202 : vector<1x128xf32> to vector<4x128xf32>
    %204 = arith.mulf %201, %203 : vector<4x128xf32>
    %c0_264 = arith.constant 0 : index
    %c0_265 = arith.constant 0 : index
    %205 = vector.load %arg13[%c0_264, %c0_265] : memref<1x128xf32, #tpu.memory_space<vmem>>, vector<1x128xf32>
    %206 = vector.broadcast %205 : vector<1x128xf32> to vector<4x128xf32>
    %207 = arith.addf %204, %206 : vector<4x128xf32>
    %cst_266 = arith.constant 0.000000e+00 : f32
    %208 = vector.broadcast %cst_266 : f32 to vector<4x128xf32>
    %209 = arith.maximumf %207, %208 : vector<4x128xf32>
    %210 = vector.shape_cast %209 : vector<4x128xf32> to vector<1x2x2x128xf32>
    %211 = vector.shape_cast %210 : vector<1x2x2x128xf32> to vector<1x512xf32>
    %c0_267 = arith.constant 0 : index
    %c0_268 = arith.constant 0 : index
    %212 = vector.load %arg14[%c0_267, %c0_268] : memref<512x256xf32, #tpu.memory_space<vmem>>, vector<512x256xf32>
    %cst_269 = arith.constant dense<0.000000e+00> : vector<1x256xf32>
    %213 = tpu.matmul %211, %212, %cst_269 {dimension_numbers = #tpu.dot_dimension_numbers<[1], [0], [0], [1], [0, 0, 1, 1], [], []>} : vector<1x512xf32>, vector<512x256xf32>, vector<1x256xf32> -> vector<1x256xf32>
    %c0_270 = arith.constant 0 : index
    %c0_271 = arith.constant 0 : index
    %214 = vector.load %arg15[%c0_270, %c0_271] : memref<1x256xf32, #tpu.memory_space<vmem>>, vector<1x256xf32>
    %215 = arith.addf %213, %214 : vector<1x256xf32>
    %cst_272 = arith.constant 0.000000e+00 : f32
    %216 = vector.broadcast %cst_272 : f32 to vector<1x256xf32>
    %217 = arith.maximumf %215, %216 : vector<1x256xf32>
    %c0_273 = arith.constant 0 : index
    %c0_274 = arith.constant 0 : index
    %218 = vector.load %arg16[%c0_273, %c0_274] : memref<256x128xf32, #tpu.memory_space<vmem>>, vector<256x128xf32>
    %cst_275 = arith.constant dense<0.000000e+00> : vector<1x128xf32>
    %219 = tpu.matmul %217, %218, %cst_275 {dimension_numbers = #tpu.dot_dimension_numbers<[1], [0], [0], [1], [0, 0, 1, 1], [], []>} : vector<1x256xf32>, vector<256x128xf32>, vector<1x128xf32> -> vector<1x128xf32>
    %c0_276 = arith.constant 0 : index
    %c0_277 = arith.constant 0 : index
    %220 = vector.load %arg17[%c0_276, %c0_277] : memref<1x128xf32, #tpu.memory_space<vmem>>, vector<1x128xf32>
    %221 = arith.addf %219, %220 : vector<1x128xf32>
    %cst_278 = arith.constant 0.000000e+00 : f32
    %222 = vector.broadcast %cst_278 : f32 to vector<1x128xf32>
    %223 = arith.maximumf %221, %222 : vector<1x128xf32>
    %c0_279 = arith.constant 0 : index
    %c0_280 = arith.constant 0 : index
    %224 = vector.load %arg18[%c0_279, %c0_280] : memref<128x128xf32, #tpu.memory_space<vmem>>, vector<128x128xf32>
    %cst_281 = arith.constant dense<0.000000e+00> : vector<1x128xf32>
    %225 = tpu.matmul %223, %224, %cst_281 {dimension_numbers = #tpu.dot_dimension_numbers<[1], [0], [0], [1], [0, 0, 1, 1], [], []>} : vector<1x128xf32>, vector<128x128xf32>, vector<1x128xf32> -> vector<1x128xf32>
    %c0_282 = arith.constant 0 : index
    %c0_283 = arith.constant 0 : index
    %226 = vector.load %arg19[%c0_282, %c0_283] : memref<1x128xf32, #tpu.memory_space<vmem>>, vector<1x128xf32>
    %227 = arith.addf %225, %226 : vector<1x128xf32>
    %228 = vector.shape_cast %227 : vector<1x128xf32> to vector<1x1x128xf32>
    %c0_284 = arith.constant 0 : index
    %c0_285 = arith.constant 0 : index
    %c0_286 = arith.constant 0 : index
    %229 = vector.load %arg20[%c0_284, %c0_285, %c0_286] : memref<1x1x128xf32, #tpu.memory_space<vmem>>, vector<1x1x128xf32>
    tpu.vector_store %arg20[%c0_284, %c0_285, %c0_286], %228 {strides = array<i32>} : memref<1x1x128xf32, #tpu.memory_space<vmem>>, vector<1x1x128xf32>,
    return
  }
  func.func @transform_0(%arg0: i32) -> (i32, i32, i32) {
    %c0_i32 = arith.constant 0 : i32
    %c0_i32_0 = arith.constant 0 : i32
    %c0_i32_1 = arith.constant 0 : i32
    return %arg0, %c0_i32, %c0_i32_0 : i32, i32, i32
  }
  func.func @transform_1(%arg0: i32) -> (i32, i32) {
    %c0_i32 = arith.constant 0 : i32
    %c0_i32_0 = arith.constant 0 : i32
    %c0_i32_1 = arith.constant 0 : i32
    return %c0_i32, %c0_i32_0 : i32, i32
  }
  func.func @transform_2(%arg0: i32) -> (i32, i32) {
    %c0_i32 = arith.constant 0 : i32
    %c0_i32_0 = arith.constant 0 : i32
    %c0_i32_1 = arith.constant 0 : i32
    return %c0_i32, %c0_i32_0 : i32, i32
  }
  func.func @transform_3(%arg0: i32) -> (i32, i32) {
    %c0_i32 = arith.constant 0 : i32
    %c0_i32_0 = arith.constant 0 : i32
    %c0_i32_1 = arith.constant 0 : i32
    return %c0_i32, %c0_i32_0 : i32, i32
  }
  func.func @transform_4(%arg0: i32) -> (i32, i32) {
    %c0_i32 = arith.constant 0 : i32
    %c0_i32_0 = arith.constant 0 : i32
    %c0_i32_1 = arith.constant 0 : i32
    return %c0_i32, %c0_i32_0 : i32, i32
  }
  func.func @transform_5(%arg0: i32) -> (i32, i32) {
    %c0_i32 = arith.constant 0 : i32
    %c0_i32_0 = arith.constant 0 : i32
    %c0_i32_1 = arith.constant 0 : i32
    return %c0_i32, %c0_i32_0 : i32, i32
  }
  func.func @transform_6(%arg0: i32) -> (i32, i32) {
    %c0_i32 = arith.constant 0 : i32
    %c0_i32_0 = arith.constant 0 : i32
    %c0_i32_1 = arith.constant 0 : i32
    return %c0_i32, %c0_i32_0 : i32, i32
  }
  func.func @transform_7(%arg0: i32) -> (i32, i32) {
    %c0_i32 = arith.constant 0 : i32
    %c0_i32_0 = arith.constant 0 : i32
    %c0_i32_1 = arith.constant 0 : i32
    return %c0_i32, %c0_i32_0 : i32, i32
  }
  func.func @transform_8(%arg0: i32) -> (i32, i32) {
    %c0_i32 = arith.constant 0 : i32
    %c0_i32_0 = arith.constant 0 : i32
    %c0_i32_1 = arith.constant 0 : i32
    return %c0_i32, %c0_i32_0 : i32, i32
  }
  func.func @transform_9(%arg0: i32) -> (i32, i32) {
    %c0_i32 = arith.constant 0 : i32
    %c0_i32_0 = arith.constant 0 : i32
    %c0_i32_1 = arith.constant 0 : i32
    return %c0_i32, %c0_i32_0 : i32, i32
  }
  func.func @transform_10(%arg0: i32) -> (i32, i32) {
    %c0_i32 = arith.constant 0 : i32
    %c0_i32_0 = arith.constant 0 : i32
    %c0_i32_1 = arith.constant 0 : i32
    return %c0_i32, %c0_i32_0 : i32, i32
  }
  func.func @transform_11(%arg0: i32) -> (i32, i32) {
    %c0_i32 = arith.constant 0 : i32
    %c0_i32_0 = arith.constant 0 : i32
    %c0_i32_1 = arith.constant 0 : i32
    return %c0_i32, %c0_i32_0 : i32, i32
  }
  func.func @transform_12(%arg0: i32) -> (i32, i32) {
    %c0_i32 = arith.constant 0 : i32
    %c0_i32_0 = arith.constant 0 : i32
    %c0_i32_1 = arith.constant 0 : i32
    return %c0_i32, %c0_i32_0 : i32, i32
  }
  func.func @transform_13(%arg0: i32) -> (i32, i32) {
    %c0_i32 = arith.constant 0 : i32
    %c0_i32_0 = arith.constant 0 : i32
    %c0_i32_1 = arith.constant 0 : i32
    return %c0_i32, %c0_i32_0 : i32, i32
  }
  func.func @transform_14(%arg0: i32) -> (i32, i32) {
    %c0_i32 = arith.constant 0 : i32
    %c0_i32_0 = arith.constant 0 : i32
    %c0_i32_1 = arith.constant 0 : i32
    return %c0_i32, %c0_i32_0 : i32, i32
  }
  func.func @transform_15(%arg0: i32) -> (i32, i32) {
    %c0_i32 = arith.constant 0 : i32
    %c0_i32_0 = arith.constant 0 : i32
    %c0_i32_1 = arith.constant 0 : i32
    return %c0_i32, %c0_i32_0 : i32, i32
  }
  func.func @transform_16(%arg0: i32) -> (i32, i32) {
    %c0_i32 = arith.constant 0 : i32
    %c0_i32_0 = arith.constant 0 : i32
    %c0_i32_1 = arith.constant 0 : i32
    return %c0_i32, %c0_i32_0 : i32, i32
  }
  func.func @transform_17(%arg0: i32) -> (i32, i32) {
    %c0_i32 = arith.constant 0 : i32
    %c0_i32_0 = arith.constant 0 : i32
    %c0_i32_1 = arith.constant 0 : i32
    return %c0_i32, %c0_i32_0 : i32, i32
  }
  func.func @transform_18(%arg0: i32) -> (i32, i32) {
    %c0_i32 = arith.constant 0 : i32
    %c0_i32_0 = arith.constant 0 : i32
    %c0_i32_1 = arith.constant 0 : i32
    return %c0_i32, %c0_i32_0 : i32, i32
  }
  func.func @transform_19(%arg0: i32) -> (i32, i32, i32) {
    %c0_i32 = arith.constant 0 : i32
    %c0_i32_0 = arith.constant 0 : i32
    %c0_i32_1 = arith.constant 0 : i32
    return %arg0, %c0_i32, %c0_i32_0 : i32, i32, i32
  }
}

</mosaic_0001>

<bundles_post_ra>
// kernel: flexible_cnn_forward.1
= control target key start
LH: loop header
LB: loop body
LE: loop exit
PB: predicated region body
PF: predicated region fallthrough
CT: control target
= control target key end

     0   :  { %s10889_s0 = inlined_call_operand.vmem [shape: f32[2,256,36], index: 0, kind: input, shape index: {}]   ;;  %s10890_s1 = inlined_call_operand.vmem [shape: f32[36,32], index: 1, kind: input, shape index: {}]   ;;  %s10891_s2 = inlined_call_operand.vmem [shape: f32[1,32], index: 2, kind: input, shape index: {}]   ;;  %s10892_s3 = inlined_call_operand.vmem [shape: f32[1,32], index: 3, kind: input, shape index: {}]   ;;  %s10893_s4 = inlined_call_operand.vmem [shape: f32[288,64], index: 4, kind: input, shape index: {}]   ;;  %s10894_s5 = inlined_call_operand.vmem [shape: f32[1,64], index: 5, kind: input, shape index: {}]   ;;  %s10895_s6 = inlined_call_operand.vmem [shape: f32[1,64], index: 6, kind: input, shape index: {}]   ;;  %s10896_s7 = inlined_call_operand.vmem [shape: f32[576,128], index: 7, kind: input, shape index: {}]   ;;  %s10897_s8 = inlined_call_operand.vmem [shape: f32[1,128], index: 8, kind: input, shape index: {}]   ;;  %s10898_s9 = inlined_call_operand.vmem [shape: f32[1,128], index: 9, kind: input, shape index: {}]   ;;  %s10899_s10 = inlined_call_operand.vmem [shape: f32[1152,128], index: 10, kind: input, shape index: {}]   ;;  %s10900_s11 = inlined_call_operand.vmem [shape: f32[1,128], index: 11, kind: input, shape index: {}]   ;;  %s10901_s12 = inlined_call_operand.vmem [shape: f32[1,128], index: 12, kind: input, shape index: {}]   ;;  %s10902_s13 = inlined_call_operand.vmem [shape: f32[512,256], index: 13, kind: input, shape index: {}]   ;;  %s10903_s14 = inlined_call_operand.vmem [shape: f32[1,256], index: 14, kind: input, shape index: {}]   ;;  %s10904_s15 = inlined_call_operand.vmem [shape: f32[256,128], index: 15, kind: input, shape index: {}]   ;;  %s10905_s16 = inlined_call_operand.vmem [shape: f32[1,128], index: 16, kind: input, shape index: {}]   ;;  %s10906_s17 = inlined_call_operand.vmem [shape: f32[128,128], index: 17, kind: input, shape index: {}]   ;;  %s10907_s18 = inlined_call_operand.vmem [shape: f32[1,128], index: 18, kind: input, shape index: {}]   ;;  %s10908_s19 = inlined_call_operand.hbm [shape: f32[2,1,128], index: 19, kind: output, shape index: {}]  }
   0x1   :  { %10917 = sst [smem:[#allocation13_spill]] %s10889_s0 }
   0x2   :  { %10918 = sst [smem:[#allocation14_spill]] %s10890_s1 }
   0x3   :  { %10919 = sst [smem:[#allocation15_spill]] %s10891_s2 }
   0x4   :  { %10920 = sst [smem:[#allocation16_spill]] %s10892_s3 }
   0x5   :  { %10921 = sst [smem:[#allocation17_spill]] %s10893_s4 }
   0x6   :  { %10922 = sst [smem:[#allocation18_spill]] %s10894_s5 }
   0x7   :  { %10923 = sst [smem:[#allocation19_spill]] %s10895_s6 }
   0x8   :  { %24 = vsyncpa [#allocation6], 0 }
   0x9   :  { %26 = vsyncpa [#allocation6 + $0x1], 0  ;;  %s8516_s0 = smov 0   ;;  %s8518_s30 = smov 0  }
   0xa   :  { %s8520_s20 = smov 0   ;;  %s8522_s21 = smov 0  }
   0xb LB: > { %10924 = sst [smem:[#allocation8_spill]] %s8396_s0  ;;  %s8537_s1 = sadd.s32 4294967295, %s8408_s21   ;;  %s8408_s21 = sphi %s8522_s21, %s10941_s21   ;;  %s8404_s20 = sphi %s8520_s20, %s10946_s20   ;;  %s8400_s30 = sphi %s8518_s30, %s10945_s30   ;;  %s8396_s0 = sphi %s8516_s0, %s10944_s0  }
   0xc   : > { %10925 = sst [smem:[#allocation9_spill]] %s8404_s20  ;;  %s6195_s22 = sadd.s32 4294967294, %s8408_s21  }
   0xd   : > { %s8541_s2 = sadd.s32 1, %s8408_s21   ;;  %s443_s23 = sadd.s32 1, %s8404_s20 }
   0xe   : > { %10926 = sst [smem:[#allocation10_spill]] %s8541_s2  ;;  %s440_s24 = ssub.s32 %s8408_s21, %s8541_s2 }
   0xf   : > { %p453_p0 = scmp.ne.s32.totalorder %s8404_s20, %s8400_s30  ;;  %p441_p1 = scmp.eq.s32.totalorder %s440_s24, 0 }
  0x10   : > { %p454_p2 = scmp.eq.s32.totalorder %s8537_s1, 1  ;;  %p459_p3 = scmp.ne.s32.totalorder %s8400_s30, %s8396_s0 }
  0x11   : > { %p460_p4 = scmp.eq.s32.totalorder %s6195_s22, 1  ;;  %p6198_p7 = scmp.ge.s32.totalorder %s8408_s21, 1 }
  0x12   : > { %s8552_s25 = scalar_select %p441_p1, %s8404_s20, %s443_s23  }
  0x13   : > { %p8554_p5 = por %p454_p2, %p453_p0  ;;  %p8558_p6 = por %p460_p4, %p459_p3 }
  0x14   : > { %10927 = sst [smem:[#allocation11_spill]] %s8552_s25  ;;  %p540_p8 = scmp.lt.s32.totalorder %s8408_s21, 3 }
  0x15   : > { %s10929_s26 = scalar_select %p8558_p6, 1, 0 }
  0x16   : > { %p541_p9 = pnand %p6198_p7, %p540_p8 }
  0x17   : > { %10930 = sst [smem:[#allocation12_spill]] %s10929_s26  ;;  %s10931_s29 = sld [smem:[#allocation14_spill]] (!%p541_p9)  ;;  %vm637_vm0 = vcmask (!%p541_p9), 293888   ;;  %vm734_vm1 = vcmask (!%p541_p9), 1043456   ;;  %vm1073_vm2 = vcmask (!%p541_p9), 261120   ;;  %vm1474_vm3 = vcmask (!%p541_p9), 254976  }
  0x18   : > { %544 = sbr.rel (%p541_p9) target bundleno = 2397 (0x95d), region = 96  ;;  %p595_p10 = scmp.lt.s32.totalorder (!%p541_p9), %s8537_s1, 1  ;;  %v8410_v50 = vmov (!%p541_p9), 0.0   ;;  %vm1929_vm4 = vcmask (!%p541_p9), 253952   ;;  %v8411_v60 = vmov (!%p541_p9), 1983009808   ;;  %v1142_v62 = vlaneseq (!%p541_p9) }
  0x19   : > { %s10932_s23 = sld [smem:[#allocation13_spill]] (!%p541_p9)  ;;  %s10933_s4 = sld [smem:[#allocation17_spill]] (!%p541_p9)  ;;  %1923 = vst.msk [vmem:[#allocation2] sm:$0xff] (!%p541_p9), %vm1073_vm2, %v8410_v50  ;;  %1926 = vst.msk [vmem:[#allocation2 + $0x90] sm:$0xff] (!%p541_p9), %vm1073_vm2, %v8410_v50  ;;  %v1140_v61 = vunpack.c.l.s4 (!%p541_p9), %v8411_v60  ;;  %vm2010_vm5 = vcmask (!%p541_p9), 1041409   ;;  %vm2012_vm6 = vcmask (!%p541_p9), 1042434  }
  0x1a   : > { %1924 = vst.msk [vmem:[#allocation2 + $0x8] sm:$0x3] (!%p541_p9), %vm1474_vm3, %v8410_v50  ;;  %1927 = vst.msk [vmem:[#allocation2 + $0x98] sm:$0x3] (!%p541_p9), %vm1474_vm3, %v8410_v50  ;;  %vm2014_vm7 = vcmask (!%p541_p9), 1043459   ;;  %vm2016_vm8 = vcmask (!%p541_p9), 1044484  }
  0x1b   : > { %4689 = vst [vmem:[#allocation4] sm:$0xf] (!%p541_p9), %v8410_v50  ;;  %4691 = vst [vmem:[#allocation4 + $0xc] sm:$0xf] (!%p541_p9), %v8410_v50  ;;  %vm2018_vm9 = vcmask (!%p541_p9), 1045509   ;;  %vm2020_vm10 = vcmask (!%p541_p9), 1046534  }
  0x1c   : > { %4693 = vst [vmem:[#allocation4 + $0x4] sm:$0x1] (!%p541_p9), %v8410_v50  ;;  %4694 = vst [vmem:[#allocation4 + $0x8] sm:$0x1] (!%p541_p9), %v8410_v50  ;;  %vm2022_vm11 = vcmask (!%p541_p9), 1047559   ;;  %vm3667_vm12 = vcmask (!%p541_p9), 521216  }
  0x1d   : > { %v632_v0 = vld [vmem:[%s10931_s29] sm:$0xff] (!%p541_p9)  ;;  %v633_v1 = vld [vmem:[%s10931_s29 + $0x8] sm:$0xff] (!%p541_p9)  ;;  %v634_v2 = vld [vmem:[%s10931_s29 + $0x10] sm:$0xff] (!%p541_p9)  ;;  %4695 = vst [vmem:[#allocation4 + $0x7] sm:$0x1] (!%p541_p9), %v8410_v50  ;;  %vm3672_vm13 = vcmask (!%p541_p9), 516096  }
  0x1e   : > { %v7535_v3 = vpack.c.bf16 (!%p541_p9), %v633_v1, %v632_v0  ;;  %v635_v4 = vld [vmem:[%s10931_s29 + $0x18] sm:$0xff] (!%p541_p9)  ;;  %v636_v6 = vld [vmem:[%s10931_s29 + $0x20] sm:$0xf] (!%p541_p9)  ;;  %4696 = vst [vmem:[#allocation4 + $0xb] sm:$0x1] (!%p541_p9), %v8410_v50  ;;  %s10937_s5 = sld [smem:[#allocation18_spill]] (!%p541_p9) }
  0x1f   : > { %v7539_v5 = vpack.c.bf16 %v635_v4, %v634_v2  ;;  %s596_s26 = scalar_select %p595_p10, %s8537_s1, 1  ;;  %v2109_v39 = vld [vmem:[%s10933_s4 + $0x20] sm:$0xff]  ;;  %v2110_v40 = vld [vmem:[%s10933_s4 + $0x28] sm:$0xff]  ;;  %v2111_v45 = vld [vmem:[%s10933_s4 + $0x30] sm:$0xff]  ;;  %1930 = vst.msk [vmem:[#allocation2 + $0x10] sm:$0x1] %vm1929_vm4, %v8410_v50  ;;  %v1141_v4 = vunpack.c.0.s8 %v1140_v61 }
  0x20   : > { %7536 = vmatprep.subr.bf16.mxu0 %v7535_v3  ;;  %v2097_v41 = vld [vmem:[%s10933_s4] sm:$0xff]  ;;  %v7543_v42 = vpack.c.bf16 %v2110_v40, %v2109_v39  ;;  %v2098_v43 = vld [vmem:[%s10933_s4 + $0x8] sm:$0xff]  ;;  %v2112_v46 = vld [vmem:[%s10933_s4 + $0x38] sm:$0xff]  ;;  %1931 = vst.msk [vmem:[#allocation2 + $0x20] sm:$0x1] %vm1929_vm4, %v8410_v50  ;;  %s10938_s6 = sld [smem:[#allocation19_spill]] }
  0x21   : > { %7538 = vmatpush3.bf16.msra.mxu0 %v7535_v3  ;;  %s6335_s27 = sshll.u32 %s596_s26, 8  ;;  %v7551_v44 = vpack.c.bf16 %v2098_v43, %v2097_v41  ;;  %v2099_v47 = vld [vmem:[%s10933_s4 + $0x10] sm:$0xff]  ;;  %v7547_v48 = vpack.c.bf16 %v2112_v46, %v2111_v45  ;;  %v2100_v49 = vld [vmem:[%s10933_s4 + $0x18] sm:$0xff]  ;;  %1932 = vst.msk [vmem:[#allocation2 + $0x30] sm:$0x1] %vm1929_vm4, %v8410_v50  ;;  %v2101_v52 = vld [vmem:[#allocation2 + $0x1] sm:$0xff] }
  0x22   : > { %7540 = vmatprep.subr.bf16.mxu0 %v7539_v5  ;;  %s8581_s0 = scalar_lea.vmem %s10932_s23, %s6335_s27  ;;  %v7555_v51 = vpack.c.bf16 %v2100_v49, %v2099_v47  ;;  %1933 = vst.msk [vmem:[#allocation2 + $0x40] sm:$0x1] %vm1929_vm4, %v8410_v50  ;;  %1934 = vst.msk [vmem:[#allocation2 + $0x50] sm:$0x1] %vm1929_vm4, %v8410_v50  ;;  %v2089_v53 = vld [vmem:[#allocation2] sm:$0xff]  ;;  %s10936_s26 = sld [smem:[#allocation16_spill]] }
  0x23   : > { %v600_v7 = vld [vmem:[%s8581_s0] sm:$0xff]  ;;  %v601_v8 = vld [vmem:[%s8581_s0 + $0x8] sm:$0xff]  ;;  %v602_v9 = vld [vmem:[%s8581_s0 + $0x10] sm:$0xff]  ;;  %7552 = vmatprep.subr.bf16.mxu1 %v7551_v44  ;;  %1935 = vst.msk [vmem:[#allocation2 + $0x60] sm:$0x1] %vm1929_vm4, %v8410_v50  ;;  %6862 = vmatprep.mubr.msk.f32.mxu1 %vm1073_vm2, %v2089_v53  ;;  %vm3453_vm14 = vcmask 523264  }
  0x24   : > { %6786 = vmatprep.mubr.msk.f32.mxu0 %vm637_vm0, %v600_v7  ;;  %v603_v10 = vld [vmem:[%s8581_s0 + $0x18] sm:$0xff]  ;;  %v604_v11 = vld [vmem:[%s8581_s0 + $0x20] sm:$0xff]  ;;  %v605_v12 = vld [vmem:[%s8581_s0 + $0x28] sm:$0xff]  ;;  %7554 = vmatpush3.bf16.msra.mxu1 %v7551_v44  ;;  %1936 = vst.msk [vmem:[#allocation2 + $0x70] sm:$0x1] %vm1929_vm4, %v8410_v50  ;;  %vm3554_vm15 = vcmask 517120  }
  0x25   : > { %7542 = vmatpush3.bf16.msra.mxu0 %v7539_v5  ;;  %v606_v13 = vld [vmem:[%s8581_s0 + $0x30] sm:$0xff]  ;;  %v607_v14 = vld [vmem:[%s8581_s0 + $0x38] sm:$0xff]  ;;  %v608_v15 = vld [vmem:[%s8581_s0 + $0x40] sm:$0xff]  ;;  %1937 = vst.msk [vmem:[#allocation2 + $0x80] sm:$0x1] %vm1929_vm4, %v8410_v50  ;;  %7556 = vmatprep.subr.bf16.mxu1 %v7555_v51  ;;  %v8739_v5 = vshrl.u32 %v1142_v62, 7 }
  0x26   : > { %6784 = vmatprep.subr.msk.mxu0 %vm734_vm1, %v636_v6  ;;  %v609_v16 = vld [vmem:[%s8581_s0 + $0x48] sm:$0xff]  ;;  %v610_v17 = vld [vmem:[%s8581_s0 + $0x50] sm:$0xff]  ;;  %v611_v18 = vld [vmem:[%s8581_s0 + $0x58] sm:$0xff]  ;;  %1938 = vst.msk [vmem:[#allocation2 + $0x19] sm:$0x1] %vm1929_vm4, %v8410_v50  ;;  %s593_s20 = sand.u32 1, %s8400_s30  }
  0x27   : > { %v612_v19 = vld [vmem:[%s8581_s0 + $0x60] sm:$0xff]  ;;  %v613_v20 = vld [vmem:[%s8581_s0 + $0x68] sm:$0xff]  ;;  %v614_v21 = vld [vmem:[%s8581_s0 + $0x70] sm:$0xff]  ;;  %1939 = vst.msk [vmem:[#allocation2 + $0x29] sm:$0x1] %vm1929_vm4, %v8410_v50  ;;  %s594_s28 = scalar_lea.vmem [#allocation5], %s593_s20 }
  0x28   : > { %v615_v22 = vld [vmem:[%s8581_s0 + $0x78] sm:$0xff]  ;;  %v616_v23 = vld [vmem:[%s8581_s0 + $0x80] sm:$0xff]  ;;  %v617_v24 = vld [vmem:[%s8581_s0 + $0x88] sm:$0xff]  ;;  %1940 = vst.msk [vmem:[#allocation2 + $0x39] sm:$0x1] %vm1929_vm4, %v8410_v50  ;;  %7558 = vmatpush3.bf16.msra.mxu1 %v7555_v51  ;;  %s6128_s25 = scalar_lea.sflag [#allocation6], %s593_s20 }
  0x29   : > { %6785 = vmatpush3.msk.msra.mxu0 %vm734_vm1, %v636_v6  ;;  %v618_v25 = vld [vmem:[%s8581_s0 + $0x90] sm:$0xff]  ;;  %v619_v26 = vld [vmem:[%s8581_s0 + $0x98] sm:$0xff]  ;;  %v620_v27 = vld [vmem:[%s8581_s0 + $0xa0] sm:$0xff]  ;;  %1941 = vst.msk [vmem:[#allocation2 + $0x49] sm:$0x1] %vm1929_vm4, %v8410_v50 }
  0x2a   : > { %6787 = vmatmul.mubr.msk.f32.vlgmr.msra.gmra.mrb[0].mxu0 %vm637_vm0, %v601_v8  ;;  %v621_v28 = vld [vmem:[%s8581_s0 + $0xa8] sm:$0xff]  ;;  %v622_v29 = vld [vmem:[%s8581_s0 + $0xb0] sm:$0xff]  ;;  %v623_v30 = vld [vmem:[%s8581_s0 + $0xb8] sm:$0xff]  ;;  %7544 = vmatprep.subr.bf16.mxu0 %v7543_v42  ;;  %1942 = vst.msk [vmem:[#allocation2 + $0x59] sm:$0x1] %vm1929_vm4, %v8410_v50 }
  0x2b   : > { %6789 = vmatprep.mubr.msk.f32.mxu0 %vm637_vm0, %v602_v9  ;;  %v624_v31 = vld [vmem:[%s8581_s0 + $0xc0] sm:$0xff]  ;;  %v625_v32 = vld [vmem:[%s8581_s0 + $0xc8] sm:$0xff]  ;;  %v626_v33 = vld [vmem:[%s8581_s0 + $0xd0] sm:$0xff]  ;;  %7546 = vmatpush3.bf16.msra.mxu0 %v7543_v42  ;;  %1943 = vst.msk [vmem:[#allocation2 + $0x69] sm:$0x1] %vm1929_vm4, %v8410_v50 }
  0x2c   : > { %v627_v34 = vld [vmem:[%s8581_s0 + $0xd8] sm:$0xff]  ;;  %v628_v35 = vld [vmem:[%s8581_s0 + $0xe0] sm:$0xff]  ;;  %v629_v36 = vld [vmem:[%s8581_s0 + $0xe8] sm:$0xff]  ;;  %1944 = vst.msk [vmem:[#allocation2 + $0x79] sm:$0x1] %vm1929_vm4, %v8410_v50  ;;  %7548 = vmatprep.subr.bf16.mxu0 %v7547_v48 }
  0x2d   : > { %v630_v37 = vld [vmem:[%s8581_s0 + $0xf0] sm:$0xff]  ;;  %v631_v38 = vld [vmem:[%s8581_s0 + $0xf8] sm:$0xff]  ;;  %1945 = vst.msk [vmem:[#allocation2 + $0x89] sm:$0x1] %vm1929_vm4, %v8410_v50  ;;  %s10934_s0 = sld [smem:[#allocation15_spill]] }
  0x2e   : > { %6790 = vmatmul.mubr.msk.f32.gmra.mrb[2].mxu0 %vm637_vm0, %v603_v10  ;;  %v8732_v56 = vld [vmem:[%s10936_s26] ss:$0 sm:$0xff]  ;;  %3668 = vst.msk [vmem:[#allocation3] sm:$0x3f] %vm3667_vm12, %v8410_v50  ;;  %3670 = vst.msk [vmem:[#allocation3 + $0x28] sm:$0x3f] %vm3667_vm12, %v8410_v50 }
  0x2f   : > { %6792 = vmatprep.mubr.msk.f32.mxu0 %vm637_vm0, %v604_v11  ;;  %7550 = vmatpush3.bf16.msra.mxu0 %v7547_v48  ;;  %3673 = vst.msk [vmem:[#allocation3 + $0x8] sm:$0x1] %vm3672_vm13, %v8410_v50  ;;  %3674 = vst.msk [vmem:[#allocation3 + $0x10] sm:$0x1] %vm3672_vm13, %v8410_v50 }
  0x30   : > { %3675 = vst.msk [vmem:[#allocation3 + $0x18] sm:$0x1] %vm3672_vm13, %v8410_v50  ;;  %3676 = vst.msk [vmem:[#allocation3 + $0x20] sm:$0x1] %vm3672_vm13, %v8410_v50 }
  0x31   : > { %3677 = vst.msk [vmem:[#allocation3 + $0xd] sm:$0x1] %vm3672_vm13, %v8410_v50  ;;  %3678 = vst.msk [vmem:[#allocation3 + $0x15] sm:$0x1] %vm3672_vm13, %v8410_v50 }
  0x32   : > { %6793 = vmatmul.mubr.msk.f32.gmra.mrb[4].mxu0 %vm637_vm0, %v605_v12  ;;  %3679 = vst.msk [vmem:[#allocation3 + $0x1d] sm:$0x1] %vm3672_vm13, %v8410_v50  ;;  %3680 = vst.msk [vmem:[#allocation3 + $0x25] sm:$0x1] %vm3672_vm13, %v8410_v50 }
  0x33   : > { %6795 = vmatprep.mubr.msk.f32.mxu0 %vm637_vm0, %v606_v13  ;;  %s10935_s24 = smov %s10934_s0  ;;  %v8727_v54 = vld [vmem:[%s10934_s0] ss:$0 sm:$0xff] }
  0x36   : > { %6796 = vmatmul.mubr.msk.f32.gmra.mrb[6].mxu0 %vm637_vm0, %v607_v14 }
  0x37   : > { %6798 = vmatprep.mubr.msk.f32.mxu0 %vm637_vm0, %v608_v15  ;;  %v8746_v15 = vsub.s32 %v1141_v4, %v8739_v5 }
  0x3a   : > { %6799 = vmatmul.mubr.msk.f32.gmra.mrb[8].mxu0 %vm637_vm0, %v609_v16 }
  0x3b   : > { %6801 = vmatprep.mubr.msk.f32.mxu0 %vm637_vm0, %v610_v17 }
  0x3e   : > { %6802 = vmatmul.mubr.msk.f32.gmra.mrb[10].mxu0 %vm637_vm0, %v611_v18 }
  0x3f   : > { %6804 = vmatprep.mubr.msk.f32.mxu0 %vm637_vm0, %v612_v19 }
  0x42   : > { %6805 = vmatmul.mubr.msk.f32.gmra.mrb[12].mxu0 %vm637_vm0, %v613_v20 }
  0x43   : > { %6807 = vmatprep.mubr.msk.f32.mxu0 %vm637_vm0, %v614_v21 }
  0x46   : > { %6808 = vmatmul.mubr.msk.f32.gmra.mrb[14].mxu0 %vm637_vm0, %v615_v22 }
  0x47   : > { %6810 = vmatprep.mubr.msk.f32.mxu0 %vm637_vm0, %v616_v23 }
  0x4a   : > { %6811 = vmatmul.mubr.msk.f32.gmra.mrb[16].mxu0 %vm637_vm0, %v617_v24 }
  0x4b   : > { %6813 = vmatprep.mubr.msk.f32.mxu0 %vm637_vm0, %v618_v25 }
  0x4e   : > { %6814 = vmatmul.mubr.msk.f32.gmra.mrb[18].mxu0 %vm637_vm0, %v619_v26 }
  0x4f   : > { %6816 = vmatprep.mubr.msk.f32.mxu0 %vm637_vm0, %v620_v27 }
  0x52   : > { %6817 = vmatmul.mubr.msk.f32.gmra.mrb[20].mxu0 %vm637_vm0, %v621_v28 }
  0x53   : > { %6819 = vmatprep.mubr.msk.f32.mxu0 %vm637_vm0, %v622_v29 }
  0x56   : > { %6820 = vmatmul.mubr.msk.f32.gmra.mrb[22].mxu0 %vm637_vm0, %v623_v30 }
  0x57   : > { %6822 = vmatprep.mubr.msk.f32.mxu0 %vm637_vm0, %v624_v31 }
  0x5a   : > { %6823 = vmatmul.mubr.msk.f32.gmra.mrb[24].mxu0 %vm637_vm0, %v625_v32 }
  0x5b   : > { %6825 = vmatprep.mubr.msk.f32.mxu0 %vm637_vm0, %v626_v33 }
  0x5e   : > { %6826 = vmatmul.mubr.msk.f32.gmra.mrb[26].mxu0 %vm637_vm0, %v627_v34 }
  0x5f   : > { %6828 = vmatprep.mubr.msk.f32.mxu0 %vm637_vm0, %v628_v35 }
  0x62   : > { %6829 = vmatmul.mubr.msk.f32.gmra.mrb[28].mxu0 %vm637_vm0, %v629_v36 }
  0x63   : > { %6831 = vmatprep.mubr.msk.f32.mxu0 %vm637_vm0, %v630_v37 }
  0x66   : > { %6832 = vmatmul.mubr.msk.f32.gmra.mrb[30].mxu0 %vm637_vm0, %v631_v38  ;;  %vm3713_vm0 = vcmask 519168  }
  0x67   : > { %6842 = vmatprep.mubr.msk.f32.mxu0 %vm1073_vm2, %v2101_v52 }
  0xfd   : > { %v6788_v55 = vpop.f32.mrb[0].mxu0 }
  0xfe   : > { %v971_v57 = vmul.f32 %v6788_v55, %v8727_v54  ;;  %v804_v58 = vpop.f32.mrb[1].mxu0 }
  0xff   : > { %v970_v59 = vmul.f32 %v8727_v54, %v804_v58 }
 0x100   : > { %v1010_v63 = vadd.f32 %v8732_v56, %v971_v57 }
 0x101   : > { %v1009_v0 = vadd.f32 %v8732_v56, %v970_v59  ;;  %v6791_v1 = vpop.f32.mrb[2].mxu0 }
 0x102   : > { %v973_v2 = vmul.f32 %v6791_v1, %v8727_v54  ;;  %v814_v3 = vpop.f32.mrb[3].mxu0  ;;  %v1042_v7 = vmax.f32 %v1010_v63, 0.0 }
 0x103   : > { %v972_v6 = vmul.f32 %v8727_v54, %v814_v3  ;;  %v1041_v9 = vmax.f32 %v1009_v0, 0.0 }
 0x104   : > { %v1012_v8 = vadd.f32 %v8732_v56, %v973_v2  ;;  %v1077_v18 = vsel %vm1073_vm2, %v1042_v7, -inf }
 0x105   : > { %v1011_v10 = vadd.f32 %v8732_v56, %v972_v6  ;;  %v6794_v11 = vpop.f32.mrb[4].mxu0  ;;  %v1074_v21 = vsel %vm1073_vm2, %v1041_v9, -inf }
 0x106   : > { %v1044_v12 = vmax.f32 %v1012_v8, 0.0  ;;  %v975_v13 = vmul.f32 %v6794_v11, %v8727_v54  ;;  %v824_v14 = vpop.f32.mrb[5].mxu0 }
 0x107   : > { %v1043_v16 = vmax.f32 %v1011_v10, 0.0  ;;  %v974_v17 = vmul.f32 %v8727_v54, %v824_v14 }
 0x108   : > { %v1078_v19 = vsel %vm1073_vm2, %v1044_v12, -inf  ;;  %v8752_v20 = vadd.f32 %v8732_v56, %v975_v13 }
 0x109   : > { %v1079_v22 = vmax.f32 %v1077_v18, %v1078_v19  ;;  %v1075_v23 = vsel %vm1073_vm2, %v1043_v16, -inf  ;;  %v8757_v24 = vadd.f32 %v8732_v56, %v974_v17  ;;  %v6797_v25 = vpop.f32.mrb[6].mxu0 }
 0x10a   : > { %v1076_v26 = vmax.f32 %v1074_v21, %v1075_v23  ;;  %v977_v27 = vmul.f32 %v6797_v25, %v8727_v54  ;;  %v834_v28 = vpop.f32.mrb[7].mxu0  ;;  %v1046_v31 = vmax.f32 %v8752_v20, 0.0 }
 0x10b   : > { %v1155_v29 = vcombine.high %v1079_v22, %v1079_v22  ;;  %v1162_v30 = vrot.slane %v1079_v22, %v8746_v15  ;;  %v1045_v34 = vmax.f32 %v8757_v24, 0.0  ;;  %v8765_v35 = vmul.f32 %v8727_v54, %v834_v28 }
 0x10c   : > { %v1138_v32 = vcombine.high %v1076_v26, %v1076_v26  ;;  %v1145_v33 = vrot.slane %v1076_v26, %v8746_v15  ;;  %v8770_v39 = vadd.f32 %v8732_v56, %v977_v27 }
 0x10d   : > { %v1169_v36 = vrot.slane %v1155_v29, %v8746_v15  ;;  %v1170_v37 = vcombine.high %v1162_v30, %v1162_v30  ;;  %v1503_v38 = vsel %vm1474_vm3, %v1162_v30, -inf  ;;  %v8772_v40 = vpop.f32.mrb[8].mxu0  ;;  %v1083_v29 = vsel %vm1073_vm2, %v1046_v31, -inf }
 0x10e   : > { %v1504_v41 = vrot.slane %v1503_v38, 4  ;;  %v1152_v42 = vrot.slane %v1138_v32, %v8746_v15  ;;  %v1153_v43 = vcombine.high %v1145_v33, %v1145_v33  ;;  %v1475_v44 = vsel %vm1474_vm3, %v1145_v33, -inf  ;;  %v8776_v45 = vpop.f32.mrb[9].mxu0 }
 0x10f   : > { %v1171_v46 = vcombine.high %v1169_v36, %v1169_v36  ;;  %v1510_v47 = vsel %vm1474_vm3, %v1170_v37, -inf  ;;  %v1517_v48 = vsel %vm1474_vm3, %v1169_v36, -inf  ;;  %v1476_v49 = vrot.slane %v1475_v44, 4 }
 0x110   : > { %v1505_v51 = vmax.f32 %v1503_v38, %v1504_v41  ;;  %v1511_v52 = vrot.slane %v1510_v47, 4  ;;  %v1518_v53 = vrot.slane %v1517_v48, 4  ;;  %v1154_v55 = vcombine.high %v1152_v42, %v1152_v42 }
 0x111   : > { %v1524_v57 = vsel %vm1474_vm3, %v1171_v46, -inf  ;;  %v1477_v58 = vmax.f32 %v1475_v44, %v1476_v49  ;;  %v1482_v59 = vsel %vm1474_vm3, %v1153_v43, -inf  ;;  %v1489_v60 = vsel %vm1474_vm3, %v1152_v42, -inf  ;;  %v8783_v61 = vpop.f32.mrb[10].mxu0 }
 0x112   : > { %v1506_v62 = vrot.slane %v1505_v51, 2  ;;  %v1512_v63 = vmax.f32 %v1510_v47, %v1511_v52  ;;  %v1519_v0 = vmax.f32 %v1517_v48, %v1518_v53  ;;  %v1525_v1 = vrot.slane %v1524_v57, 4  ;;  %v8785_v2 = vpop.f32.mrb[11].mxu0 }
 0x113   : > { %v1478_v3 = vrot.slane %v1477_v58, 2  ;;  %v1483_v4 = vrot.slane %v1482_v59, 4  ;;  %v1490_v6 = vrot.slane %v1489_v60, 4  ;;  %v1496_v7 = vsel %vm1474_vm3, %v1154_v55, -inf }
 0x114   : > { %v1507_v8 = vmax.f32 %v1505_v51, %v1506_v62  ;;  %v1513_v9 = vrot.slane %v1512_v63, 2  ;;  %v1520_v10 = vrot.slane %v1519_v0, 2  ;;  %v1526_v11 = vmax.f32 %v1524_v57, %v1525_v1 }
 0x115   : > { %v1479_v12 = vmax.f32 %v1477_v58, %v1478_v3  ;;  %v1484_v13 = vmax.f32 %v1482_v59, %v1483_v4  ;;  %v1491_v14 = vmax.f32 %v1489_v60, %v1490_v6  ;;  %v1497_v16 = vrot.slane %v1496_v7, 4  ;;  %v8788_v17 = vpop.f32.mrb[12].mxu0 }
 0x116   : > { %v1508_v18 = vrot.slane %v1507_v8, 1  ;;  %v1514_v19 = vmax.f32 %v1512_v63, %v1513_v9  ;;  %v1521_v20 = vmax.f32 %v1519_v0, %v1520_v10  ;;  %v1527_v21 = vrot.slane %v1526_v11, 2  ;;  %v8790_v22 = vpop.f32.mrb[13].mxu0 }
 0x117   : > { %v1480_v23 = vrot.slane %v1479_v12, 1  ;;  %v1485_v24 = vrot.slane %v1484_v13, 2  ;;  %v1492_v25 = vrot.slane %v1491_v14, 2  ;;  %v1498_v26 = vmax.f32 %v1496_v7, %v1497_v16 }
 0x118   : > { %v1515_v27 = vrot.slane %v1514_v19, 1  ;;  %v1528_v28 = vmax.f32 %v1526_v11, %v1527_v21  ;;  %v1080_v30 = vsel %vm1073_vm2, %v1045_v34, -inf  ;;  %v1509_v32 = vmax.f32 %v1507_v8, %v1508_v18 }
 0x119   : > { %v1486_v33 = vmax.f32 %v1484_v13, %v1485_v24  ;;  %v1493_v36 = vmax.f32 %v1491_v14, %v1492_v25  ;;  %v1499_v37 = vrot.slane %v1498_v26, 2  ;;  %v8794_v38 = vpop.f32.mrb[14].mxu0  ;;  %v1522_v41 = vrot.slane %v1521_v20, 1 }
 0x11a   : > { %v1529_v42 = vrot.slane %v1528_v28, 1  ;;  %v1481_v43 = vmax.f32 %v1479_v12, %v1480_v23  ;;  %v1048_v44 = vmax.f32 %v8770_v39, 0.0  ;;  %v8797_v46 = vpop.f32.mrb[15].mxu0  ;;  %v1015_v34 = vadd.f32 %v8732_v56, %v8765_v35 }
 0x11b   : > { %v1487_v47 = vrot.slane %v1486_v33, 1  ;;  %v1494_v48 = vrot.slane %v1493_v36, 1  ;;  %v1500_v31 = vmax.f32 %v1498_v26, %v1499_v37  ;;  %v1516_v49 = vmax.f32 %v1514_v19, %v1515_v27 }
 0x11c   : > { %v1084_v51 = vsel %vm1073_vm2, %v1048_v44, -inf  ;;  %v979_v52 = vmul.f32 %v8772_v40, %v8727_v54  ;;  %v978_v53 = vmul.f32 %v8727_v54, %v8776_v45  ;;  %v1523_v60 = vmax.f32 %v1521_v20, %v1522_v41 }
 0x11d   : > { %v1488_v55 = vmax.f32 %v1486_v33, %v1487_v47  ;;  %v1495_v57 = vmax.f32 %v1493_v36, %v1494_v48  ;;  %v1501_v39 = vrot.slane %v1500_v31, 1  ;;  %v1085_v58 = vmax.f32 %v1083_v29, %v1084_v51  ;;  %v8806_v59 = vpop.f32.mrb[16].mxu0 }
 0x11e   : > { %v1530_v62 = vmax.f32 %v1528_v28, %v1529_v42  ;;  %v1047_v63 = vmax.f32 %v1015_v34, 0.0  ;;  %v8809_v35 = vadd.f32 %v8732_v56, %v979_v52  ;;  %v8811_v0 = vpop.f32.mrb[17].mxu0  ;;  %v1017_v7 = vadd.f32 %v8732_v56, %v978_v53 }
 0x11f   : > { %v1502_v1 = vmax.f32 %v1500_v31, %v1501_v39  ;;  %v2011_v40 = vsel %vm2010_vm5, %v1488_v55, %v1481_v43  ;;  %v1189_v3 = vcombine.high %v1085_v58, %v1085_v58  ;;  %v1196_v45 = vrot.slane %v1085_v58, %v8746_v15 }
 0x120   : > { %v2013_v4 = vsel %vm2012_vm6, %v1495_v57, %v2011_v40  ;;  %v1081_v6 = vsel %vm1073_vm2, %v1047_v63, -inf  ;;  %v8820_v8 = vmul.f32 %v8783_v61, %v8727_v54  ;;  %v1050_v19 = vmax.f32 %v8809_v35, 0.0 }
 0x121   : > { %v2015_v9 = vsel %vm2014_vm7, %v1502_v1, %v2013_v4  ;;  %v1203_v10 = vrot.slane %v1189_v3, %v8746_v15  ;;  %v1204_v11 = vcombine.high %v1196_v45, %v1196_v45  ;;  %v1559_v12 = vsel %vm1474_vm3, %v1196_v45, -inf  ;;  %v8825_v13 = vpop.f32.mrb[18].mxu0 }
 0x122   : > { %v2017_v14 = vsel %vm2016_vm8, %v1509_v32, %v2015_v9  ;;  %v1560_v16 = vrot.slane %v1559_v12, 4  ;;  %v1082_v18 = vmax.f32 %v1080_v30, %v1081_v6  ;;  %v8829_v20 = vpop.f32.mrb[19].mxu0  ;;  %v1049_v34 = vmax.f32 %v1017_v7, 0.0 }
 0x123   : > { %v2019_v61 = vsel %vm2018_vm9, %v1516_v49, %v2017_v14  ;;  %v1205_v21 = vcombine.high %v1203_v10, %v1203_v10  ;;  %v1566_v23 = vsel %vm1474_vm3, %v1204_v11, -inf  ;;  %v1573_v24 = vsel %vm1474_vm3, %v1203_v10, -inf }
 0x124   : > { %v2021_v25 = vsel %vm2020_vm10, %v1523_v60, %v2019_v61  ;;  %v1561_v26 = vmax.f32 %v1559_v12, %v1560_v16  ;;  %v1567_v27 = vrot.slane %v1566_v23, 4  ;;  %v1574_v28 = vrot.slane %v1573_v24, 4 }
 0x125   : > { %v2023_v29 = vsel %vm2022_vm11, %v1530_v62, %v2021_v25  ;;  %v1580_v30 = vsel %vm1474_vm3, %v1205_v21, -inf  ;;  %v1172_v32 = vcombine.high %v1082_v18, %v1082_v18  ;;  %v1179_v33 = vrot.slane %v1082_v18, %v8746_v15  ;;  %v8838_v36 = vpop.f32.mrb[20].mxu0 }
 0x126   : > { %2081 = vst.msk [vmem:[#allocation2 + $0x11] sm:$0xff] %vm1073_vm2, %v2023_v29  ;;  %v1562_v37 = vrot.slane %v1561_v26, 2  ;;  %v1568_v41 = vmax.f32 %v1566_v23, %v1567_v27  ;;  %v1575_v42 = vmax.f32 %v1573_v24, %v1574_v28  ;;  %v1581_v43 = vrot.slane %v1580_v30, 4  ;;  %v8841_v44 = vpop.f32.mrb[21].mxu0 }
 0x127   : > { %v1186_v47 = vrot.slane %v1172_v32, %v8746_v15  ;;  %v1187_v48 = vcombine.high %v1179_v33, %v1179_v33  ;;  %v1531_v31 = vsel %vm1474_vm3, %v1179_v33, -inf  ;;  %v1089_v10 = vsel %vm1073_vm2, %v1050_v19, -inf }
 0x128   : > { %v1563_v49 = vmax.f32 %v1561_v26, %v1562_v37  ;;  %v1569_v51 = vrot.slane %v1568_v41, 2  ;;  %v1576_v52 = vrot.slane %v1575_v42, 2  ;;  %v1582_v53 = vmax.f32 %v1580_v30, %v1581_v43 }
 0x129   : > { %v1188_v55 = vcombine.high %v1186_v47, %v1186_v47  ;;  %v1532_v57 = vrot.slane %v1531_v31, 4  ;;  %v1538_v39 = vsel %vm1474_vm3, %v1187_v48, -inf  ;;  %v1545_v58 = vsel %vm1474_vm3, %v1186_v47, -inf  ;;  %v8847_v60 = vpop.f32.mrb[22].mxu0 }
 0x12a   : > { %v1564_v62 = vrot.slane %v1563_v49, 1  ;;  %v1570_v63 = vmax.f32 %v1568_v41, %v1569_v51  ;;  %v1577_v35 = vmax.f32 %v1575_v42, %v1576_v52  ;;  %v1583_v1 = vrot.slane %v1582_v53, 2  ;;  %v8849_v40 = vpop.f32.mrb[23].mxu0 }
 0x12b   : > { %v1533_v3 = vmax.f32 %v1531_v31, %v1532_v57  ;;  %v1539_v45 = vrot.slane %v1538_v39, 4  ;;  %v1546_v4 = vrot.slane %v1545_v58, 4  ;;  %v1552_v6 = vsel %vm1474_vm3, %v1188_v55, -inf }
 0x12c   : > { %v1571_v7 = vrot.slane %v1570_v63, 1  ;;  %v1584_v9 = vmax.f32 %v1582_v53, %v1583_v1  ;;  %v1086_v11 = vsel %vm1073_vm2, %v1049_v34, -inf  ;;  %v1553_v18 = vrot.slane %v1552_v6, 4 }
 0x12d   : > { %v1534_v12 = vrot.slane %v1533_v3, 2  ;;  %v1540_v14 = vmax.f32 %v1538_v39, %v1539_v45  ;;  %v1547_v16 = vmax.f32 %v1545_v58, %v1546_v4  ;;  %v2102_v61 = vld [vmem:[#allocation2 + $0x11] sm:$0xff]  ;;  %v8854_v23 = vpop.f32.mrb[24].mxu0  ;;  %v1565_v24 = vmax.f32 %v1563_v49, %v1564_v62 }
 0x12e   : > { %v2090_v21 = vld [vmem:[#allocation2 + $0x10] sm:$0xff]  ;;  %v1572_v25 = vmax.f32 %v1570_v63, %v1571_v7  ;;  %v1578_v26 = vrot.slane %v1577_v35, 1  ;;  %v1020_v27 = vadd.f32 %v8732_v56, %v8820_v8  ;;  %6843 = vmatmul.mubr.msk.f32.vlgmr.msra.gmra.mrb[32].mxu0 %vm1073_vm2, %v2102_v61  ;;  %v8860_v19 = vpop.f32.mrb[25].mxu0  ;;  %v1554_v32 = vmax.f32 %v1552_v6, %v1553_v18 }
 0x12f   : > { %6863 = vmatmul.mubr.msk.f32.vlgmr.msra.gmra.mrb[0].mxu1 %vm1073_vm2, %v2090_v21  ;;  %v1535_v28 = vmax.f32 %v1533_v3, %v1534_v12  ;;  %v1541_v29 = vrot.slane %v1540_v14, 2  ;;  %v1548_v30 = vrot.slane %v1547_v16, 2  ;;  %v1585_v33 = vrot.slane %v1584_v9, 1 }
 0x130   : > { %v1052_v37 = vmax.f32 %v1020_v27, 0.0  ;;  %v980_v41 = vmul.f32 %v8727_v54, %v8785_v2  ;;  %v983_v42 = vmul.f32 %v8788_v17, %v8727_v54  ;;  %v1555_v48 = vrot.slane %v1554_v32, 2 }
 0x131   : > { %v1536_v43 = vrot.slane %v1535_v28, 1  ;;  %v1542_v8 = vmax.f32 %v1540_v14, %v1541_v29  ;;  %v1549_v47 = vmax.f32 %v1547_v16, %v1548_v30  ;;  %v8866_v31 = vpop.f32.mrb[26].mxu0  ;;  %v982_v52 = vmul.f32 %v8727_v54, %v8790_v22 }
 0x132   : > { %v1090_v34 = vsel %vm1073_vm2, %v1052_v37, -inf  ;;  %v1019_v49 = vadd.f32 %v8732_v56, %v980_v41  ;;  %v8871_v51 = vadd.f32 %v8732_v56, %v983_v42  ;;  %v8875_v2 = vpop.f32.mrb[27].mxu0  ;;  %v1579_v53 = vmax.f32 %v1577_v35, %v1578_v26 }
 0x133   : > { %v1543_v17 = vrot.slane %v1542_v8, 1  ;;  %v1550_v55 = vrot.slane %v1549_v47, 1  ;;  %v1556_v57 = vmax.f32 %v1554_v32, %v1555_v48  ;;  %v1586_v39 = vmax.f32 %v1584_v9, %v1585_v33 }
 0x134   : > { %v1537_v58 = vmax.f32 %v1535_v28, %v1536_v43  ;;  %v1091_v62 = vmax.f32 %v1089_v10, %v1090_v34  ;;  %v1051_v63 = vmax.f32 %v1019_v49, 0.0  ;;  %v1054_v4 = vmax.f32 %v8871_v51, 0.0 }
 0x135   : > { %v1544_v1 = vmax.f32 %v1542_v8, %v1543_v17  ;;  %v1551_v3 = vmax.f32 %v1549_v47, %v1550_v55  ;;  %v1557_v45 = vrot.slane %v1556_v57, 1  ;;  %v8878_v6 = vpop.f32.mrb[28].mxu0  ;;  %v8883_v35 = vadd.f32 %v8732_v56, %v982_v52 }
 0x136   : > { %v1223_v7 = vcombine.high %v1091_v62, %v1091_v62  ;;  %v1230_v22 = vrot.slane %v1091_v62, %v8746_v15  ;;  %v1087_v12 = vsel %vm1073_vm2, %v1051_v63, -inf  ;;  %v8885_v14 = vpop.f32.mrb[29].mxu0  ;;  %v8890_v18 = vmul.f32 %v8794_v38, %v8727_v54 }
 0x137   : > { %v1558_v9 = vmax.f32 %v1556_v57, %v1557_v45  ;;  %v2024_v10 = vsel %vm2010_vm5, %v1544_v1, %v1537_v58  ;;  %v1088_v16 = vmax.f32 %v1086_v11, %v1087_v12 }
 0x138   : > { %v2025_v61 = vsel %vm2012_vm6, %v1551_v3, %v2024_v10  ;;  %v1237_v21 = vrot.slane %v1223_v7, %v8746_v15  ;;  %v1238_v26 = vcombine.high %v1230_v22, %v1230_v22  ;;  %v1615_v27 = vsel %vm1474_vm3, %v1230_v22, -inf }
 0x139   : > { %v2026_v28 = vsel %vm2014_vm7, %v1558_v9, %v2025_v61  ;;  %v1616_v29 = vrot.slane %v1615_v27, 4  ;;  %v1206_v30 = vcombine.high %v1088_v16, %v1088_v16  ;;  %v1213_v32 = vrot.slane %v1088_v16, %v8746_v15  ;;  %v8897_v33 = vpop.f32.mrb[30].mxu0 }
 0x13a   : > { %v2027_v11 = vsel %vm2016_vm8, %v1565_v24, %v2026_v28  ;;  %v1239_v37 = vcombine.high %v1237_v21, %v1237_v21  ;;  %v1622_v38 = vsel %vm1474_vm3, %v1238_v26, -inf  ;;  %v1629_v41 = vsel %vm1474_vm3, %v1237_v21, -inf  ;;  %v8902_v42 = vpop.f32.mrb[31].mxu0 }
 0x13b   : > { %v2028_v43 = vsel %vm2018_vm9, %v1572_v25, %v2027_v11  ;;  %v1617_v8 = vmax.f32 %v1615_v27, %v1616_v29  ;;  %v1623_v47 = vrot.slane %v1622_v38, 4  ;;  %v1630_v48 = vrot.slane %v1629_v41, 4 }
 0x13c   : > { %v2029_v34 = vsel %vm2020_vm10, %v1579_v53, %v2028_v43  ;;  %v1636_v49 = vsel %vm1474_vm3, %v1239_v37, -inf  ;;  %v1220_v51 = vrot.slane %v1206_v30, %v8746_v15  ;;  %v1221_v52 = vcombine.high %v1213_v32, %v1213_v32 }
 0x13d   : > { %v2030_v24 = vsel %vm2022_vm11, %v1586_v39, %v2029_v34  ;;  %v1618_v17 = vrot.slane %v1617_v8, 2  ;;  %v1624_v55 = vmax.f32 %v1622_v38, %v1623_v47  ;;  %v1631_v57 = vmax.f32 %v1629_v41, %v1630_v48 }
 0x13e   : > { %2082 = vst.msk [vmem:[#allocation2 + $0x21] sm:$0xff] %vm1073_vm2, %v2030_v24  ;;  %v1637_v58 = vrot.slane %v1636_v49, 4  ;;  %v1222_v62 = vcombine.high %v1220_v51, %v1220_v51  ;;  %v1587_v25 = vsel %vm1474_vm3, %v1213_v32, -inf  ;;  %v1594_v63 = vsel %vm1474_vm3, %v1221_v52, -inf }
 0x13f   : > { %v1619_v1 = vmax.f32 %v1617_v8, %v1618_v17  ;;  %v1625_v53 = vrot.slane %v1624_v55, 2  ;;  %v1632_v3 = vrot.slane %v1631_v57, 2  ;;  %v1588_v45 = vrot.slane %v1587_v25, 4 }
 0x140   : > { %v1638_v7 = vmax.f32 %v1636_v49, %v1637_v58  ;;  %v1595_v22 = vrot.slane %v1594_v63, 4  ;;  %v1601_v12 = vsel %vm1474_vm3, %v1220_v51, -inf  ;;  %v1608_v39 = vsel %vm1474_vm3, %v1222_v62, -inf }
 0x141   : > { %v1620_v9 = vrot.slane %v1619_v1, 1  ;;  %v1626_v10 = vmax.f32 %v1624_v55, %v1625_v53  ;;  %v1633_v16 = vmax.f32 %v1631_v57, %v1632_v3  ;;  %v1589_v61 = vmax.f32 %v1587_v25, %v1588_v45 }
 0x142   : > { %v1639_v21 = vrot.slane %v1638_v7, 2  ;;  %v1596_v26 = vmax.f32 %v1594_v63, %v1595_v22  ;;  %v1602_v27 = vrot.slane %v1601_v12, 4  ;;  %v1609_v28 = vrot.slane %v1608_v39, 4 }
 0x143   : > { %v1627_v29 = vrot.slane %v1626_v10, 1  ;;  %v1634_v30 = vrot.slane %v1633_v16, 1  ;;  %v1590_v32 = vrot.slane %v1589_v61, 2  ;;  %v1095_v11 = vsel %vm1073_vm2, %v1054_v4, -inf }
 0x144   : > { %v1597_v37 = vrot.slane %v1596_v26, 2  ;;  %v1603_v38 = vmax.f32 %v1601_v12, %v1602_v27  ;;  %v1610_v41 = vmax.f32 %v1608_v39, %v1609_v28  ;;  %v1053_v43 = vmax.f32 %v8883_v35, 0.0 }
 0x145   : > { %v1621_v8 = vmax.f32 %v1619_v1, %v1620_v9  ;;  %v1628_v47 = vmax.f32 %v1626_v10, %v1627_v29  ;;  %v1640_v48 = vmax.f32 %v1638_v7, %v1639_v21  ;;  %v1591_v34 = vmax.f32 %v1589_v61, %v1590_v32  ;;  %v2103_v49 = vld [vmem:[#allocation2 + $0x21] sm:$0xff] }
 0x146   : > { %v2091_v51 = vld [vmem:[#allocation2 + $0x20] sm:$0xff]  ;;  %v1635_v52 = vmax.f32 %v1633_v16, %v1634_v30  ;;  %v1598_v24 = vmax.f32 %v1596_v26, %v1597_v37  ;;  %v1604_v17 = vrot.slane %v1603_v38, 2  ;;  %v1611_v55 = vrot.slane %v1610_v41, 2  ;;  %6845 = vmatprep.mubr.msk.f32.mxu0 %vm1073_vm2, %v2103_v49 }
 0x147   : > { %6865 = vmatprep.mubr.msk.f32.mxu1 %vm1073_vm2, %v2091_v51  ;;  %v1592_v4 = vrot.slane %v1591_v34, 1  ;;  %v1024_v57 = vadd.f32 %v8732_v56, %v8890_v18  ;;  %v984_v35 = vmul.f32 %v8727_v54, %v8797_v46  ;;  %v987_v58 = vmul.f32 %v8806_v59, %v8727_v54 }
 0x148   : > { %v1599_v62 = vrot.slane %v1598_v24, 1  ;;  %v1605_v25 = vmax.f32 %v1603_v38, %v1604_v17  ;;  %v1612_v63 = vmax.f32 %v1610_v41, %v1611_v55  ;;  %v1092_v1 = vsel %vm1073_vm2, %v1053_v43, -inf }
 0x149   : > { %v1641_v53 = vrot.slane %v1640_v48, 1  ;;  %v1593_v3 = vmax.f32 %v1591_v34, %v1592_v4  ;;  %v1056_v45 = vmax.f32 %v1024_v57, 0.0  ;;  %v1023_v7 = vadd.f32 %v8732_v56, %v984_v35 }
 0x14a   : > { %v1600_v22 = vmax.f32 %v1598_v24, %v1599_v62  ;;  %v1606_v12 = vrot.slane %v1605_v25, 1  ;;  %v1613_v39 = vrot.slane %v1612_v63, 1  ;;  %v986_v18 = vmul.f32 %v8727_v54, %v8811_v0 }
 0x14b   : > { %v1096_v46 = vsel %vm1073_vm2, %v1056_v45, -inf  ;;  %v1055_v9 = vmax.f32 %v1023_v7, 0.0  ;;  %v8930_v59 = vadd.f32 %v8732_v56, %v987_v58  ;;  %v989_v10 = vmul.f32 %v8825_v13, %v8727_v54 }
 0x14c   : > { %v1607_v16 = vmax.f32 %v1605_v25, %v1606_v12  ;;  %v1614_v61 = vmax.f32 %v1612_v63, %v1613_v39  ;;  %v2031_v21 = vsel %vm2010_vm5, %v1600_v22, %v1593_v3  ;;  %v1097_v26 = vmax.f32 %v1095_v11, %v1096_v46 }
 0x14d   : > { %v1642_v27 = vmax.f32 %v1640_v48, %v1641_v53  ;;  %v1093_v28 = vsel %vm1073_vm2, %v1055_v9, -inf  ;;  %v8937_v29 = vadd.f32 %v8732_v56, %v986_v18  ;;  %v8940_v0 = vadd.f32 %v8732_v56, %v989_v10 }
 0x14e   : > { %v2032_v30 = vsel %vm2012_vm6, %v1607_v16, %v2031_v21  ;;  %v1257_v32 = vcombine.high %v1097_v26, %v1097_v26  ;;  %v1264_v37 = vrot.slane %v1097_v26, %v8746_v15  ;;  %v1094_v13 = vmax.f32 %v1092_v1, %v1093_v28 }
 0x14f   : > { %v2033_v38 = vsel %vm2014_vm7, %v1614_v61, %v2032_v30  ;;  %v1058_v41 = vmax.f32 %v8930_v59, 0.0  ;;  %v1057_v11 = vmax.f32 %v8937_v29, 0.0  ;;  %v1060_v43 = vmax.f32 %v8940_v0, 0.0 }
 0x150   : > { %v2034_v48 = vsel %vm2016_vm8, %v1621_v8, %v2033_v38  ;;  %v1271_v34 = vrot.slane %v1257_v32, %v8746_v15  ;;  %v1272_v49 = vcombine.high %v1264_v37, %v1264_v37  ;;  %v1671_v51 = vsel %vm1474_vm3, %v1264_v37, -inf }
 0x151   : > { %v2035_v24 = vsel %vm2018_vm9, %v1628_v47, %v2034_v48  ;;  %v1672_v17 = vrot.slane %v1671_v51, 4  ;;  %v1240_v55 = vcombine.high %v1094_v13, %v1094_v13  ;;  %v1247_v4 = vrot.slane %v1094_v13, %v8746_v15 }
 0x152   : > { %v2036_v57 = vsel %vm2020_vm10, %v1635_v52, %v2035_v24  ;;  %v1273_v35 = vcombine.high %v1271_v34, %v1271_v34  ;;  %v1678_v58 = vsel %vm1474_vm3, %v1272_v49, -inf  ;;  %v1685_v62 = vsel %vm1474_vm3, %v1271_v34, -inf }
 0x153   : > { %v2037_v8 = vsel %vm2022_vm11, %v1642_v27, %v2036_v57  ;;  %v1673_v25 = vmax.f32 %v1671_v51, %v1672_v17  ;;  %v1679_v63 = vrot.slane %v1678_v58, 4  ;;  %v1686_v1 = vrot.slane %v1685_v62, 4 }
 0x154   : > { %2083 = vst.msk [vmem:[#allocation2 + $0x31] sm:$0xff] %vm1073_vm2, %v2037_v8  ;;  %v1692_v47 = vsel %vm1474_vm3, %v1273_v35, -inf  ;;  %v1254_v53 = vrot.slane %v1240_v55, %v8746_v15  ;;  %v1255_v3 = vcombine.high %v1247_v4, %v1247_v4  ;;  %v1643_v45 = vsel %vm1474_vm3, %v1247_v4, -inf }
 0x155   : > { %v1674_v52 = vrot.slane %v1673_v25, 2  ;;  %v1680_v7 = vmax.f32 %v1678_v58, %v1679_v63  ;;  %v1687_v22 = vmax.f32 %v1685_v62, %v1686_v1  ;;  %v1693_v12 = vrot.slane %v1692_v47, 4 }
 0x156   : > { %v1256_v39 = vcombine.high %v1254_v53, %v1254_v53  ;;  %v1644_v18 = vrot.slane %v1643_v45, 4  ;;  %v1650_v46 = vsel %vm1474_vm3, %v1255_v3, -inf  ;;  %v1657_v9 = vsel %vm1474_vm3, %v1254_v53, -inf }
 0x157   : > { %v1675_v10 = vmax.f32 %v1673_v25, %v1674_v52  ;;  %v1681_v16 = vrot.slane %v1680_v7, 2  ;;  %v1688_v61 = vrot.slane %v1687_v22, 2  ;;  %v1694_v21 = vmax.f32 %v1692_v47, %v1693_v12 }
 0x158   : > { %v1645_v26 = vmax.f32 %v1643_v45, %v1644_v18  ;;  %v1651_v27 = vrot.slane %v1650_v46, 4  ;;  %v1658_v28 = vrot.slane %v1657_v9, 4  ;;  %v1664_v30 = vsel %vm1474_vm3, %v1256_v39, -inf }
 0x159   : > { %v1676_v32 = vrot.slane %v1675_v10, 1  ;;  %v1682_v37 = vmax.f32 %v1680_v7, %v1681_v16  ;;  %v1689_v13 = vmax.f32 %v1687_v22, %v1688_v61  ;;  %v1695_v38 = vrot.slane %v1694_v21, 2 }
 0x15a   : > { %v1646_v48 = vrot.slane %v1645_v26, 2  ;;  %v1652_v34 = vmax.f32 %v1650_v46, %v1651_v27  ;;  %v1659_v49 = vmax.f32 %v1657_v9, %v1658_v28  ;;  %v1665_v51 = vrot.slane %v1664_v30, 4 }
 0x15b   : > { %v1683_v24 = vrot.slane %v1682_v37, 1  ;;  %v1690_v17 = vrot.slane %v1689_v13, 1  ;;  %v1696_v55 = vmax.f32 %v1694_v21, %v1695_v38  ;;  %v988_v4 = vmul.f32 %v8727_v54, %v8829_v20  ;;  %v8966_v57 = vld [vmem:[#allocation2 + $0x31] sm:$0xff] }
 0x15c   : > { %v8968_v35 = vld [vmem:[#allocation2 + $0x30] sm:$0xff]  ;;  %v1647_v58 = vmax.f32 %v1645_v26, %v1646_v48  ;;  %v1653_v62 = vrot.slane %v1652_v34, 2  ;;  %v1660_v8 = vrot.slane %v1659_v49, 2  ;;  %v1666_v25 = vmax.f32 %v1664_v30, %v1665_v51  ;;  %6846 = vmatmul.mubr.msk.f32.gmra.mrb[34].mxu0 %vm1073_vm2, %v8966_v57 }
 0x15d   : > { %6866 = vmatmul.mubr.msk.f32.gmra.mrb[2].mxu1 %vm1073_vm2, %v8968_v35  ;;  %v1677_v63 = vmax.f32 %v1675_v10, %v1676_v32  ;;  %v1684_v1 = vmax.f32 %v1682_v37, %v1683_v24  ;;  %v1697_v47 = vrot.slane %v1696_v55, 1  ;;  %v1101_v20 = vsel %vm1073_vm2, %v1058_v41, -inf }
 0x15e   : > { %v1648_v53 = vrot.slane %v1647_v58, 1  ;;  %v1654_v3 = vmax.f32 %v1652_v34, %v1653_v62  ;;  %v1661_v45 = vmax.f32 %v1659_v49, %v1660_v8  ;;  %v1667_v52 = vrot.slane %v1666_v25, 2 }
 0x15f   : > { %v1691_v7 = vmax.f32 %v1689_v13, %v1690_v17  ;;  %v1102_v22 = vsel %vm1073_vm2, %v1060_v43, -inf  ;;  %v1027_v12 = vadd.f32 %v8732_v56, %v988_v4  ;;  %v991_v39 = vmul.f32 %v8838_v36, %v8727_v54 }
 0x160   : > { %v1655_v18 = vrot.slane %v1654_v3, 1  ;;  %v1662_v46 = vrot.slane %v1661_v45, 1  ;;  %v1668_v9 = vmax.f32 %v1666_v25, %v1667_v52  ;;  %v1098_v59 = vsel %vm1073_vm2, %v1057_v11, -inf }
 0x161   : > { %v1698_v41 = vmax.f32 %v1696_v55, %v1697_v47  ;;  %v1649_v10 = vmax.f32 %v1647_v58, %v1648_v53  ;;  %v1103_v16 = vmax.f32 %v1101_v20, %v1102_v22  ;;  %v1059_v61 = vmax.f32 %v1027_v12, 0.0 }
 0x162   : > { %v1656_v21 = vmax.f32 %v1654_v3, %v1655_v18  ;;  %v1663_v0 = vmax.f32 %v1661_v45, %v1662_v46  ;;  %v1669_v26 = vrot.slane %v1668_v9, 1  ;;  %v8987_v43 = vadd.f32 %v8732_v56, %v991_v39 }
 0x163   : > { %v1291_v27 = vcombine.high %v1103_v16, %v1103_v16  ;;  %v1298_v36 = vrot.slane %v1103_v16, %v8746_v15  ;;  %v1099_v28 = vsel %vm1073_vm2, %v1059_v61, -inf  ;;  %v990_v29 = vmul.f32 %v8727_v54, %v8841_v44 }
 0x164   : > { %v1670_v30 = vmax.f32 %v1668_v9, %v1669_v26  ;;  %v2038_v11 = vsel %vm2010_vm5, %v1656_v21, %v1649_v10  ;;  %v1100_v32 = vmax.f32 %v1098_v59, %v1099_v28  ;;  %v8996_v37 = vmul.f32 %v8847_v60, %v8727_v54 }
 0x165   : > { %v2039_v13 = vsel %vm2012_vm6, %v1663_v0, %v2038_v11  ;;  %v1305_v38 = vrot.slane %v1291_v27, %v8746_v15  ;;  %v1306_v48 = vcombine.high %v1298_v36, %v1298_v36  ;;  %v1727_v34 = vsel %vm1474_vm3, %v1298_v36, -inf }
 0x166   : > { %v2040_v49 = vsel %vm2014_vm7, %v1670_v30, %v2039_v13  ;;  %v1728_v51 = vrot.slane %v1727_v34, 4  ;;  %v1274_v24 = vcombine.high %v1100_v32, %v1100_v32  ;;  %v1281_v44 = vrot.slane %v1100_v32, %v8746_v15 }
 0x167   : > { %v2041_v17 = vsel %vm2016_vm8, %v1677_v63, %v2040_v49  ;;  %v1307_v55 = vcombine.high %v1305_v38, %v1305_v38  ;;  %v1734_v4 = vsel %vm1474_vm3, %v1306_v48, -inf  ;;  %v1741_v54 = vsel %vm1474_vm3, %v1305_v38, -inf }
 0x168   : > { %v2042_v60 = vsel %vm2018_vm9, %v1684_v1, %v2041_v17  ;;  %v1729_v58 = vmax.f32 %v1727_v34, %v1728_v51  ;;  %v1735_v62 = vrot.slane %v1734_v4, 4  ;;  %v1742_v8 = vrot.slane %v1741_v54, 4 }
 0x169   : > { %v2043_v25 = vsel %vm2020_vm10, %v1691_v7, %v2042_v60  ;;  %v1748_v47 = vsel %vm1474_vm3, %v1307_v55, -inf  ;;  %v1288_v20 = vrot.slane %v1274_v24, %v8746_v15  ;;  %v1289_v53 = vcombine.high %v1281_v44, %v1281_v44 }
 0x16a   : > { %v2044_v3 = vsel %vm2022_vm11, %v1698_v41, %v2043_v25  ;;  %v1730_v63 = vrot.slane %v1729_v58, 2  ;;  %v1736_v45 = vmax.f32 %v1734_v4, %v1735_v62  ;;  %v1743_v52 = vmax.f32 %v1741_v54, %v1742_v8 }
 0x16b   : > { %2084 = vst.msk [vmem:[#allocation2 + $0x41] sm:$0xff] %vm1073_vm2, %v2044_v3  ;;  %v1749_v22 = vrot.slane %v1748_v47, 4  ;;  %v1290_v12 = vcombine.high %v1288_v20, %v1288_v20  ;;  %v1699_v1 = vsel %vm1474_vm3, %v1281_v44, -inf  ;;  %v1706_v39 = vsel %vm1474_vm3, %v1289_v53, -inf }
 0x16c   : > { %v1731_v18 = vmax.f32 %v1729_v58, %v1730_v63  ;;  %v1737_v7 = vrot.slane %v1736_v45, 2  ;;  %v1744_v46 = vrot.slane %v1743_v52, 2  ;;  %v1700_v9 = vrot.slane %v1699_v1, 4 }
 0x16d   : > { %v1750_v59 = vmax.f32 %v1748_v47, %v1749_v22  ;;  %v1707_v10 = vrot.slane %v1706_v39, 4  ;;  %v1713_v16 = vsel %vm1474_vm3, %v1288_v20, -inf  ;;  %v1720_v41 = vsel %vm1474_vm3, %v1290_v12, -inf  ;;  %v9032_v47 = vld [vmem:[%s10935_s24] ss:$0 sm:$0xff] }
 0x16e   : > { %v1732_v61 = vrot.slane %v1731_v18, 1  ;;  %v1738_v21 = vmax.f32 %v1736_v45, %v1737_v7  ;;  %v1745_v0 = vmax.f32 %v1743_v52, %v1744_v46  ;;  %v1701_v26 = vmax.f32 %v1699_v1, %v1700_v9  ;;  %v9039_v1 = vld [vmem:[%s10936_s26] ss:$0 sm:$0xff] }
 0x16f   : > { %v1751_v27 = vrot.slane %v1750_v59, 2  ;;  %v1708_v36 = vmax.f32 %v1706_v39, %v1707_v10  ;;  %v1714_v28 = vrot.slane %v1713_v16, 4  ;;  %v1721_v30 = vrot.slane %v1720_v41, 4 }
 0x170   : > { %v1739_v11 = vrot.slane %v1738_v21, 1  ;;  %v1746_v32 = vrot.slane %v1745_v0, 1  ;;  %v1702_v13 = vrot.slane %v1701_v26, 2  ;;  %v1062_v38 = vmax.f32 %v8987_v43, 0.0 }
 0x171   : > { %v1752_v48 = vmax.f32 %v1750_v59, %v1751_v27  ;;  %v1709_v34 = vrot.slane %v1708_v36, 2  ;;  %v1715_v49 = vmax.f32 %v1713_v16, %v1714_v28  ;;  %v1722_v51 = vmax.f32 %v1720_v41, %v1721_v30 }
 0x172   : > { %v1733_v24 = vmax.f32 %v1731_v18, %v1732_v61  ;;  %v1740_v44 = vmax.f32 %v1738_v21, %v1739_v11  ;;  %v1703_v17 = vmax.f32 %v1701_v26, %v1702_v13  ;;  %v1029_v55 = vadd.f32 %v8732_v56, %v990_v29  ;;  %v9018_v4 = vld [vmem:[#allocation2 + $0x41] sm:$0xff] }
 0x173   : > { %v9020_v54 = vld [vmem:[#allocation2 + $0x40] sm:$0xff]  ;;  %v1747_v60 = vmax.f32 %v1745_v0, %v1746_v32  ;;  %v1710_v58 = vmax.f32 %v1708_v36, %v1709_v34  ;;  %v1716_v62 = vrot.slane %v1715_v49, 2  ;;  %v1723_v8 = vrot.slane %v1722_v51, 2  ;;  %6848 = vmatprep.mubr.msk.f32.mxu0 %vm1073_vm2, %v9018_v4 }
 0x174   : > { %6868 = vmatprep.mubr.msk.f32.mxu1 %vm1073_vm2, %v9020_v54  ;;  %v1704_v43 = vrot.slane %v1703_v17, 1  ;;  %v1107_v25 = vsel %vm1073_vm2, %v1062_v38, -inf  ;;  %v1032_v29 = vadd.f32 %v8732_v56, %v8996_v37  ;;  %v992_v20 = vmul.f32 %v9032_v47, %v8849_v40 }
 0x175   : > { %v1753_v53 = vrot.slane %v1752_v48, 1  ;;  %v1711_v3 = vrot.slane %v1710_v58, 1  ;;  %v1717_v63 = vmax.f32 %v1715_v49, %v1716_v62  ;;  %v1724_v45 = vmax.f32 %v1722_v51, %v1723_v8 }
 0x176   : > { %v1705_v52 = vmax.f32 %v1703_v17, %v1704_v43  ;;  %v1061_v22 = vmax.f32 %v1029_v55, 0.0  ;;  %v1064_v12 = vmax.f32 %v1032_v29, 0.0  ;;  %v1031_v56 = vadd.f32 %v9039_v1, %v992_v20 }
 0x177   : > { %v1712_v37 = vmax.f32 %v1710_v58, %v1711_v3  ;;  %v1718_v39 = vrot.slane %v1717_v63, 1  ;;  %v1725_v18 = vrot.slane %v1724_v45, 1  ;;  %v995_v40 = vmul.f32 %v9032_v47, %v8854_v23 }
 0x178   : > { %v1108_v7 = vsel %vm1073_vm2, %v1064_v12, -inf  ;;  %v1063_v46 = vmax.f32 %v1031_v56, 0.0  ;;  %v994_v9 = vmul.f32 %v9032_v47, %v8860_v19  ;;  %v997_v59 = vmul.f32 %v9032_v47, %v8866_v31 }
 0x179   : > { %v1719_v10 = vmax.f32 %v1717_v63, %v1718_v39  ;;  %v1726_v16 = vmax.f32 %v1724_v45, %v1725_v18  ;;  %v2045_v41 = vsel %vm2010_vm5, %v1712_v37, %v1705_v52  ;;  %v1109_v61 = vmax.f32 %v1107_v25, %v1108_v7 }
 0x17a   : > { %v1754_v21 = vmax.f32 %v1752_v48, %v1753_v53  ;;  %v1104_v0 = vsel %vm1073_vm2, %v1061_v22, -inf  ;;  %v1105_v26 = vsel %vm1073_vm2, %v1063_v46, -inf  ;;  %v9053_v23 = vadd.f32 %v9039_v1, %v995_v40 }
 0x17b   : > { %v2046_v27 = vsel %vm2012_vm6, %v1719_v10, %v2045_v41  ;;  %v1325_v36 = vcombine.high %v1109_v61, %v1109_v61  ;;  %v1332_v19 = vrot.slane %v1109_v61, %v8746_v15  ;;  %v1106_v28 = vmax.f32 %v1104_v0, %v1105_v26 }
 0x17c   : > { %v2047_v31 = vsel %vm2014_vm7, %v1726_v16, %v2046_v27  ;;  %v1066_v30 = vmax.f32 %v9053_v23, 0.0  ;;  %v9060_v11 = vadd.f32 %v9039_v1, %v994_v9  ;;  %v9063_v32 = vadd.f32 %v9039_v1, %v997_v59 }
 0x17d   : > { %v2048_v13 = vsel %vm2016_vm8, %v1733_v24, %v2047_v31  ;;  %v1339_v38 = vrot.slane %v1325_v36, %v8746_v15  ;;  %v1340_v48 = vcombine.high %v1332_v19, %v1332_v19  ;;  %v1783_v34 = vsel %vm1474_vm3, %v1332_v19, -inf }
 0x17e   : > { %v2049_v49 = vsel %vm2018_vm9, %v1740_v44, %v2048_v13  ;;  %v1784_v51 = vrot.slane %v1783_v34, 4  ;;  %v1308_v17 = vcombine.high %v1106_v28, %v1106_v28  ;;  %v1315_v55 = vrot.slane %v1106_v28, %v8746_v15 }
 0x17f   : > { %v2050_v58 = vsel %vm2020_vm10, %v1747_v60, %v2049_v49  ;;  %v1341_v62 = vcombine.high %v1339_v38, %v1339_v38  ;;  %v1790_v8 = vsel %vm1474_vm3, %v1340_v48, -inf  ;;  %v1797_v43 = vsel %vm1474_vm3, %v1339_v38, -inf }
 0x180   : > { %v2051_v24 = vsel %vm2022_vm11, %v1754_v21, %v2050_v58  ;;  %v1785_v25 = vmax.f32 %v1783_v34, %v1784_v51  ;;  %v1791_v29 = vrot.slane %v1790_v8, 4  ;;  %v1798_v20 = vrot.slane %v1797_v43, 4 }
 0x181   : > { %2085 = vst.msk [vmem:[#allocation2 + $0x51] sm:$0xff] %vm1073_vm2, %v2051_v24  ;;  %v1804_v44 = vsel %vm1474_vm3, %v1341_v62, -inf  ;;  %v1322_v53 = vrot.slane %v1308_v17, %v8746_v15  ;;  %v1323_v3 = vcombine.high %v1315_v55, %v1315_v55  ;;  %v1755_v63 = vsel %vm1474_vm3, %v1315_v55, -inf }
 0x182   : > { %v1786_v60 = vrot.slane %v1785_v25, 2  ;;  %v1792_v45 = vmax.f32 %v1790_v8, %v1791_v29  ;;  %v1799_v52 = vmax.f32 %v1797_v43, %v1798_v20  ;;  %v1805_v22 = vrot.slane %v1804_v44, 4 }
 0x183   : > { %v1324_v12 = vcombine.high %v1322_v53, %v1322_v53  ;;  %v1756_v56 = vrot.slane %v1755_v63, 4  ;;  %v1762_v37 = vsel %vm1474_vm3, %v1323_v3, -inf  ;;  %v1769_v39 = vsel %vm1474_vm3, %v1322_v53, -inf }
 0x184   : > { %v1787_v18 = vmax.f32 %v1785_v25, %v1786_v60  ;;  %v1793_v40 = vrot.slane %v1792_v45, 2  ;;  %v1800_v7 = vrot.slane %v1799_v52, 2  ;;  %v1806_v46 = vmax.f32 %v1804_v44, %v1805_v22 }
 0x185   : > { %v1757_v9 = vmax.f32 %v1755_v63, %v1756_v56  ;;  %v1763_v59 = vrot.slane %v1762_v37, 4  ;;  %v1770_v10 = vrot.slane %v1769_v39, 4  ;;  %v1776_v16 = vsel %vm1474_vm3, %v1324_v12, -inf }
 0x186   : > { %v1788_v41 = vrot.slane %v1787_v18, 1  ;;  %v1794_v61 = vmax.f32 %v1792_v45, %v1793_v40  ;;  %v1801_v21 = vmax.f32 %v1799_v52, %v1800_v7  ;;  %v1807_v0 = vrot.slane %v1806_v46, 2 }
 0x187   : > { %v1758_v26 = vrot.slane %v1757_v9, 2  ;;  %v1764_v27 = vmax.f32 %v1762_v37, %v1763_v59  ;;  %v1771_v36 = vmax.f32 %v1769_v39, %v1770_v10  ;;  %v1777_v19 = vrot.slane %v1776_v16, 4 }
 0x188   : > { %v1795_v28 = vrot.slane %v1794_v61, 1  ;;  %v1802_v31 = vrot.slane %v1801_v21, 1  ;;  %v1808_v13 = vmax.f32 %v1806_v46, %v1807_v0  ;;  %v1068_v38 = vmax.f32 %v9063_v32, 0.0  ;;  %v9082_v48 = vld [vmem:[#allocation2 + $0x51] sm:$0xff] }
 0x189   : > { %v9084_v34 = vld [vmem:[#allocation2 + $0x50] sm:$0xff]  ;;  %v1759_v49 = vmax.f32 %v1757_v9, %v1758_v26  ;;  %v1765_v51 = vrot.slane %v1764_v27, 2  ;;  %v1772_v17 = vrot.slane %v1771_v36, 2  ;;  %v1778_v55 = vmax.f32 %v1776_v16, %v1777_v19  ;;  %6849 = vmatmul.mubr.msk.f32.gmra.mrb[36].mxu0 %vm1073_vm2, %v9082_v48 }
 0x18a   : > { %6869 = vmatmul.mubr.msk.f32.gmra.mrb[4].mxu1 %vm1073_vm2, %v9084_v34  ;;  %v1789_v58 = vmax.f32 %v1787_v18, %v1788_v41  ;;  %v1809_v62 = vrot.slane %v1808_v13, 1  ;;  %v1065_v8 = vmax.f32 %v9060_v11, 0.0  ;;  %v1796_v29 = vmax.f32 %v1794_v61, %v1795_v28 }
 0x18b   : > { %v1760_v43 = vrot.slane %v1759_v49, 1  ;;  %v1766_v32 = vmax.f32 %v1764_v27, %v1765_v51  ;;  %v1773_v24 = vmax.f32 %v1771_v36, %v1772_v17  ;;  %v1779_v25 = vrot.slane %v1778_v55, 2 }
 0x18c   : > { %v1803_v20 = vmax.f32 %v1801_v21, %v1802_v31  ;;  %v1114_v44 = vsel %vm1073_vm2, %v1068_v38, -inf  ;;  %v996_v53 = vmul.f32 %v9032_v47, %v8875_v2  ;;  %v1113_v45 = vsel %vm1073_vm2, %v1066_v30, -inf }
 0x18d   : > { %v1767_v3 = vrot.slane %v1766_v32, 1  ;;  %v1774_v63 = vrot.slane %v1773_v24, 1  ;;  %v1780_v60 = vmax.f32 %v1778_v55, %v1779_v25  ;;  %v1810_v52 = vmax.f32 %v1808_v13, %v1809_v62 }
 0x18e   : > { %v1761_v11 = vmax.f32 %v1759_v49, %v1760_v43  ;;  %v1115_v22 = vmax.f32 %v1113_v45, %v1114_v44  ;;  %v1035_v12 = vadd.f32 %v9039_v1, %v996_v53  ;;  %v999_v18 = vmul.f32 %v9032_v47, %v8878_v6 }
 0x18f   : > { %v1768_v56 = vmax.f32 %v1766_v32, %v1767_v3  ;;  %v1775_v37 = vmax.f32 %v1773_v24, %v1774_v63  ;;  %v1781_v39 = vrot.slane %v1780_v60, 1  ;;  %v1110_v2 = vsel %vm1073_vm2, %v1065_v8, -inf }
 0x190   : > { %v1359_v40 = vcombine.high %v1115_v22, %v1115_v22  ;;  %v1366_v7 = vrot.slane %v1115_v22, %v8746_v15  ;;  %v1067_v46 = vmax.f32 %v1035_v12, 0.0  ;;  %v998_v9 = vmul.f32 %v9032_v47, %v8885_v14 }
 0x191   : > { %v1782_v23 = vmax.f32 %v1780_v60, %v1781_v39  ;;  %v2052_v30 = vsel %vm2010_vm5, %v1768_v56, %v1761_v11  ;;  %v1001_v59 = vmul.f32 %v9032_v47, %v8897_v33  ;;  %v1038_v26 = vadd.f32 %v9039_v1, %v999_v18 }
 0x192   : > { %v2053_v10 = vsel %vm2012_vm6, %v1775_v37, %v2052_v30  ;;  %v1373_v16 = vrot.slane %v1359_v40, %v8746_v15  ;;  %v1374_v6 = vcombine.high %v1366_v7, %v1366_v7  ;;  %v1839_v41 = vsel %vm1474_vm3, %v1366_v7, -inf }
 0x193   : > { %v2054_v61 = vsel %vm2014_vm7, %v1782_v23, %v2053_v10  ;;  %v1840_v21 = vrot.slane %v1839_v41, 4  ;;  %v1111_v0 = vsel %vm1073_vm2, %v1067_v46, -inf  ;;  %v1037_v17 = vadd.f32 %v9039_v1, %v998_v9 }
 0x194   : > { %v2055_v27 = vsel %vm2016_vm8, %v1789_v58, %v2054_v61  ;;  %v1375_v14 = vcombine.high %v1373_v16, %v1373_v16  ;;  %v1846_v36 = vsel %vm1474_vm3, %v1374_v6, -inf  ;;  %v1853_v33 = vsel %vm1474_vm3, %v1373_v16, -inf }
 0x195   : > { %v2056_v19 = vsel %vm2018_vm9, %v1796_v29, %v2055_v27  ;;  %v1841_v28 = vmax.f32 %v1839_v41, %v1840_v21  ;;  %v1847_v31 = vrot.slane %v1846_v36, 4  ;;  %v1854_v13 = vrot.slane %v1853_v33, 4 }
 0x196   : > { %v2057_v38 = vsel %vm2020_vm10, %v1803_v20, %v2056_v19  ;;  %v1860_v49 = vsel %vm1474_vm3, %v1375_v14, -inf  ;;  %v1112_v51 = vmax.f32 %v1110_v2, %v1111_v0  ;;  %v1040_v25 = vadd.f32 %v9039_v1, %v1001_v59  ;;  %v2379_v14 = vld [vmem:[%s10933_s4 + $0x40] sm:$0xff] }
 0x197   : > { %v2058_v55 = vsel %vm2022_vm11, %v1810_v52, %v2057_v38  ;;  %v1842_v58 = vrot.slane %v1841_v28, 2  ;;  %v1848_v62 = vmax.f32 %v1846_v36, %v1847_v31  ;;  %v1855_v8 = vmax.f32 %v1853_v33, %v1854_v13  ;;  %v2380_v36 = vld [vmem:[%s10933_s4 + $0x48] sm:$0xff] }
 0x198   : > { %2086 = vst.msk [vmem:[#allocation2 + $0x61] sm:$0xff] %vm1073_vm2, %v2058_v55  ;;  %v1861_v43 = vrot.slane %v1860_v49, 4  ;;  %v1342_v32 = vcombine.high %v1112_v51, %v1112_v51  ;;  %v1349_v24 = vrot.slane %v1112_v51, %v8746_v15  ;;  %v1070_v53 = vmax.f32 %v1038_v26, 0.0  ;;  %v2382_v55 = vld [vmem:[%s10933_s4 + $0x58] sm:$0xff] }
 0x199   : > { %v1843_v29 = vmax.f32 %v1841_v28, %v1842_v58  ;;  %v1849_v20 = vrot.slane %v1848_v62, 2  ;;  %v1856_v44 = vrot.slane %v1855_v8, 2  ;;  %v1072_v7 = vmax.f32 %v1040_v25, 0.0  ;;  %v2528_v25 = vld [vmem:[%s10933_s4 + $0x60] sm:$0xff] }
 0x19a   : > { %v1862_v3 = vmax.f32 %v1860_v49, %v1861_v43  ;;  %v1356_v63 = vrot.slane %v1342_v32, %v8746_v15  ;;  %v1357_v60 = vcombine.high %v1349_v24, %v1349_v24  ;;  %v1811_v45 = vsel %vm1474_vm3, %v1349_v24, -inf }
 0x19b   : > { %v1844_v52 = vrot.slane %v1843_v29, 1  ;;  %v9126_v11 = vmax.f32 %v1848_v62, %v1849_v20  ;;  %v9128_v22 = vmax.f32 %v1855_v8, %v1856_v44  ;;  %v1812_v12 = vrot.slane %v1811_v45, 4 }
 0x19c   : > { %v1863_v56 = vrot.slane %v1862_v3, 2  ;;  %v1358_v37 = vcombine.high %v1356_v63, %v1356_v63  ;;  %v1818_v39 = vsel %vm1474_vm3, %v1357_v60, -inf  ;;  %v1825_v18 = vsel %vm1474_vm3, %v1356_v63, -inf }
 0x19d   : > { %v1813_v2 = vmax.f32 %v1811_v45, %v1812_v12  ;;  %v1119_v40 = vsel %vm1073_vm2, %v1070_v53, -inf  ;;  %v1819_v46 = vrot.slane %v1818_v39, 4  ;;  %v1826_v23 = vrot.slane %v1825_v18, 4 }
 0x19e   : > { %v1832_v30 = vsel %vm1474_vm3, %v1358_v37, -inf  ;;  %v1069_v9 = vmax.f32 %v1037_v17, 0.0  ;;  %v9134_v59 = vmax.f32 %v1843_v29, %v1844_v52  ;;  %v1851_v10 = vrot.slane %v9126_v11, 1  ;;  %v2381_v17 = vld [vmem:[%s10933_s4 + $0x50] sm:$0xff]  ;;  %v2529_v29 = vld [vmem:[%s10933_s4 + $0x68] sm:$0xff] }
 0x19f   : > { %v1814_v16 = vrot.slane %v1813_v2, 2  ;;  %v1833_v6 = vrot.slane %v1832_v30, 4  ;;  %v9137_v41 = vld [vmem:[#allocation2 + $0x61] sm:$0xff]  ;;  %v1858_v21 = vrot.slane %v9128_v22, 1  ;;  %v9142_v0 = vmax.f32 %v1862_v3, %v1863_v56 }
 0x1a0   : > { %v9139_v61 = vld [vmem:[#allocation2 + $0x60] sm:$0xff]  ;;  %v1820_v26 = vmax.f32 %v1818_v39, %v1819_v46  ;;  %v1827_v27 = vmax.f32 %v1825_v18, %v1826_v23  ;;  %6851 = vmatprep.mubr.msk.f32.mxu0 %vm1073_vm2, %v9137_v41  ;;  %v1120_v28 = vsel %vm1073_vm2, %v1072_v7, -inf  ;;  %v1000_v31 = vmul.f32 %v9032_v47, %v8902_v42 }
 0x1a1   : > { %6871 = vmatprep.mubr.msk.f32.mxu1 %vm1073_vm2, %v9139_v61  ;;  %v1815_v33 = vmax.f32 %v1813_v2, %v1814_v16  ;;  %v1834_v19 = vmax.f32 %v1832_v30, %v1833_v6  ;;  %v1116_v49 = vsel %vm1073_vm2, %v1069_v9, -inf  ;;  %v1121_v51 = vmax.f32 %v1119_v40, %v1120_v28 }
 0x1a2   : > { %v1821_v13 = vrot.slane %v1820_v26, 2  ;;  %v1828_v38 = vrot.slane %v1827_v27, 2  ;;  %v1039_v8 = vadd.f32 %v9039_v1, %v1000_v31  ;;  %v7559_v43 = vpack.c.bf16 %v2380_v36, %v2379_v14 }
 0x1a3   : > { %v1816_v58 = vrot.slane %v1815_v33, 1  ;;  %v1835_v62 = vrot.slane %v1834_v19, 2  ;;  %v1393_v47 = vcombine.high %v1121_v51, %v1121_v51  ;;  %v1400_v24 = vrot.slane %v1121_v51, %v8746_v15 }
 0x1a4   : > { %v1822_v32 = vmax.f32 %v1820_v26, %v1821_v13  ;;  %v1829_v42 = vmax.f32 %v1827_v27, %v1828_v38  ;;  %v1071_v53 = vmax.f32 %v1039_v8, 0.0  ;;  %7560 = vmatprep.subr.bf16.mxu1 %v7559_v43  ;;  %v7563_v3 = vpack.c.bf16 %v2382_v55, %v2381_v17 }
 0x1a5   : > { %v1817_v20 = vmax.f32 %v1815_v33, %v1816_v58  ;;  %v1836_v44 = vmax.f32 %v1834_v19, %v1835_v62  ;;  %v1407_v60 = vrot.slane %v1393_v47, %v8746_v15  ;;  %v1408_v45 = vcombine.high %v1400_v24, %v1400_v24  ;;  %7562 = vmatpush3.bf16.msra.mxu1 %v7559_v43 }
 0x1a6   : > { %v1823_v1 = vrot.slane %v1822_v32, 1  ;;  %v1830_v63 = vrot.slane %v1829_v42, 1  ;;  %v1895_v12 = vsel %vm1474_vm3, %v1400_v24, -inf  ;;  %v1117_v56 = vsel %vm1073_vm2, %v1071_v53, -inf  ;;  %7564 = vmatprep.subr.bf16.mxu1 %v7563_v3 }
 0x1a7   : > { %v1837_v52 = vrot.slane %v1836_v44, 1  ;;  %v9175_v37 = vpack.c.bf16 %v2529_v29, %v2528_v25  ;;  %v1409_v2 = vcombine.high %v1407_v60, %v1407_v60  ;;  %v1896_v40 = vrot.slane %v1895_v12, 4 }
 0x1a8   : > { %v1824_v39 = vmax.f32 %v1822_v32, %v1823_v1  ;;  %v1831_v18 = vmax.f32 %v1829_v42, %v1830_v63  ;;  %v1902_v46 = vsel %vm1474_vm3, %v1408_v45, -inf  ;;  %v1909_v23 = vsel %vm1474_vm3, %v1407_v60, -inf }
 0x1a9   : > { %v1838_v7 = vmax.f32 %v1836_v44, %v1837_v52  ;;  %v1118_v30 = vmax.f32 %v1116_v49, %v1117_v56  ;;  %v1865_v9 = vrot.slane %v9142_v0, 1  ;;  %v1903_v6 = vrot.slane %v1902_v46, 4  ;;  %7566 = vmatpush3.bf16.msra.mxu1 %v7563_v3 }
 0x1aa   : > { %v2059_v16 = vsel %vm2010_vm5, %v1824_v39, %v1817_v20  ;;  %v1910_v26 = vrot.slane %v1909_v23, 4  ;;  %v1916_v14 = vsel %vm1474_vm3, %v1409_v2, -inf  ;;  %7568 = vmatprep.subr.bf16.mxu1 %v9175_v37  ;;  %v1852_v19 = vmax.f32 %v9126_v11, %v1851_v10 }
 0x1ab   : > { %v2060_v27 = vsel %vm2012_vm6, %v1831_v18, %v2059_v16  ;;  %v1376_v36 = vcombine.high %v1118_v30, %v1118_v30  ;;  %v1383_v33 = vrot.slane %v1118_v30, %v8746_v15  ;;  %v1859_v28 = vmax.f32 %v9128_v22, %v1858_v21 }
 0x1ac   : > { %v2061_v31 = vsel %vm2014_vm7, %v1838_v7, %v2060_v27  ;;  %v1897_v13 = vmax.f32 %v1895_v12, %v1896_v40  ;;  %v1917_v49 = vrot.slane %v1916_v14, 4  ;;  %v1866_v55 = vmax.f32 %v9142_v0, %v1865_v9  ;;  %v2371_v40 = vld [vmem:[#allocation2 + $0x2] sm:$0xff]  ;;  %v2530_v7 = vld [vmem:[%s10933_s4 + $0x70] sm:$0xff] }
 0x1ad   : > { %v2062_v38 = vsel %vm2016_vm8, %v9134_v59, %v2061_v31  ;;  %v1390_v51 = vrot.slane %v1376_v36, %v8746_v15  ;;  %v1391_v17 = vcombine.high %v1383_v33, %v1383_v33  ;;  %v1904_v62 = vmax.f32 %v1902_v46, %v1903_v6  ;;  %v2531_v6 = vld [vmem:[%s10933_s4 + $0x78] sm:$0xff] }
 0x1ae   : > { %v2063_v58 = vsel %vm2018_vm9, %v1852_v19, %v2062_v38  ;;  %v1911_v11 = vmax.f32 %v1909_v23, %v1910_v26  ;;  %v1867_v22 = vsel %vm1474_vm3, %v1383_v33, -inf  ;;  %v1918_v43 = vmax.f32 %v1916_v14, %v1917_v49 }
 0x1af   : > { %v2064_v8 = vsel %vm2020_vm10, %v1859_v28, %v2063_v58  ;;  %v1392_v10 = vcombine.high %v1390_v51, %v1390_v51  ;;  %v1898_v59 = vrot.slane %v1897_v13, 2  ;;  %v1868_v32 = vrot.slane %v1867_v22, 4  ;;  %v2677_v58 = vld [vmem:[%s10933_s4 + $0x80] sm:$0xff] }
 0x1b0   : > { %v2065_v21 = vsel %vm2022_vm11, %v1866_v55, %v2064_v8  ;;  %v1874_v42 = vsel %vm1474_vm3, %v1391_v17, -inf  ;;  %v1881_v0 = vsel %vm1474_vm3, %v1390_v51, -inf  ;;  %v1905_v47 = vrot.slane %v1904_v62, 2  ;;  %v9217_v55 = vld [vmem:[#allocation2 + $0x12] sm:$0xff] }
 0x1b1   : > { %2087 = vst.msk [vmem:[#allocation2 + $0x71] sm:$0xff] %vm1073_vm2, %v2065_v21  ;;  %v1875_v24 = vrot.slane %v1874_v42, 4  ;;  %v1912_v25 = vrot.slane %v1911_v11, 2  ;;  %v1869_v29 = vmax.f32 %v1867_v22, %v1868_v32  ;;  %v1882_v20 = vrot.slane %v1881_v0, 4 }
 0x1b2   : > { %v1888_v44 = vsel %vm1474_vm3, %v1392_v10, -inf  ;;  %v1919_v53 = vrot.slane %v1918_v43, 2  ;;  %v1899_v63 = vmax.f32 %v1897_v13, %v1898_v59  ;;  %v1906_v52 = vmax.f32 %v1904_v62, %v1905_v47  ;;  %v2678_v62 = vld [vmem:[%s10933_s4 + $0x88] sm:$0xff] }
 0x1b3   : > { %v1876_v3 = vmax.f32 %v1874_v42, %v1875_v24  ;;  %v1889_v1 = vrot.slane %v1888_v44, 4  ;;  %v1870_v60 = vrot.slane %v1869_v29, 2  ;;  %v1883_v45 = vmax.f32 %v1881_v0, %v1882_v20  ;;  %v9227_v10 = vld [vmem:[#allocation2 + $0x22] sm:$0xff]  ;;  %v9235_v24 = vld [vmem:[#allocation2 + $0x32] sm:$0xff] }
 0x1b4   : > { %v1913_v39 = vmax.f32 %v1911_v11, %v1912_v25  ;;  %v1920_v46 = vmax.f32 %v1918_v43, %v1919_v53  ;;  %v1900_v26 = vrot.slane %v1899_v63, 1  ;;  %v1907_v36 = vrot.slane %v1906_v52, 1  ;;  %v9247_v53 = vld [vmem:[#allocation2 + $0x52] sm:$0xff] }
 0x1b5   : > { %v1877_v12 = vrot.slane %v1876_v3, 2  ;;  %v1890_v56 = vmax.f32 %v1888_v44, %v1889_v1  ;;  %v1871_v18 = vmax.f32 %v1869_v29, %v1870_v60  ;;  %v1884_v2 = vrot.slane %v1883_v45, 2  ;;  %v9240_v29 = vld [vmem:[#allocation2 + $0x42] sm:$0xff]  ;;  %v2680_v60 = vld [vmem:[%s10933_s4 + $0x98] sm:$0xff] }
 0x1b6   : > { %v1914_v28 = vrot.slane %v1913_v39, 1  ;;  %v7571_v38 = vpack.c.bf16 %v2531_v6, %v2530_v7  ;;  %v1921_v49 = vrot.slane %v1920_v46, 1  ;;  %v1901_v8 = vmax.f32 %v1899_v63, %v1900_v26  ;;  %v2679_v63 = vld [vmem:[%s10933_s4 + $0x90] sm:$0xff]  ;;  %v2829_v7 = vld [vmem:[%s10933_s4 + $0xb8] sm:$0xff]  ;;  %v2977_v6 = vld [vmem:[%s10933_s4 + $0xc8] sm:$0xff] }
 0x1b7   : > { %v1878_v23 = vmax.f32 %v1876_v3, %v1877_v12  ;;  %v1891_v30 = vrot.slane %v1890_v56, 2  ;;  %v1872_v27 = vrot.slane %v1871_v18, 1  ;;  %v1885_v14 = vmax.f32 %v1883_v45, %v1884_v2  ;;  %v9252_v3 = vld [vmem:[#allocation2 + $0x62] sm:$0xff]  ;;  %v8332_v45 = vld [vmem:[#allocation2 + $0x10] sm:$0xff] }
 0x1b8   : > { %v9205_v9 = vld [vmem:[#allocation2 + $0x71] sm:$0xff]  ;;  %v1908_v22 = vmax.f32 %v1906_v52, %v1907_v36  ;;  %v1915_v59 = vmax.f32 %v1913_v39, %v1914_v28  ;;  %v7575_v42 = vpack.c.bf16 %v2678_v62, %v2677_v58  ;;  %v1922_v0 = vmax.f32 %v1920_v46, %v1921_v49  ;;  %v2826_v12 = vld [vmem:[%s10933_s4 + $0xa0] sm:$0xff]  ;;  %v3126_v28 = vld [vmem:[%s10933_s4 + $0xe8] sm:$0xff] }
 0x1b9   : > { %v9207_v16 = vld [vmem:[#allocation2 + $0x70] sm:$0xff]  ;;  %6852 = vmatmul.mubr.msk.f32.gmra.mrb[38].mxu0 %vm1073_vm2, %v9205_v9  ;;  %v1879_v33 = vrot.slane %v1878_v23, 1  ;;  %v1892_v19 = vmax.f32 %v1890_v56, %v1891_v30  ;;  %v1873_v31 = vmax.f32 %v1871_v18, %v1872_v27  ;;  %v1886_v13 = vrot.slane %v1885_v14, 1  ;;  %v2827_v56 = vld [vmem:[%s10933_s4 + $0xa8] sm:$0xff]  ;;  %v8333_v39 = vld [vmem:[#allocation2 + $0x20] sm:$0xff] }
 0x1ba   : > { %6872 = vmatmul.mubr.msk.f32.gmra.mrb[6].mxu1 %vm1073_vm2, %v9207_v16  ;;  %v9256_v1 = vld [vmem:[#allocation2 + $0x72] sm:$0xff]  ;;  %v7579_v52 = vpack.c.bf16 %v2680_v60, %v2679_v63  ;;  %v7583_v18 = vpack.c.bf16 %v2827_v56, %v2826_v12  ;;  %v2976_v30 = vld [vmem:[%s10933_s4 + $0xc0] sm:$0xff]  ;;  %vm4660_vm3 = vcmask 1041408  }
 0x1bb   : > { %6882 = vmatprep.mubr.msk.f32.mxu1 %vm1073_vm2, %v2371_v40  ;;  %v1880_v51 = vmax.f32 %v1878_v23, %v1879_v33  ;;  %v1893_v17 = vrot.slane %v1892_v19, 1  ;;  %v1887_v11 = vmax.f32 %v1885_v14, %v1886_v13  ;;  %v2828_v40 = vld [vmem:[%s10933_s4 + $0xb0] sm:$0xff]  ;;  %v8335_v26 = vld [vmem:[#allocation2 + $0x21] sm:$0xff]  ;;  %v7591_v27 = vpack.c.bf16 %v2977_v6, %v2976_v30  ;;  %v2979_v36 = vld [vmem:[%s10933_s4 + $0xd8] sm:$0xff] }
 0x1bc   : > { %v8334_v46 = vld [vmem:[#allocation2 + $0x11] sm:$0xff]  ;;  %v7587_v23 = vpack.c.bf16 %v2829_v7, %v2828_v40  ;;  %v9450_v60 = vld [vmem:[%s10937_s5] ss:$0 sm:$0xff]  ;;  %s6140_s5 = sshll.u32 %s594_s28, 4  ;;  %s10849_s5 = int_to_ptr.vmem [resolvable:$true] %s6140_s5 }
 0x1bd   : > { %v1894_v21 = vmax.f32 %v1892_v19, %v1893_v17  ;;  %v2066_v43 = vsel %vm2010_vm5, %v1880_v51, %v1873_v31  ;;  %v3125_v19 = vld [vmem:[%s10933_s4 + $0xe0] sm:$0xff]  ;;  %v3128_v49 = vld [vmem:[%s10933_s4 + $0xf8] sm:$0xff]  ;;  %s8346_s0 = scalar_lea.vmem %s10849_s5, 16 }
 0x1be   : > { %6883 = vmatmul.mubr.msk.f32.vlgmr.msra.gmra.mrb[0].mxu1 %vm1073_vm2, %v9217_v55  ;;  %v2067_v32 = vsel %vm2012_vm6, %v1887_v11, %v2066_v43  ;;  %v7599_v31 = vpack.c.bf16 %v3126_v28, %v3125_v19  ;;  %v3274_v17 = vld [vmem:[%s10933_s4 + $0x100] sm:$0xff]  ;;  %v8336_v11 = vld [vmem:[#allocation2 + $0x31] sm:$0xff]  ;;  %p8347_p11 = scmp.ne.s32.totalorder %s10849_s5, %s8346_s0 }
 0x1bf   : > { %7570 = vmatpush3.bf16.msra.mxu1 %v9175_v37  ;;  %6885 = vmatprep.mubr.msk.f32.mxu1 %vm1073_vm2, %v9227_v10  ;;  %v2068_v47 = vsel %vm2014_vm7, %v1894_v21, %v2067_v32  ;;  %v3734_v43 = vld [vmem:[%s10896_s7 + $0x40] sm:$0xff] }
 0x1c0   : > { %7572 = vmatprep.subr.bf16.mxu1 %v7571_v38  ;;  %v2069_v25 = vsel %vm2016_vm8, %v1901_v8, %v2068_v47  ;;  %v9456_v12 = vld [vmem:[%s10938_s6] ss:$0 sm:$0xff]  ;;  %p8348_p12 = pnand %p8347_p11, %p8554_p5 }
 0x1c1   : > { %v2070_v37 = vsel %vm2018_vm9, %v1908_v22, %v2069_v25  ;;  %v3739_v25 = vld [vmem:[%s10896_s7 + $0x68] sm:$0xff] }
 0x1c2   : > { %6886 = vmatmul.mubr.msk.f32.gmra.mrb[2].mxu1 %vm1073_vm2, %v9235_v24  ;;  %v2071_v20 = vsel %vm2020_vm10, %v1915_v59, %v2070_v37  ;;  %v3735_v59 = vld [vmem:[%s10896_s7 + $0x48] sm:$0xff]  ;;  %v3740_v37 = vld [vmem:[%s10896_s7 + $0x70] sm:$0xff]  ;;  %p8349_p13 = pneg %p8348_p12 }
 0x1c3   : > { %6888 = vmatprep.mubr.msk.f32.mxu1 %vm1073_vm2, %v9240_v29  ;;  %7574 = vmatpush3.bf16.msra.mxu1 %v7571_v38  ;;  %v2072_v44 = vsel %vm2022_vm11, %v1922_v0, %v2071_v20  ;;  %v3127_v38 = vld [vmem:[%s10933_s4 + $0xf0] sm:$0xff]  ;;  %v7615_v32 = vpack.c.bf16 %v3735_v59, %v3734_v43  ;;  %v3737_v0 = vld [vmem:[%s10896_s7 + $0x58] sm:$0xff] }
 0x1c4   : > { %7576 = vmatprep.subr.bf16.mxu1 %v7575_v42  ;;  %2088 = vst.msk [vmem:[#allocation2 + $0x81] sm:$0xff] %vm1073_vm2, %v2072_v44  ;;  %v7603_v51 = vpack.c.bf16 %v3128_v49, %v3127_v38  ;;  %v3741_v20 = vld [vmem:[%s10896_s7 + $0x78] sm:$0xff] }
 0x1c5   : > { %7616 = vmatprep.subr.bf16.mxu0 %v7615_v32  ;;  %v7627_v44 = vpack.c.bf16 %v3741_v20, %v3740_v37 }
 0x1c6   : > { %6889 = vmatmul.mubr.msk.f32.gmra.mrb[4].mxu1 %vm1073_vm2, %v9247_v53  ;;  %7618 = vmatpush3.bf16.msra.mxu0 %v7615_v32 }
 0x1c7   : > { %6891 = vmatprep.mubr.msk.f32.mxu1 %vm1073_vm2, %v9252_v3 }
 0x1ca   : > { %6892 = vmatmul.mubr.msk.f32.gmra.mrb[6].mxu1 %vm1073_vm2, %v9256_v1 }
 0x1cb   : > { %6902 = vmatprep.mubr.msk.f32.mxu1 %vm1073_vm2, %v8332_v45  ;;  %v2527_v2 = vld [vmem:[#allocation2 + $0x80] sm:$0xff] }
 0x1cc   : > { %v2676_v14 = vld [vmem:[#allocation2 + $0x81] sm:$0xff] }
 0x1cd   : > { %v2825_v13 = vld [vmem:[#allocation2 + $0x82] sm:$0xff] }
 0x1ce   : > { %6903 = vmatmul.mubr.msk.f32.vlgmr.msra.gmra.mrb[0].mxu1 %vm1073_vm2, %v8333_v39 }
 0x1cf   : > { %7578 = vmatpush3.bf16.msra.mxu1 %v7575_v42  ;;  %6905 = vmatprep.mubr.msk.f32.mxu1 %vm1073_vm2, %v8968_v35  ;;  %v3736_v42 = vld [vmem:[%s10896_s7 + $0x50] sm:$0xff] }
 0x1d0   : > { %7580 = vmatprep.subr.bf16.mxu1 %v7579_v52  ;;  %v7619_v47 = vpack.c.bf16 %v3737_v0, %v3736_v42 }
 0x1d2   : > { %6906 = vmatmul.mubr.msk.f32.gmra.mrb[2].mxu1 %vm1073_vm2, %v9020_v54  ;;  %7620 = vmatprep.subr.bf16.mxu0 %v7619_v47 }
 0x1d3   : > { %6908 = vmatprep.mubr.msk.f32.mxu1 %vm1073_vm2, %v9084_v34  ;;  %7582 = vmatpush3.bf16.msra.mxu1 %v7579_v52 }
 0x1d4   : > { %7584 = vmatprep.subr.bf16.mxu1 %v7583_v18  ;;  %7622 = vmatpush3.bf16.msra.mxu0 %v7619_v47 }
 0x1d6   : > { %6909 = vmatmul.mubr.msk.f32.gmra.mrb[4].mxu1 %vm1073_vm2, %v9139_v61 }
 0x1d7   : > { %6911 = vmatprep.mubr.msk.f32.mxu1 %vm1073_vm2, %v9207_v16 }
 0x1da   : > { %6912 = vmatmul.mubr.msk.f32.gmra.mrb[6].mxu1 %vm1073_vm2, %v2527_v2 }
 0x1db   : > { %6922 = vmatprep.mubr.msk.f32.mxu1 %vm1073_vm2, %v8334_v46 }
 0x1de   : > { %6923 = vmatmul.mubr.msk.f32.vlgmr.msra.gmra.mrb[0].mxu1 %vm1073_vm2, %v8335_v26 }
 0x1df   : > { %7586 = vmatpush3.bf16.msra.mxu1 %v7583_v18  ;;  %6925 = vmatprep.mubr.msk.f32.mxu1 %vm1073_vm2, %v8966_v57  ;;  %v2978_v57 = vld [vmem:[%s10933_s4 + $0xd0] sm:$0xff] }
 0x1e0   : > { %7588 = vmatprep.subr.bf16.mxu1 %v7587_v23  ;;  %v7595_v33 = vpack.c.bf16 %v2979_v36, %v2978_v57 }
 0x1e2   : > { %6926 = vmatmul.mubr.msk.f32.gmra.mrb[2].mxu1 %vm1073_vm2, %v9018_v4 }
 0x1e3   : > { %6928 = vmatprep.mubr.msk.f32.mxu1 %vm1073_vm2, %v9082_v48  ;;  %7590 = vmatpush3.bf16.msra.mxu1 %v7587_v23 }
 0x1e4   : > { %7592 = vmatprep.subr.bf16.mxu1 %v7591_v27 }
 0x1e6   : > { %6929 = vmatmul.mubr.msk.f32.gmra.mrb[4].mxu1 %vm1073_vm2, %v9137_v41 }
 0x1e7   : > { %6931 = vmatprep.mubr.msk.f32.mxu1 %vm1073_vm2, %v9205_v9 }
 0x1ea   : > { %6932 = vmatmul.mubr.msk.f32.gmra.mrb[6].mxu1 %vm1073_vm2, %v2676_v14 }
 0x1eb   : > { %6942 = vmatprep.mubr.msk.f32.mxu1 %vm1073_vm2, %v9217_v55  ;;  %v3275_v55 = vld [vmem:[%s10933_s4 + $0x108] sm:$0xff] }
 0x1ec   : > { %v7607_v58 = vpack.c.bf16 %v3275_v55, %v3274_v17 }
 0x1ee   : > { %6943 = vmatmul.mubr.msk.f32.vlgmr.msra.gmra.mrb[0].mxu1 %vm1073_vm2, %v9227_v10 }
 0x1ef   : > { %7594 = vmatpush3.bf16.msra.mxu1 %v7591_v27  ;;  %6945 = vmatprep.mubr.msk.f32.mxu1 %vm1073_vm2, %v9235_v24 }
 0x1f0   : > { %7596 = vmatprep.subr.bf16.mxu1 %v7595_v33 }
 0x1f2   : > { %6946 = vmatmul.mubr.msk.f32.gmra.mrb[2].mxu1 %vm1073_vm2, %v9240_v29 }
 0x1f3   : > { %6948 = vmatprep.mubr.msk.f32.mxu1 %vm1073_vm2, %v9247_v53  ;;  %7598 = vmatpush3.bf16.msra.mxu1 %v7595_v33 }
 0x1f4   : > { %7600 = vmatprep.subr.bf16.mxu1 %v7599_v31 }
 0x1f6   : > { %6949 = vmatmul.mubr.msk.f32.gmra.mrb[4].mxu1 %vm1073_vm2, %v9252_v3 }
 0x1f7   : > { %6951 = vmatprep.mubr.msk.f32.mxu1 %vm1073_vm2, %v9256_v1 }
 0x1fa   : > { %6952 = vmatmul.mubr.msk.f32.gmra.mrb[6].mxu1 %vm1073_vm2, %v2825_v13 }
 0x1fb   : > { %6962 = vmatprep.mubr.msk.f32.mxu1 %vm1073_vm2, %v8333_v39 }
 0x1fe   : > { %6963 = vmatmul.mubr.msk.f32.vlgmr.msra.gmra.mrb[0].mxu1 %vm1073_vm2, %v8968_v35  ;;  %v2975_v35 = vld [vmem:[#allocation2 + $0x90] sm:$0xff] }
 0x1ff   : > { %7602 = vmatpush3.bf16.msra.mxu1 %v7599_v31  ;;  %6965 = vmatprep.mubr.msk.f32.mxu1 %vm1073_vm2, %v9020_v54  ;;  %v3276_v54 = vld [vmem:[%s10933_s4 + $0x110] sm:$0xff] }
 0x200   : > { %7604 = vmatprep.subr.bf16.mxu1 %v7603_v51 }
 0x201   : > { %v9356_v62 = vpop.f32.mrb[32].mxu0 }
 0x202   : > { %6966 = vmatmul.mubr.msk.f32.gmra.mrb[2].mxu1 %vm1073_vm2, %v9084_v34  ;;  %v9360_v8 = vpop.f32.mrb[33].mxu0  ;;  %v3277_v34 = vld [vmem:[%s10933_s4 + $0x118] sm:$0xff]  ;;  %s6332_s4 = sshll.u32 %s8537_s1, 4  ;;  %s8415_s1 = smov [#allocation5]  }
 0x203   : > { %6968 = vmatprep.mubr.msk.f32.mxu1 %vm1073_vm2, %v9139_v61  ;;  %7606 = vmatpush3.bf16.msra.mxu1 %v7603_v51  ;;  %v7611_v61 = vpack.c.bf16 %v3277_v34, %v3276_v54  ;;  %s10847_s23 = scalar_lea.hbm %s10908_s19, %s6332_s4  ;;  %s8350_s2 = sshll.u32 %s8415_s1, 4  ;;  %s8351_s2 = int_to_ptr.vmem [resolvable:$false] %s8350_s2 }
 0x204   : > { %7608 = vmatprep.subr.bf16.mxu1 %v7607_v58  ;;  %s8352_s27 = scalar_lea.vmem %s8351_s2, 32  ;;  %p8353_p0 = scmp.lt.s32.totalorder %s10849_s5, %s8351_s2 }
 0x205   : > { %p8354_p1 = scmp.lt.s32.totalorder %s8352_s27, %s8346_s0 }
 0x206   : > { %6969 = vmatmul.mubr.msk.f32.gmra.mrb[4].mxu1 %vm1073_vm2, %v9207_v16  ;;  %v3124_v16 = vld [vmem:[#allocation2 + $0x91] sm:$0xff] }
 0x207   : > { %6971 = vmatprep.mubr.msk.f32.mxu1 %vm1073_vm2, %v2527_v2  ;;  %p8355_p2 = por %p8354_p1, %p8353_p0 }
 0x209   : > { %p8356_p3 = pnand %p8355_p2, %p8349_p13 }
 0x20a   : > { %6972 = vmatmul.mubr.msk.f32.gmra.mrb[6].mxu1 %vm1073_vm2, %v2975_v35 }
 0x20b   : > { %6982 = vmatprep.mubr.msk.f32.mxu1 %vm1073_vm2, %v8335_v26 }
 0x20e   : > { %6983 = vmatmul.mubr.msk.f32.vlgmr.msra.gmra.mrb[0].mxu1 %vm1073_vm2, %v8336_v11 }
 0x20f   : > { %7610 = vmatpush3.bf16.msra.mxu1 %v7607_v58  ;;  %6985 = vmatprep.mubr.msk.f32.mxu1 %vm1073_vm2, %v9018_v4  ;;  %v3273_v4 = vld [vmem:[#allocation2 + $0x92] sm:$0xff] }
 0x210   : > { %7612 = vmatprep.subr.bf16.mxu1 %v7611_v61 }
 0x212   : > { %6986 = vmatmul.mubr.msk.f32.gmra.mrb[2].mxu1 %vm1073_vm2, %v9082_v48 }
 0x213   : > { %6988 = vmatprep.mubr.msk.f32.mxu1 %vm1073_vm2, %v9137_v41  ;;  %7614 = vmatpush3.bf16.msra.mxu1 %v7611_v61 }
 0x216   : > { %6989 = vmatmul.mubr.msk.f32.gmra.mrb[4].mxu1 %vm1073_vm2, %v9205_v9 }
 0x217   : > { %6991 = vmatprep.mubr.msk.f32.mxu1 %vm1073_vm2, %v2676_v14 }
 0x21a   : > { %6992 = vmatmul.mubr.msk.f32.gmra.mrb[6].mxu1 %vm1073_vm2, %v3124_v16 }
 0x21b   : > { %7002 = vmatprep.mubr.msk.f32.mxu1 %vm1073_vm2, %v9227_v10 }
 0x21e   : > { %7003 = vmatmul.mubr.msk.f32.vlgmr.msra.gmra.mrb[0].mxu1 %vm1073_vm2, %v9235_v24  ;;  %v3738_v24 = vld [vmem:[%s10896_s7 + $0x60] sm:$0xff] }
 0x21f   : > { %7005 = vmatprep.mubr.msk.f32.mxu1 %vm1073_vm2, %v9240_v29  ;;  %v7623_v29 = vpack.c.bf16 %v3739_v25, %v3738_v24 }
 0x221   : > { %7624 = vmatprep.subr.bf16.mxu0 %v7623_v29 }
 0x222   : > { %7006 = vmatmul.mubr.msk.f32.gmra.mrb[2].mxu1 %vm1073_vm2, %v9247_v53  ;;  %7626 = vmatpush3.bf16.msra.mxu0 %v7623_v29  ;;  %v3722_v53 = vld [vmem:[%s10896_s7] sm:$0xff] }
 0x223   : > { %7008 = vmatprep.mubr.msk.f32.mxu1 %vm1073_vm2, %v9252_v3  ;;  %7628 = vmatprep.subr.bf16.mxu0 %v7627_v44  ;;  %v3723_v3 = vld [vmem:[%s10896_s7 + $0x8] sm:$0xff] }
 0x226   : > { %7009 = vmatmul.mubr.msk.f32.gmra.mrb[4].mxu1 %vm1073_vm2, %v9256_v1  ;;  %7630 = vmatpush3.bf16.msra.mxu0 %v7627_v44  ;;  %v9444_v1 = vpack.c.bf16 %v3723_v3, %v3722_v53 }
 0x227   : > { %7011 = vmatprep.mubr.msk.f32.mxu1 %vm1073_vm2, %v2825_v13 }
 0x228   : > { %7632 = vmatprep.subr.bf16.mxu0 %v9444_v1 }
 0x22a   : > { %7012 = vmatmul.mubr.msk.f32.gmra.mrb[6].mxu1 %vm1073_vm2, %v3273_v4  ;;  %vm8413_vm2 = vmmov 0  }
 0x22b   : > { %7217 = vmatprep.mubr.msk.f32.mxu1 %vm8413_vm2, %v8410_v50 }
 0x22f   : > { %v6847_v48 = vpop.f32.mrb[34].mxu0 }
 0x230   : > { %v2213_v41 = vpop.f32.mrb[35].mxu0 }
 0x25c   : > { %v6850_v9 = vpop.f32.mrb[36].mxu0 }
 0x25d   : > { %v9398_v10 = vpop.f32.mrb[37].mxu0 }
 0x28c   : > { %v9400_v22 = vpop.f32.mrb[38].mxu0 }
 0x28d   : > { %v9402_v21 = vpop.f32.mrb[39].mxu0 }
 0x2f1   : > { %v7004_v63 = vpop.f32.mrb[0].mxu1 }
 0x2f2   : > { %v8159_v45 = vadd.f32 %v7004_v63, %v9356_v62  ;;  %v3368_v52 = vpop.f32.mrb[1].mxu1 }
 0x2f3   : > { %v8160_v56 = vadd.f32 %v3368_v52, %v9360_v8 }
 0x2f4   : > { %v3423_v39 = vmul.f32 %v8159_v45, %v9450_v60 }
 0x2f5   : > { %v3422_v18 = vmul.f32 %v8160_v56, %v9450_v60  ;;  %v7007_v2 = vpop.f32.mrb[2].mxu1 }
 0x2f6   : > { %v3438_v40 = vadd.f32 %v9456_v12, %v3423_v39  ;;  %v8161_v7 = vadd.f32 %v7007_v2, %v6847_v48  ;;  %v3378_v46 = vpop.f32.mrb[3].mxu1 }
 0x2f7   : > { %v3437_v23 = vadd.f32 %v9456_v12, %v3422_v18  ;;  %v8162_v30 = vadd.f32 %v3378_v46, %v2213_v41 }
 0x2f8   : > { %v3446_v6 = vmax.f32 %v3438_v40, 0.0  ;;  %v3425_v26 = vmul.f32 %v8161_v7, %v9450_v60 }
 0x2f9   : > { %v3445_v27 = vmax.f32 %v3437_v23, 0.0  ;;  %v3424_v14 = vmul.f32 %v8162_v30, %v9450_v60  ;;  %v7010_v57 = vpop.f32.mrb[4].mxu1 }
 0x2fa   : > { %v3455_v36 = vsel %vm3453_vm14, %v3446_v6, -inf  ;;  %v3440_v33 = vadd.f32 %v9456_v12, %v3425_v26  ;;  %v8163_v19 = vadd.f32 %v7010_v57, %v6850_v9  ;;  %v3388_v28 = vpop.f32.mrb[5].mxu1 }
 0x2fb   : > { %v3454_v31 = vsel %vm3453_vm14, %v3445_v27, -inf  ;;  %v3439_v13 = vadd.f32 %v9456_v12, %v3424_v14  ;;  %v8164_v38 = vadd.f32 %v3388_v28, %v9398_v10 }
 0x2fc   : > { %v3456_v49 = vmax.f32 %v3454_v31, %v3455_v36  ;;  %v3448_v51 = vmax.f32 %v3440_v33, 0.0  ;;  %v3427_v17 = vmul.f32 %v8163_v19, %v9450_v60 }
 0x2fd   : > { %v3447_v55 = vmax.f32 %v3439_v13, 0.0  ;;  %v3426_v58 = vmul.f32 %v8164_v38, %v9450_v60  ;;  %v7013_v62 = vpop.f32.mrb[6].mxu1 }
 0x2fe   : > { %v3470_v8 = vcombine.high %v3456_v49, %v3456_v49  ;;  %v3477_v35 = vrot.slane %v3456_v49, %v8746_v15  ;;  %v3458_v54 = vsel %vm3453_vm14, %v3448_v51, -inf  ;;  %v3442_v34 = vadd.f32 %v9456_v12, %v3427_v17  ;;  %v3398_v61 = vpop.f32.mrb[7].mxu1 }
 0x2ff   : > { %v3457_v11 = vsel %vm3453_vm14, %v3447_v55, -inf  ;;  %v3441_v16 = vadd.f32 %v9456_v12, %v3426_v58  ;;  %v8165_v4 = vadd.f32 %v7013_v62, %v9400_v22  ;;  %v9479_v48 = vadd.f32 %v3398_v61, %v9402_v21 }
 0x300   : > { %v3484_v41 = vrot.slane %v3470_v8, %v8746_v15  ;;  %v3485_v9 = vcombine.high %v3477_v35, %v3477_v35  ;;  %v3555_v10 = vsel %vm3554_vm15, %v3477_v35, -inf  ;;  %v3459_v43 = vmax.f32 %v3457_v11, %v3458_v54 }
 0x301   : > { %v3556_v59 = vrot.slane %v3555_v10, 4  ;;  %v3450_v32 = vmax.f32 %v3442_v34, 0.0  ;;  %v3449_v42 = vmax.f32 %v3441_v16, 0.0  ;;  %v9484_v0 = vmul.f32 %v8165_v4, %v9450_v60 }
 0x302   : > { %v3486_v47 = vcombine.high %v3484_v41, %v3484_v41  ;;  %v3562_v24 = vsel %vm3554_vm15, %v3485_v9, -inf  ;;  %v3569_v22 = vsel %vm3554_vm15, %v3484_v41, -inf  ;;  %v3487_v25 = vcombine.high %v3459_v43, %v3459_v43 }
 0x303   : > { %v3557_v21 = vmax.f32 %v3555_v10, %v3556_v59  ;;  %v3563_v29 = vrot.slane %v3562_v24, 4  ;;  %v3570_v37 = vrot.slane %v3569_v22, 4  ;;  %v3494_v20 = vrot.slane %v3459_v43, %v8746_v15 }
 0x304   : > { %v3576_v44 = vsel %vm3554_vm15, %v3486_v47, -inf  ;;  %v3501_v53 = vrot.slane %v3487_v25, %v8746_v15  ;;  %v3461_v3 = vsel %vm3453_vm14, %v3450_v32, -inf  ;;  %v3460_v63 = vsel %vm3453_vm14, %v3449_v42, -inf }
 0x305   : > { %v3558_v45 = vrot.slane %v3557_v21, 2  ;;  %v3564_v52 = vmax.f32 %v3562_v24, %v3563_v29  ;;  %v3571_v56 = vmax.f32 %v3569_v22, %v3570_v37  ;;  %v3577_v39 = vrot.slane %v3576_v44, 4 }
 0x306   : > { %v3502_v18 = vcombine.high %v3494_v20, %v3494_v20  ;;  %v3503_v2 = vcombine.high %v3501_v53, %v3501_v53  ;;  %v3583_v40 = vsel %vm3554_vm15, %v3494_v20, -inf  ;;  %v3597_v7 = vsel %vm3554_vm15, %v3501_v53, -inf }
 0x307   : > { %v3559_v46 = vmax.f32 %v3557_v21, %v3558_v45  ;;  %v3565_v23 = vrot.slane %v3564_v52, 2  ;;  %v3572_v30 = vrot.slane %v3571_v56, 2  ;;  %v3578_v6 = vmax.f32 %v3576_v44, %v3577_v39 }
 0x308   : > { %v3584_v26 = vrot.slane %v3583_v40, 4  ;;  %v3590_v27 = vsel %vm3554_vm15, %v3502_v18, -inf  ;;  %v3598_v14 = vrot.slane %v3597_v7, 4  ;;  %v3604_v57 = vsel %vm3554_vm15, %v3503_v2, -inf }
 0x309   : > { %v3560_v36 = vrot.slane %v3559_v46, 1  ;;  %v3566_v33 = vmax.f32 %v3564_v52, %v3565_v23  ;;  %v3573_v19 = vmax.f32 %v3571_v56, %v3572_v30  ;;  %v3579_v28 = vrot.slane %v3578_v6, 2 }
 0x30a   : > { %v3585_v31 = vmax.f32 %v3583_v40, %v3584_v26  ;;  %v3591_v13 = vrot.slane %v3590_v27, 4  ;;  %v3599_v38 = vmax.f32 %v3597_v7, %v3598_v14  ;;  %v3605_v49 = vrot.slane %v3604_v57, 4 }
 0x30b   : > { %v3561_v51 = vmax.f32 %v3559_v46, %v3560_v36  ;;  %v3567_v17 = vrot.slane %v3566_v33, 1  ;;  %v3574_v55 = vrot.slane %v3573_v19, 1  ;;  %v3580_v58 = vmax.f32 %v3578_v6, %v3579_v28 }
 0x30c   : > { %v3586_v62 = vrot.slane %v3585_v31, 2  ;;  %v3592_v8 = vmax.f32 %v3590_v27, %v3591_v13  ;;  %v3600_v35 = vrot.slane %v3599_v38, 2  ;;  %v3606_v54 = vmax.f32 %v3604_v57, %v3605_v49 }
 0x30d   : > { %v3568_v34 = vmax.f32 %v3566_v33, %v3567_v17  ;;  %v3575_v61 = vmax.f32 %v3573_v19, %v3574_v55  ;;  %v3581_v11 = vrot.slane %v3580_v58, 1  ;;  %v3462_v16 = vmax.f32 %v3460_v63, %v3461_v3 }
 0x30e   : > { %v3587_v4 = vmax.f32 %v3585_v31, %v3586_v62  ;;  %v3593_v41 = vrot.slane %v3592_v8, 2  ;;  %v3601_v9 = vmax.f32 %v3599_v38, %v3600_v35  ;;  %v3607_v10 = vrot.slane %v3606_v54, 2 }
 0x30f   : > { %v3582_v43 = vmax.f32 %v3580_v58, %v3581_v11  ;;  %v3697_v59 = vsel %vm2010_vm5, %v3568_v34, %v3561_v51  ;;  %v3504_v32 = vcombine.high %v3462_v16, %v3462_v16  ;;  %v3511_v42 = vrot.slane %v3462_v16, %v8746_v15 }
 0x310   : > { %v3698_v47 = vsel %vm2012_vm6, %v3575_v61, %v3697_v59  ;;  %v3588_v24 = vrot.slane %v3587_v4, 1  ;;  %v3594_v22 = vmax.f32 %v3592_v8, %v3593_v41  ;;  %v3602_v25 = vrot.slane %v3601_v9, 1 }
 0x311   : > { %v3699_v21 = vsel %vm2014_vm7, %v3582_v43, %v3698_v47  ;;  %v3608_v29 = vmax.f32 %v3606_v54, %v3607_v10  ;;  %v3518_v37 = vrot.slane %v3504_v32, %v8746_v15  ;;  %v3519_v20 = vcombine.high %v3511_v42, %v3511_v42 }
 0x312   : > { %3714 = vst.msk [vmem:[#allocation3 + $0x9] sm:$0xf] %vm3713_vm0, %v3699_v21  ;;  %v3589_v44 = vmax.f32 %v3587_v4, %v3588_v24  ;;  %v3595_v53 = vrot.slane %v3594_v22, 1  ;;  %v3603_v3 = vmax.f32 %v3601_v9, %v3602_v25  ;;  %v3611_v63 = vsel %vm3554_vm15, %v3511_v42, -inf }
 0x313   : > { %v3609_v45 = vrot.slane %v3608_v29, 1  ;;  %v3520_v52 = vcombine.high %v3518_v37, %v3518_v37  ;;  %v3612_v56 = vrot.slane %v3611_v63, 4  ;;  %v3618_v39 = vsel %vm3554_vm15, %v3519_v20, -inf }
 0x314   : > { %v3596_v18 = vmax.f32 %v3594_v22, %v3595_v53  ;;  %v3619_v2 = vrot.slane %v3618_v39, 4  ;;  %v3625_v40 = vsel %vm3554_vm15, %v3518_v37, -inf  ;;  %v3444_v7 = vadd.f32 %v9456_v12, %v9484_v0 }
 0x315   : > { %v3610_v46 = vmax.f32 %v3608_v29, %v3609_v45  ;;  %v3613_v23 = vmax.f32 %v3611_v63, %v3612_v56  ;;  %v3626_v30 = vrot.slane %v3625_v40, 4  ;;  %v3632_v6 = vsel %vm3554_vm15, %v3520_v52, -inf }
 0x316   : > { %v3700_v26 = vsel %vm2010_vm5, %v3596_v18, %v3589_v44  ;;  %v3620_v27 = vmax.f32 %v3618_v39, %v3619_v2  ;;  %v3633_v14 = vrot.slane %v3632_v6, 4  ;;  %v3452_v57 = vmax.f32 %v3444_v7, 0.0  ;;  %v3724_v39 = vld [vmem:[%s10896_s7 + $0x10] sm:$0xff]  ;;  %v3725_v18 = vld [vmem:[%s10896_s7 + $0x18] sm:$0xff] }
 0x317   : > { %v3701_v36 = vsel %vm2012_vm6, %v3603_v3, %v3700_v26  ;;  %v3614_v33 = vrot.slane %v3613_v23, 2  ;;  %v3627_v19 = vmax.f32 %v3625_v40, %v3626_v30  ;;  %v3428_v28 = vmul.f32 %v9479_v48, %v9450_v60  ;;  %v3727_v30 = vld [vmem:[%s10896_s7 + $0x28] sm:$0xff] }
 0x318   : > { %v3702_v31 = vsel %vm2014_vm7, %v3610_v46, %v3701_v36  ;;  %v3621_v0 = vrot.slane %v3620_v27, 2  ;;  %v3634_v13 = vmax.f32 %v3632_v6, %v3633_v14  ;;  %v3464_v35 = vsel %vm3453_vm14, %v3452_v57, -inf }
 0x319   : > { %3715 = vst.msk [vmem:[#allocation3 + $0x11] sm:$0xf] %vm3713_vm0, %v3702_v31  ;;  %v3615_v38 = vmax.f32 %v3613_v23, %v3614_v33  ;;  %v3628_v49 = vrot.slane %v3627_v19, 2  ;;  %v3443_v51 = vadd.f32 %v9456_v12, %v3428_v28  ;;  %v8303_v17 = vld [vmem:[#allocation3 + $0x1] ss:$8 sps:$4 sm:$0xff]   ;;  %v7635_v26 = vpack.c.bf16 %v3725_v18, %v3724_v39  ;;  %v4116_v39 = vld [vmem:[%s10896_s7 + $0x110] sm:$0xff] }
 0x31a   : > { %v3622_v55 = vmax.f32 %v3620_v27, %v3621_v0  ;;  %v3635_v58 = vrot.slane %v3634_v13, 2  ;;  %7030 = vmatprep.mubr.msk.f32.mxu0 %vm3453_vm14, %v8303_v17  ;;  %v3726_v23 = vld [vmem:[%s10896_s7 + $0x20] sm:$0xff]  ;;  %v3728_v17 = vld [vmem:[%s10896_s7 + $0x30] sm:$0xff]  ;;  %v4117_v18 = vld [vmem:[%s10896_s7 + $0x118] sm:$0xff] }
 0x31b   : > { %v3616_v62 = vrot.slane %v3615_v38, 1  ;;  %v3629_v8 = vmax.f32 %v3627_v19, %v3628_v49  ;;  %v3451_v54 = vmax.f32 %v3443_v51, 0.0  ;;  %v8305_v33 = vld [vmem:[#allocation3] ss:$8 sps:$4 sm:$0xff]   ;;  %v7639_v0 = vpack.c.bf16 %v3727_v30, %v3726_v23 }
 0x31c   : > { %v3623_v60 = vrot.slane %v3622_v55, 1  ;;  %v3636_v48 = vmax.f32 %v3634_v13, %v3635_v58  ;;  %v4119_v23 = vld [vmem:[%s10896_s7 + $0x128] sm:$0xff] }
 0x31d   : > { %v3630_v34 = vrot.slane %v3629_v8, 1  ;;  %v3463_v61 = vsel %vm3453_vm14, %v3451_v54, -inf  ;;  %v3617_v11 = vmax.f32 %v3615_v38, %v3616_v62  ;;  %v3916_v54 = vld [vmem:[%s10896_s7 + $0x80] sm:$0xff] }
 0x31e   : > { %v3624_v16 = vmax.f32 %v3622_v55, %v3623_v60  ;;  %v3637_v4 = vrot.slane %v3636_v48, 1  ;;  %v3465_v41 = vmax.f32 %v3463_v61, %v3464_v35  ;;  %v3729_v55 = vld [vmem:[%s10896_s7 + $0x38] sm:$0xff]  ;;  %v3917_v60 = vld [vmem:[%s10896_s7 + $0x88] sm:$0xff] }
 0x31f   : > { %v3631_v12 = vmax.f32 %v3629_v8, %v3630_v34  ;;  %v7643_v8 = vpack.c.bf16 %v3729_v55, %v3728_v17  ;;  %v3918_v34 = vld [vmem:[%s10896_s7 + $0x90] sm:$0xff]  ;;  %v3919_v61 = vld [vmem:[%s10896_s7 + $0x98] sm:$0xff] }
 0x320   : > { %v3638_v9 = vmax.f32 %v3636_v48, %v3637_v4  ;;  %v3703_v10 = vsel %vm2010_vm5, %v3624_v16, %v3617_v11  ;;  %v3521_v43 = vcombine.high %v3465_v41, %v3465_v41  ;;  %v3528_v59 = vrot.slane %v3465_v41, %v8746_v15  ;;  %v3920_v4 = vld [vmem:[%s10896_s7 + $0xa0] sm:$0xff]  ;;  %v3921_v41 = vld [vmem:[%s10896_s7 + $0xa8] sm:$0xff]  ;;  %v4220_v17 = vld [vmem:[%s10896_s7 + $0x178] sm:$0xff] }
 0x321   : > { %v3704_v32 = vsel %vm2012_vm6, %v3631_v12, %v3703_v10  ;;  %v7647_v48 = vpack.c.bf16 %v3917_v60, %v3916_v54  ;;  %v7651_v16 = vpack.c.bf16 %v3919_v61, %v3918_v34  ;;  %v8307_v12 = vld [vmem:[#allocation3 + $0x2] ss:$8 sps:$4 sm:$0xff]   ;;  %v3922_v10 = vld [vmem:[%s10896_s7 + $0xb0] sm:$0xff] }
 0x322   : > { %v3705_v42 = vsel %vm2014_vm7, %v3638_v9, %v3704_v32  ;;  %v3535_v47 = vrot.slane %v3521_v43, %v8746_v15  ;;  %v3536_v24 = vcombine.high %v3528_v59, %v3528_v59  ;;  %v3639_v22 = vsel %vm3554_vm15, %v3528_v59, -inf  ;;  %v3923_v43 = vld [vmem:[%s10896_s7 + $0xb8] sm:$0xff]  ;;  %v4015_v32 = vld [vmem:[%s10896_s7 + $0xc0] sm:$0xff]  ;;  %v4318_v61 = vld [vmem:[%s10896_s7 + $0x1a8] sm:$0xff] }
 0x323   : > { %3716 = vst.msk [vmem:[#allocation3 + $0x19] sm:$0xf] %vm3713_vm0, %v3705_v42  ;;  %v3640_v25 = vrot.slane %v3639_v22, 4  ;;  %v7655_v9 = vpack.c.bf16 %v3921_v41, %v3920_v4  ;;  %v7659_v59 = vpack.c.bf16 %v3923_v43, %v3922_v10  ;;  %v4016_v42 = vld [vmem:[%s10896_s7 + $0xc8] sm:$0xff]  ;;  %v4317_v34 = vld [vmem:[%s10896_s7 + $0x1a0] sm:$0xff]  ;;  %v4320_v4 = vld [vmem:[%s10896_s7 + $0x1b8] sm:$0xff] }
 0x324   : > { %v3537_v21 = vcombine.high %v3535_v47, %v3535_v47  ;;  %v3646_v29 = vsel %vm3554_vm15, %v3536_v24, -inf  ;;  %v3653_v37 = vsel %vm3554_vm15, %v3535_v47, -inf  ;;  %v7663_v47 = vpack.c.bf16 %v4016_v42, %v4015_v32  ;;  %v4017_v24 = vld [vmem:[%s10896_s7 + $0xd0] sm:$0xff] }
 0x325   : > { %v3641_v20 = vmax.f32 %v3639_v22, %v3640_v25  ;;  %v3647_v44 = vrot.slane %v3646_v29, 4  ;;  %v3654_v53 = vrot.slane %v3653_v37, 4  ;;  %v4018_v22 = vld [vmem:[%s10896_s7 + $0xd8] sm:$0xff]  ;;  %v4414_v43 = vld [vmem:[%s10896_s7 + $0x1d0] sm:$0xff] }
 0x326   : > { %v3660_v3 = vsel %vm3554_vm15, %v3537_v21, -inf  ;;  %v7667_v21 = vpack.c.bf16 %v4018_v22, %v4017_v24  ;;  %v4416_v24 = vld [vmem:[%s10896_s7 + $0x1e0] sm:$0xff]  ;;  %v4417_v22 = vld [vmem:[%s10896_s7 + $0x1e8] sm:$0xff] }
 0x327   : > { %v3642_v63 = vrot.slane %v3641_v20, 2  ;;  %v3648_v45 = vmax.f32 %v3646_v29, %v3647_v44  ;;  %v3655_v52 = vmax.f32 %v3653_v37, %v3654_v53  ;;  %v3661_v56 = vrot.slane %v3660_v3, 4  ;;  %v8309_v29 = vld [vmem:[#allocation3 + $0x8] ss:$8 sps:$4 sm:$0xff]   ;;  %v4019_v37 = vld [vmem:[%s10896_s7 + $0xe0] sm:$0xff] }
 0x328   : > { %v4021_v53 = vld [vmem:[%s10896_s7 + $0xf0] sm:$0xff] }
 0x329   : > { %v3643_v2 = vmax.f32 %v3641_v20, %v3642_v63  ;;  %v3649_v40 = vrot.slane %v3648_v45, 2  ;;  %v3656_v7 = vrot.slane %v3655_v52, 2  ;;  %v3662_v46 = vmax.f32 %v3660_v3, %v3661_v56  ;;  %v4020_v20 = vld [vmem:[%s10896_s7 + $0xe8] sm:$0xff]  ;;  %v4022_v3 = vld [vmem:[%s10896_s7 + $0xf8] sm:$0xff] }
 0x32a   : > { %v8304_v6 = vld [vmem:[#allocation3 + $0x11] ss:$8 sps:$4 sm:$0xff]   ;;  %v7671_v44 = vpack.c.bf16 %v4020_v20, %v4019_v37  ;;  %v7675_v63 = vpack.c.bf16 %v4022_v3, %v4021_v53  ;;  %v4511_v20 = vld [vmem:[%s10896_s7 + $0x200] sm:$0xff] }
 0x32b   : > { %v3644_v27 = vrot.slane %v3643_v2, 1  ;;  %v3650_v14 = vmax.f32 %v3648_v45, %v3649_v40  ;;  %v3657_v57 = vmax.f32 %v3655_v52, %v3656_v7  ;;  %v3663_v36 = vrot.slane %v3662_v46, 2  ;;  %7031 = vmatmul.mubr.msk.f32.vlgmr.msra.gmra.mrb[40].mxu0 %vm3453_vm14, %v8304_v6  ;;  %v8306_v11 = vld [vmem:[#allocation3 + $0x10] ss:$8 sps:$4 sm:$0xff]   ;;  %v4114_v45 = vld [vmem:[%s10896_s7 + $0x100] sm:$0xff]  ;;  %v4115_v52 = vld [vmem:[%s10896_s7 + $0x108] sm:$0xff] }
 0x32c   : > { %7634 = vmatpush3.bf16.msra.mxu0 %v9444_v1  ;;  %7049 = vmatprep.mubr.msk.f32.mxu0 %vm3453_vm14, %v8305_v33  ;;  %v8308_v25 = vld [vmem:[#allocation3 + $0x12] ss:$8 sps:$4 sm:$0xff]   ;;  %v7679_v56 = vpack.c.bf16 %v4115_v52, %v4114_v45  ;;  %v7683_v40 = vpack.c.bf16 %v4117_v18, %v4116_v39  ;;  %v4515_v39 = vld [vmem:[%s10896_s7 + $0x220] sm:$0xff]  ;;  %v4516_v18 = vld [vmem:[%s10896_s7 + $0x228] sm:$0xff] }
 0x32d   : > { %v3651_v19 = vrot.slane %v3650_v14, 1  ;;  %v3658_v28 = vrot.slane %v3657_v57, 1  ;;  %v3664_v31 = vmax.f32 %v3662_v46, %v3663_v36  ;;  %7636 = vmatprep.subr.bf16.mxu0 %v7635_v26  ;;  %v3645_v13 = vmax.f32 %v3643_v2, %v3644_v27  ;;  %v8311_v7 = vld [vmem:[#allocation3 + $0x9] ss:$8 sps:$4 sm:$0xff]   ;;  %v4118_v46 = vld [vmem:[%s10896_s7 + $0x120] sm:$0xff] }
 0x32e   : > { %v7687_v30 = vpack.c.bf16 %v4119_v23, %v4118_v46  ;;  %v4120_v6 = vld [vmem:[%s10896_s7 + $0x130] sm:$0xff] }
 0x32f   : > { %v3652_v38 = vmax.f32 %v3650_v14, %v3651_v19  ;;  %v3659_v49 = vmax.f32 %v3657_v57, %v3658_v28  ;;  %v3665_v51 = vrot.slane %v3664_v31, 1  ;;  %v4213_v14 = vld [vmem:[%s10896_s7 + $0x140] sm:$0xff]  ;;  %v4214_v57 = vld [vmem:[%s10896_s7 + $0x148] sm:$0xff]  ;;  %v4215_v33 = vld [vmem:[%s10896_s7 + $0x150] sm:$0xff] }
 0x330   : > { %7638 = vmatpush3.bf16.msra.mxu0 %v7635_v26  ;;  %v4121_v26 = vld [vmem:[%s10896_s7 + $0x138] sm:$0xff]  ;;  %v7695_v36 = vpack.c.bf16 %v4214_v57, %v4213_v14  ;;  %v4513_v3 = vld [vmem:[%s10896_s7 + $0x210] sm:$0xff] }
 0x331   : > { %v3666_v58 = vmax.f32 %v3664_v31, %v3665_v51  ;;  %v3706_v62 = vsel %vm2010_vm5, %v3652_v38, %v3645_v13  ;;  %7640 = vmatprep.subr.bf16.mxu0 %v7639_v0  ;;  %v7691_v27 = vpack.c.bf16 %v4121_v26, %v4120_v6  ;;  %v4216_v19 = vld [vmem:[%s10896_s7 + $0x158] sm:$0xff]  ;;  %v4217_v13 = vld [vmem:[%s10896_s7 + $0x160] sm:$0xff]  ;;  %v4218_v38 = vld [vmem:[%s10896_s7 + $0x168] sm:$0xff] }
 0x332   : > { %v3707_v1 = vsel %vm2012_vm6, %v3659_v49, %v3706_v62  ;;  %v7699_v31 = vpack.c.bf16 %v4216_v19, %v4215_v33  ;;  %v7703_v49 = vpack.c.bf16 %v4218_v38, %v4217_v13  ;;  %v4219_v51 = vld [vmem:[%s10896_s7 + $0x170] sm:$0xff]  ;;  %v4314_v62 = vld [vmem:[%s10896_s7 + $0x188] sm:$0xff]  ;;  %v4730_v57 = vld [vmem:[%s10899_s10 + $0x98] sm:$0xff] }
 0x333   : > { %v3708_v35 = vsel %vm2014_vm7, %v3666_v58, %v3707_v1  ;;  %v7707_v55 = vpack.c.bf16 %v4220_v17, %v4219_v51  ;;  %v4313_v58 = vld [vmem:[%s10896_s7 + $0x180] sm:$0xff]  ;;  %v4728_v6 = vld [vmem:[%s10899_s10 + $0x88] sm:$0xff]  ;;  %v4729_v14 = vld [vmem:[%s10899_s10 + $0x90] sm:$0xff] }
 0x334   : > { %3717 = vst.msk [vmem:[#allocation3 + $0x21] sm:$0xf] %vm3713_vm0, %v3708_v35  ;;  %7642 = vmatpush3.bf16.msra.mxu0 %v7639_v0  ;;  %v8313_v0 = vld [vmem:[#allocation3 + $0xa] ss:$8 sps:$4 sm:$0xff]   ;;  %v7711_v1 = vpack.c.bf16 %v4314_v62, %v4313_v58  ;;  %v4316_v35 = vld [vmem:[%s10896_s7 + $0x198] sm:$0xff]  ;;  %v4731_v33 = vld [vmem:[%s10899_s10 + $0xa0] sm:$0xff] }
 0x335   : > { %7644 = vmatprep.subr.bf16.mxu0 %v7643_v8  ;;  %v4732_v19 = vld [vmem:[%s10899_s10 + $0xa8] sm:$0xff]  ;;  %v4735_v38 = vld [vmem:[%s10899_s10 + $0xc0] sm:$0xff]  ;;  %v4737_v17 = vld [vmem:[%s10899_s10 + $0xd0] sm:$0xff] }
 0x336   : > { %v4739_v62 = vld [vmem:[%s10899_s10 + $0xe0] sm:$0xff] }
 0x338   : > { %7646 = vmatpush3.bf16.msra.mxu0 %v7643_v8  ;;  %v4315_v8 = vld [vmem:[%s10896_s7 + $0x190] sm:$0xff] }
 0x339   : > { %7648 = vmatprep.subr.bf16.mxu0 %v7647_v48  ;;  %v7715_v60 = vpack.c.bf16 %v4316_v35, %v4315_v8  ;;  %v4741_v35 = vld [vmem:[%s10899_s10 + $0xf0] sm:$0xff] }
 0x33b   : > { %7050 = vmatmul.mubr.msk.f32.vlgmr.msra.gmra.mrb[40].mxu0 %vm3453_vm14, %v8306_v11  ;;  %v8310_v2 = vld [vmem:[#allocation3 + $0x18] ss:$8 sps:$4 sm:$0xff]   ;;  %v7719_v11 = vpack.c.bf16 %v4318_v61, %v4317_v34 }
 0x33c   : > { %7650 = vmatpush3.bf16.msra.mxu0 %v7647_v48  ;;  %7068 = vmatprep.mubr.msk.f32.mxu0 %vm3453_vm14, %v8307_v12  ;;  %v8312_v28 = vld [vmem:[#allocation3 + $0x19] ss:$8 sps:$4 sm:$0xff]   ;;  %v6329_v61 = vld [vmem:[%s10898_s9] ss:$0 sm:$0xff] }
 0x33d   : > { %7652 = vmatprep.subr.bf16.mxu0 %v7651_v16  ;;  %v8314_v54 = vld [vmem:[#allocation3 + $0x1a] ss:$8 sps:$4 sm:$0xff]  }
 0x33e   : > { %v8315_v48 = vld [vmem:[#allocation3 + $0x10] ss:$8 sps:$4 sm:$0xff]   ;;  %v4412_v12 = vld [vmem:[%s10896_s7 + $0x1c0] sm:$0xff] }
 0x33f   : > { %v8316_v32 = vld [vmem:[#allocation3 + $0x20] ss:$8 sps:$4 sm:$0xff]  }
 0x340   : > { %7654 = vmatpush3.bf16.msra.mxu0 %v7651_v16  ;;  %v4319_v16 = vld [vmem:[%s10896_s7 + $0x1b0] sm:$0xff]  ;;  %v8318_v45 = vld [vmem:[#allocation3 + $0x21] ss:$8 sps:$4 sm:$0xff]  }
 0x341   : > { %7656 = vmatprep.subr.bf16.mxu0 %v7655_v9  ;;  %v7723_v41 = vpack.c.bf16 %v4320_v4, %v4319_v16  ;;  %v8320_v23 = vld [vmem:[#allocation3 + $0x22] ss:$8 sps:$4 sm:$0xff]  }
 0x344   : > { %7658 = vmatpush3.bf16.msra.mxu0 %v7655_v9  ;;  %v4413_v9 = vld [vmem:[%s10896_s7 + $0x1c8] sm:$0xff] }
 0x345   : > { %7660 = vmatprep.subr.bf16.mxu0 %v7659_v59  ;;  %v7727_v10 = vpack.c.bf16 %v4413_v9, %v4412_v12 }
 0x348   : > { %7662 = vmatpush3.bf16.msra.mxu0 %v7659_v59  ;;  %v4415_v59 = vld [vmem:[%s10896_s7 + $0x1d8] sm:$0xff] }
 0x349   : > { %7664 = vmatprep.subr.bf16.mxu0 %v7663_v47  ;;  %v7731_v42 = vpack.c.bf16 %v4415_v59, %v4414_v43 }
 0x34b   : > { %7069 = vmatmul.mubr.msk.f32.vlgmr.msra.gmra.mrb[40].mxu0 %vm3453_vm14, %v8308_v25  ;;  %v7735_v25 = vpack.c.bf16 %v4417_v22, %v4416_v24 }
 0x34c   : > { %7666 = vmatpush3.bf16.msra.mxu0 %v7663_v47  ;;  %7087 = vmatprep.mubr.msk.f32.mxu0 %vm3453_vm14, %v8309_v29  ;;  %v8317_v47 = vld [vmem:[#allocation3 + $0x11] ss:$8 sps:$4 sm:$0xff]  }
 0x34d   : > { %7668 = vmatprep.subr.bf16.mxu0 %v7667_v21  ;;  %v4419_v29 = vld [vmem:[%s10896_s7 + $0x1f8] sm:$0xff] }
 0x350   : > { %7670 = vmatpush3.bf16.msra.mxu0 %v7667_v21  ;;  %v4418_v21 = vld [vmem:[%s10896_s7 + $0x1f0] sm:$0xff] }
 0x351   : > { %7672 = vmatprep.subr.bf16.mxu0 %v7671_v44  ;;  %v7739_v37 = vpack.c.bf16 %v4419_v29, %v4418_v21 }
 0x354   : > { %7674 = vmatpush3.bf16.msra.mxu0 %v7671_v44  ;;  %v4512_v44 = vld [vmem:[%s10896_s7 + $0x208] sm:$0xff] }
 0x355   : > { %7676 = vmatprep.subr.bf16.mxu0 %v7675_v63  ;;  %v7743_v53 = vpack.c.bf16 %v4512_v44, %v4511_v20 }
 0x358   : > { %7678 = vmatpush3.bf16.msra.mxu0 %v7675_v63  ;;  %v4514_v63 = vld [vmem:[%s10896_s7 + $0x218] sm:$0xff] }
 0x359   : > { %7680 = vmatprep.subr.bf16.mxu0 %v7679_v56  ;;  %v7747_v52 = vpack.c.bf16 %v4514_v63, %v4513_v3 }
 0x35b   : > { %7088 = vmatmul.mubr.msk.f32.vlgmr.msra.gmra.mrb[40].mxu0 %vm3453_vm14, %v8310_v2  ;;  %v7751_v2 = vpack.c.bf16 %v4516_v18, %v4515_v39 }
 0x35c   : > { %7682 = vmatpush3.bf16.msra.mxu0 %v7679_v56  ;;  %7106 = vmatprep.mubr.msk.f32.mxu0 %vm3453_vm14, %v8311_v7  ;;  %v8319_v56 = vld [vmem:[#allocation3 + $0x12] ss:$8 sps:$4 sm:$0xff]  }
 0x35d   : > { %7684 = vmatprep.subr.bf16.mxu0 %v7683_v40  ;;  %v4518_v7 = vld [vmem:[%s10896_s7 + $0x238] sm:$0xff] }
 0x360   : > { %7686 = vmatpush3.bf16.msra.mxu0 %v7683_v40  ;;  %v4517_v40 = vld [vmem:[%s10896_s7 + $0x230] sm:$0xff] }
 0x361   : > { %7688 = vmatprep.subr.bf16.mxu0 %v7687_v30  ;;  %v7755_v46 = vpack.c.bf16 %v4518_v7, %v4517_v40 }
 0x364   : > { %7690 = vmatpush3.bf16.msra.mxu0 %v7687_v30  ;;  %v4727_v30 = vld [vmem:[%s10899_s10 + $0x80] sm:$0xff] }
 0x365   : > { %7692 = vmatprep.subr.bf16.mxu0 %v7691_v27  ;;  %v7760_v26 = vpack.c.bf16 %v4728_v6, %v4727_v30 }
 0x368   : > { %7694 = vmatpush3.bf16.msra.mxu0 %v7691_v27  ;;  %v8412_v27 = vmov 0.0|0.0  }
 0x369   : > { %7696 = vmatprep.subr.bf16.mxu0 %v7695_v36  ;;  %7759 = vmatprep.subr.bf16.mxu1 %v8412_v27 }
 0x36a   : > { %7761 = vmatpush3.bf16.msra.mxu1 %v7760_v26 }
 0x36b   : > { %7107 = vmatmul.mubr.msk.f32.vlgmr.msra.gmra.mrb[40].mxu0 %vm3453_vm14, %v8312_v28  ;;  %7762 = vmatprep.subr.bf16.mxu1 %v8412_v27  ;;  %v7766_v28 = vpack.c.bf16 %v4732_v19, %v4731_v33 }
 0x36c   : > { %7698 = vmatpush3.bf16.msra.mxu0 %v7695_v36  ;;  %7125 = vmatprep.mubr.msk.f32.mxu0 %vm3453_vm14, %v8313_v0  ;;  %v7763_v36 = vpack.c.bf16 %v4730_v57, %v4729_v14  ;;  %v4734_v0 = vld [vmem:[%s10899_s10 + $0xb8] sm:$0xff] }
 0x36d   : > { %7700 = vmatprep.subr.bf16.mxu0 %v7699_v31 }
 0x36e   : > { %7764 = vmatpush3.bf16.msra.mxu1 %v7763_v36 }
 0x36f   : > { %7765 = vmatprep.subr.bf16.mxu1 %v8412_v27 }
 0x370   : > { %7702 = vmatpush3.bf16.msra.mxu0 %v7699_v31  ;;  %v4733_v31 = vld [vmem:[%s10899_s10 + $0xb0] sm:$0xff] }
 0x371   : > { %7704 = vmatprep.subr.bf16.mxu0 %v7703_v49  ;;  %v7769_v13 = vpack.c.bf16 %v4734_v0, %v4733_v31 }
 0x372   : > { %7767 = vmatpush3.bf16.msra.mxu1 %v7766_v28 }
 0x373   : > { %7768 = vmatprep.subr.bf16.mxu1 %v8412_v27 }
 0x374   : > { %7706 = vmatpush3.bf16.msra.mxu0 %v7703_v49  ;;  %v4736_v49 = vld [vmem:[%s10899_s10 + $0xc8] sm:$0xff] }
 0x375   : > { %7708 = vmatprep.subr.bf16.mxu0 %v7707_v55  ;;  %v7772_v51 = vpack.c.bf16 %v4736_v49, %v4735_v38 }
 0x376   : > { %7770 = vmatpush3.bf16.msra.mxu1 %v7769_v13 }
 0x377   : > { %7771 = vmatprep.subr.bf16.mxu1 %v8412_v27 }
 0x378   : > { %7710 = vmatpush3.bf16.msra.mxu0 %v7707_v55  ;;  %v4738_v55 = vld [vmem:[%s10899_s10 + $0xd8] sm:$0xff] }
 0x379   : > { %7712 = vmatprep.subr.bf16.mxu0 %v7711_v1  ;;  %v7775_v58 = vpack.c.bf16 %v4738_v55, %v4737_v17  ;;  %v4709_v17 = vld [vmem:[%s10899_s10] sm:$0xff]  ;;  %v4710_v55 = vld [vmem:[%s10899_s10 + $0x8] sm:$0xff] }
 0x37a   : > { %7773 = vmatpush3.bf16.msra.mxu1 %v7772_v51 }
 0x37b   : > { %7126 = vmatmul.mubr.msk.f32.vlgmr.msra.gmra.mrb[40].mxu0 %vm3453_vm14, %v8314_v54  ;;  %7774 = vmatprep.subr.bf16.mxu1 %v8412_v27  ;;  %v4742_v54 = vld [vmem:[%s10899_s10 + $0xf8] sm:$0xff] }
 0x37c   : > { %7714 = vmatpush3.bf16.msra.mxu0 %v7711_v1  ;;  %7144 = vmatprep.mubr.msk.f32.mxu0 %vm3453_vm14, %v8315_v48  ;;  %v4740_v1 = vld [vmem:[%s10899_s10 + $0xe8] sm:$0xff]  ;;  %v6328_v48 = vld [vmem:[%s10897_s8] ss:$0 sm:$0xff] }
 0x37d   : > { %7716 = vmatprep.subr.bf16.mxu0 %v7715_v60  ;;  %v7778_v8 = vpack.c.bf16 %v4740_v1, %v4739_v62  ;;  %v7784_v62 = vpack.c.bf16 %v4710_v55, %v4709_v17  ;;  %v4711_v1 = vld [vmem:[%s10899_s10 + $0x10] sm:$0xff]  ;;  %v5014_v17 = vld [vmem:[%s10899_s10 + $0x1b8] sm:$0xff] }
 0x37e   : > { %7776 = vmatpush3.bf16.msra.mxu1 %v7775_v58 }
 0x37f   : > { %7777 = vmatprep.subr.bf16.mxu1 %v8412_v27 }
 0x380   : > { %7718 = vmatpush3.bf16.msra.mxu0 %v7715_v60  ;;  %v7781_v60 = vpack.c.bf16 %v4742_v54, %v4741_v35  ;;  %v4713_v54 = vld [vmem:[%s10899_s10 + $0x20] sm:$0xff] }
 0x381   : > { %7720 = vmatprep.subr.bf16.mxu0 %v7719_v11 }
 0x382   : > { %7779 = vmatpush3.bf16.msra.mxu1 %v7778_v8  ;;  %v4712_v8 = vld [vmem:[%s10899_s10 + $0x18] sm:$0xff] }
 0x383   : > { %7780 = vmatprep.subr.bf16.mxu1 %v8412_v27  ;;  %v7787_v35 = vpack.c.bf16 %v4712_v8, %v4711_v1  ;;  %v5017_v8 = vld [vmem:[%s10899_s10 + $0x1d0] sm:$0xff] }
 0x384   : > { %7722 = vmatpush3.bf16.msra.mxu0 %v7719_v11 }
 0x385   : > { %7724 = vmatprep.subr.bf16.mxu0 %v7723_v41 }
 0x386   : > { %7782 = vmatpush3.bf16.msra.mxu1 %v7781_v60  ;;  %v4714_v60 = vld [vmem:[%s10899_s10 + $0x28] sm:$0xff] }
 0x387   : > { %7783 = vmatprep.subr.bf16.mxu1 %v8412_v27 }
 0x388   : > { %7726 = vmatpush3.bf16.msra.mxu0 %v7723_v41 }
 0x389   : > { %7728 = vmatprep.subr.bf16.mxu0 %v7727_v10 }
 0x38b   : > { %7145 = vmatmul.mubr.msk.f32.vlgmr.msra.gmra.mrb[40].mxu0 %vm3453_vm14, %v8316_v32 }
 0x38c   : > { %7730 = vmatpush3.bf16.msra.mxu0 %v7727_v10  ;;  %7163 = vmatprep.mubr.msk.f32.mxu0 %vm3453_vm14, %v8317_v47 }
 0x38d   : > { %7732 = vmatprep.subr.bf16.mxu0 %v7731_v42 }
 0x390   : > { %7734 = vmatpush3.bf16.msra.mxu0 %v7731_v42 }
 0x391   : > { %7736 = vmatprep.subr.bf16.mxu0 %v7735_v25 }
 0x394   : > { %7738 = vmatpush3.bf16.msra.mxu0 %v7735_v25 }
 0x395   : > { %7740 = vmatprep.subr.bf16.mxu0 %v7739_v37 }
 0x398   : > { %7742 = vmatpush3.bf16.msra.mxu0 %v7739_v37 }
 0x399   : > { %7744 = vmatprep.subr.bf16.mxu0 %v7743_v53 }
 0x39b   : > { %7164 = vmatmul.mubr.msk.f32.vlgmr.msra.gmra.mrb[40].mxu0 %vm3453_vm14, %v8318_v45 }
 0x39c   : > { %7746 = vmatpush3.bf16.msra.mxu0 %v7743_v53  ;;  %7182 = vmatprep.mubr.msk.f32.mxu0 %vm3453_vm14, %v8319_v56 }
 0x39d   : > { %7748 = vmatprep.subr.bf16.mxu0 %v7747_v52 }
 0x3a0   : > { %7750 = vmatpush3.bf16.msra.mxu0 %v7747_v52 }
 0x3a1   : > { %7752 = vmatprep.subr.bf16.mxu0 %v7751_v2 }
 0x3a4   : > { %7754 = vmatpush3.bf16.msra.mxu0 %v7751_v2 }
 0x3a5   : > { %7756 = vmatprep.subr.bf16.mxu0 %v7755_v46 }
 0x3a8   : > { %7758 = vmatpush3.bf16.msra.mxu0 %v7755_v46 }
 0x3ab   : > { %7183 = vmatmul.mubr.msk.f32.vlgmr.msra.gmra.mrb[40].mxu0 %vm3453_vm14, %v8320_v23 }
 0x47e   : > { %v7184_v34 = vpop.f32.mrb[40].mxu0 }
 0x47f   : > { %v4614_v11 = vmul.f32 %v7184_v34, %v6328_v48  ;;  %v4595_v16 = vpop.f32.mrb[41].mxu0  ;;  %v4715_v34 = vld [vmem:[%s10899_s10 + $0x30] sm:$0xff] }
 0x480   : > { %v4613_v4 = vmul.f32 %v6328_v48, %v4595_v16  ;;  %v7790_v48 = vpack.c.bf16 %v4714_v60, %v4713_v54  ;;  %v4717_v16 = vld [vmem:[%s10899_s10 + $0x40] sm:$0xff] }
 0x481   : > { %v4623_v41 = vadd.f32 %v6329_v61, %v4614_v11  ;;  %v5019_v60 = vld [vmem:[%s10899_s10 + $0x1e0] sm:$0xff] }
 0x482   : > { %v4622_v12 = vadd.f32 %v6329_v61, %v4613_v4  ;;  %v4716_v61 = vld [vmem:[%s10899_s10 + $0x38] sm:$0xff]  ;;  %v4718_v4 = vld [vmem:[%s10899_s10 + $0x48] sm:$0xff] }
 0x483   : > { %v4625_v9 = vmax.f32 %v4623_v41, 0.0  ;;  %v7793_v11 = vpack.c.bf16 %v4716_v61, %v4715_v34  ;;  %v7796_v41 = vpack.c.bf16 %v4718_v4, %v4717_v16  ;;  %v5021_v61 = vld [vmem:[%s10899_s10 + $0x1f0] sm:$0xff] }
 0x484   : > { %v4624_v10 = vmax.f32 %v4622_v12, 0.0  ;;  %v4719_v12 = vld [vmem:[%s10899_s10 + $0x50] sm:$0xff] }
 0x485   : > { %v4629_v43 = vcombine.high %v4625_v9, %v4625_v9  ;;  %v4635_v32 = vsel %vm734_vm1, %v4625_v9, -inf  ;;  %v4720_v9 = vld [vmem:[%s10899_s10 + $0x58] sm:$0xff] }
 0x486   : > { %v4628_v59 = vcombine.high %v4624_v10, %v4624_v10  ;;  %v4632_v24 = vsel %vm734_vm1, %v4624_v10, -inf  ;;  %v7799_v10 = vpack.c.bf16 %v4720_v9, %v4719_v12  ;;  %v5108_v12 = vld [vmem:[%s10899_s10 + $0x208] sm:$0xff] }
 0x487   : > { %v4636_v42 = vsel %vm734_vm1, %v4629_v43, -inf  ;;  %v4721_v43 = vld [vmem:[%s10899_s10 + $0x60] sm:$0xff] }
 0x488   : > { %v4637_v47 = vmax.f32 %v4635_v32, %v4636_v42  ;;  %v4633_v22 = vsel %vm734_vm1, %v4628_v59, -inf  ;;  %v4722_v59 = vld [vmem:[%s10899_s10 + $0x68] sm:$0xff]  ;;  %v4723_v42 = vld [vmem:[%s10899_s10 + $0x70] sm:$0xff] }
 0x489   : > { %v4634_v25 = vmax.f32 %v4632_v24, %v4633_v22  ;;  %v7802_v32 = vpack.c.bf16 %v4722_v59, %v4721_v43  ;;  %v5110_v43 = vld [vmem:[%s10899_s10 + $0x218] sm:$0xff] }
 0x48a   : > { %v4654_v21 = vrot.slane %v4637_v47, %v8746_v15  ;;  %v4724_v47 = vld [vmem:[%s10899_s10 + $0x78] sm:$0xff] }
 0x48b   : > { %v4646_v29 = vrot.slane %v4634_v25, %v8746_v15  ;;  %v7805_v24 = vpack.c.bf16 %v4724_v47, %v4723_v42  ;;  %v4907_v25 = vld [vmem:[%s10899_s10 + $0x100] sm:$0xff]  ;;  %v5112_v42 = vld [vmem:[%s10899_s10 + $0x228] sm:$0xff] }
 0x48c   : > { %v4655_v37 = vcombine.high %v4654_v21, %v4654_v21  ;;  %v4675_v20 = vsel %vm4660_vm3, %v4654_v21, -inf  ;;  %v4908_v21 = vld [vmem:[%s10899_s10 + $0x108] sm:$0xff] }
 0x48d   : > { %v4676_v44 = vrot.slane %v4675_v20, 4  ;;  %v4647_v53 = vcombine.high %v4646_v29, %v4646_v29  ;;  %v4661_v3 = vsel %vm4660_vm3, %v4646_v29, -inf  ;;  %v7808_v29 = vpack.c.bf16 %v4908_v21, %v4907_v25  ;;  %v5115_v21 = vld [vmem:[%s10899_s10 + $0x240] sm:$0xff] }
 0x48e   : > { %v4682_v63 = vsel %vm4660_vm3, %v4655_v37, -inf  ;;  %v4662_v45 = vrot.slane %v4661_v3, 4  ;;  %v4909_v37 = vld [vmem:[%s10899_s10 + $0x110] sm:$0xff] }
 0x48f   : > { %v4677_v52 = vmax.f32 %v4675_v20, %v4676_v44  ;;  %v4683_v56 = vrot.slane %v4682_v63, 4  ;;  %v4668_v39 = vsel %vm4660_vm3, %v4647_v53, -inf  ;;  %v4910_v20 = vld [vmem:[%s10899_s10 + $0x118] sm:$0xff]  ;;  %v4911_v53 = vld [vmem:[%s10899_s10 + $0x120] sm:$0xff] }
 0x490   : > { %v4663_v18 = vmax.f32 %v4661_v3, %v4662_v45  ;;  %v4669_v2 = vrot.slane %v4668_v39, 4  ;;  %v7811_v44 = vpack.c.bf16 %v4910_v20, %v4909_v37  ;;  %v4912_v3 = vld [vmem:[%s10899_s10 + $0x128] sm:$0xff]  ;;  %v4913_v45 = vld [vmem:[%s10899_s10 + $0x130] sm:$0xff] }
 0x491   : > { %v4678_v40 = vrot.slane %v4677_v52, 2  ;;  %v4684_v7 = vmax.f32 %v4682_v63, %v4683_v56  ;;  %v7814_v63 = vpack.c.bf16 %v4912_v3, %v4911_v53  ;;  %v5117_v20 = vld [vmem:[%s10899_s10 + $0x250] sm:$0xff]  ;;  %v5119_v3 = vld [vmem:[%s10899_s10 + $0x260] sm:$0xff] }
 0x492   : > { %v4664_v46 = vrot.slane %v4663_v18, 2  ;;  %v4670_v23 = vmax.f32 %v4668_v39, %v4669_v2  ;;  %v4915_v39 = vld [vmem:[%s10899_s10 + $0x140] sm:$0xff] }
 0x493   : > { %v4679_v30 = vmax.f32 %v4677_v52, %v4678_v40  ;;  %v4685_v6 = vrot.slane %v4684_v7, 2  ;;  %v4914_v52 = vld [vmem:[%s10899_s10 + $0x138] sm:$0xff]  ;;  %v4917_v40 = vld [vmem:[%s10899_s10 + $0x150] sm:$0xff] }
 0x494   : > { %v4665_v26 = vmax.f32 %v4663_v18, %v4664_v46  ;;  %v4671_v15 = vrot.slane %v4670_v23, 2  ;;  %v7817_v56 = vpack.c.bf16 %v4914_v52, %v4913_v45  ;;  %v4916_v18 = vld [vmem:[%s10899_s10 + $0x148] sm:$0xff]  ;;  %v5121_v52 = vld [vmem:[%s10899_s10 + $0x270] sm:$0xff] }
 0x495   : > { %v4680_v14 = vrot.slane %v4679_v30, 1  ;;  %v4686_v57 = vmax.f32 %v4684_v7, %v4685_v6  ;;  %v7820_v2 = vpack.c.bf16 %v4916_v18, %v4915_v39  ;;  %v4918_v7 = vld [vmem:[%s10899_s10 + $0x158] sm:$0xff] }
 0x496   : > { %v4666_v36 = vrot.slane %v4665_v26, 1  ;;  %v4672_v33 = vmax.f32 %v4670_v23, %v4671_v15  ;;  %v7823_v46 = vpack.c.bf16 %v4918_v7, %v4917_v40  ;;  %v4919_v23 = vld [vmem:[%s10899_s10 + $0x160] sm:$0xff]  ;;  %v4922_v15 = vld [vmem:[%s10899_s10 + $0x178] sm:$0xff]  ;;  %v5208_v40 = vld [vmem:[%s10899_s10 + $0x288] sm:$0xff] }
 0x497   : > { %v4687_v19 = vrot.slane %v4686_v57, 1  ;;  %v4681_v31 = vmax.f32 %v4679_v30, %v4680_v14  ;;  %v4920_v30 = vld [vmem:[%s10899_s10 + $0x168] sm:$0xff] }
 0x498   : > { %v4673_v28 = vrot.slane %v4672_v33, 1  ;;  %v4667_v13 = vmax.f32 %v4665_v26, %v4666_v36  ;;  %v7826_v6 = vpack.c.bf16 %v4920_v30, %v4919_v23  ;;  %v4921_v26 = vld [vmem:[%s10899_s10 + $0x170] sm:$0xff]  ;;  %v5007_v36 = vld [vmem:[%s10899_s10 + $0x180] sm:$0xff]  ;;  %v5210_v23 = vld [vmem:[%s10899_s10 + $0x298] sm:$0xff] }
 0x499   : > { %v4688_v0 = vmax.f32 %v4686_v57, %v4687_v19  ;;  %v7829_v14 = vpack.c.bf16 %v4922_v15, %v4921_v26  ;;  %v5211_v30 = vld [vmem:[%s10899_s10 + $0x2a0] sm:$0xff]  ;;  %v5631_v26 = vld [vmem:[%s10902_s13 + $0x8] sm:$0xff]  ;;  %v5633_v15 = vld [vmem:[%s10902_s13 + $0x18] sm:$0xff] }
 0x49a   : > { %v4674_v38 = vmax.f32 %v4672_v33, %v4673_v28  ;;  %v5008_v33 = vld [vmem:[%s10899_s10 + $0x188] sm:$0xff]  ;;  %v5009_v28 = vld [vmem:[%s10899_s10 + $0x190] sm:$0xff] }
 0x49b   : > { %v4702_v49 = vsel %vm2010_vm5, %v4688_v0, %v4681_v31  ;;  %v7832_v19 = vpack.c.bf16 %v5008_v33, %v5007_v36  ;;  %v5010_v31 = vld [vmem:[%s10899_s10 + $0x198] sm:$0xff]  ;;  %v7975_v36 = vpack.c.bf16 %v5633_v15, %v5631_v26  ;;  %v5632_v33 = vld [vmem:[%s10902_s13 + $0x10] sm:$0xff]  ;;  %v5658_v15 = vld [vmem:[%s10902_s13 + $0xe0] sm:$0xff] }
 0x49c   : > { %4706 = vst [vmem:[#allocation4 + $0x9] sm:$0x3] %v4702_v49  ;;  %v4701_v51 = vsel %vm2010_vm5, %v4674_v38, %v4667_v13  ;;  %v7835_v0 = vpack.c.bf16 %v5010_v31, %v5009_v28  ;;  %v5011_v13 = vld [vmem:[%s10899_s10 + $0x1a0] sm:$0xff]  ;;  %v5012_v38 = vld [vmem:[%s10899_s10 + $0x1a8] sm:$0xff]  ;;  %v5637_v28 = vld [vmem:[%s10902_s13 + $0x38] sm:$0xff] }
 0x49d   : > { %4705 = vst [vmem:[#allocation4 + $0x5] sm:$0x3] %v4701_v51  ;;  %v7838_v49 = vpack.c.bf16 %v5012_v38, %v5011_v13  ;;  %v5013_v51 = vld [vmem:[%s10899_s10 + $0x1b0] sm:$0xff]  ;;  %v5634_v13 = vld [vmem:[%s10902_s13 + $0x20] sm:$0xff]  ;;  %7976 = vmatprep.subr.bf16.mxu0 %v7975_v36 }
 0x49e   : > { %v7841_v55 = vpack.c.bf16 %v5014_v17, %v5013_v51  ;;  %v5636_v38 = vld [vmem:[%s10902_s13 + $0x30] sm:$0xff]  ;;  %v5641_v51 = vld [vmem:[%s10902_s13 + $0x58] sm:$0xff]  ;;  %v5308_v36 = vld [vmem:[%s10899_s10 + $0x300] sm:$0xff] }
 0x49f   : > { %v7981_v17 = vpack.c.bf16 %v5636_v38, %v5634_v13  ;;  %v5310_v13 = vld [vmem:[%s10899_s10 + $0x310] sm:$0xff]  ;;  %v5662_v38 = vld [vmem:[%s10902_s13 + $0x100] sm:$0xff] }
 0x4a4   : > { %v8337_v58 = vld.sshfl [vmem:[#allocation4 + $0x1] sm:$0xf pattern:$0x76325410] }
 0x4a5   : > { %7218 = vmatmul.mubr.f32.vlgmr.msra.gmra.mrb[8].mxu1 %v8337_v58  ;;  %v8338_v22 = vld.sshfl [vmem:[#allocation4] sm:$0xf pattern:$0x76325410]  ;;  %v5015_v58 = vld [vmem:[%s10899_s10 + $0x1c0] sm:$0xff] }
 0x4a6   : > { %7785 = vmatpush3.bf16.msra.mxu1 %v7784_v62  ;;  %7252 = vmatprep.mubr.msk.f32.mxu1 %vm8413_vm2, %v8410_v50  ;;  %v8339_v57 = vld.sshfl [vmem:[#allocation4 + $0x2] sm:$0xf pattern:$0x76325410]  ;;  %v5016_v62 = vld [vmem:[%s10899_s10 + $0x1c8] sm:$0xff] }
 0x4a7   : > { %7786 = vmatprep.subr.bf16.mxu1 %v8412_v27  ;;  %v7844_v1 = vpack.c.bf16 %v5016_v62, %v5015_v58  ;;  %v8340_v4 = vld.sshfl [vmem:[#allocation4 + $0x4] sm:$0xf pattern:$0x76325410] }
 0x4a8   : > { %v8341_v18 = vld.sshfl [vmem:[#allocation4 + $0x5] sm:$0xf pattern:$0x76325410] }
 0x4a9   : > { %v5213_v58 = vld [vmem:[%s10899_s10 + $0x2b0] sm:$0xff] }
 0x4aa   : > { %7788 = vmatpush3.bf16.msra.mxu1 %v7787_v35  ;;  %v5018_v35 = vld [vmem:[%s10899_s10 + $0x1d8] sm:$0xff] }
 0x4ab   : > { %7789 = vmatprep.subr.bf16.mxu1 %v8412_v27  ;;  %v7847_v54 = vpack.c.bf16 %v5018_v35, %v5017_v8  ;;  %v5640_v8 = vld [vmem:[%s10902_s13 + $0x50] sm:$0xff]  ;;  %v5214_v35 = vld [vmem:[%s10899_s10 + $0x2b8] sm:$0xff] }
 0x4ae   : > { %7791 = vmatpush3.bf16.msra.mxu1 %v7790_v48  ;;  %v5020_v48 = vld [vmem:[%s10899_s10 + $0x1e8] sm:$0xff] }
 0x4af   : > { %7792 = vmatprep.subr.bf16.mxu1 %v8412_v27  ;;  %v7850_v34 = vpack.c.bf16 %v5020_v48, %v5019_v60  ;;  %v5645_v60 = vld [vmem:[%s10902_s13 + $0x78] sm:$0xff] }
 0x4b2   : > { %7794 = vmatpush3.bf16.msra.mxu1 %v7793_v11  ;;  %v5022_v11 = vld [vmem:[%s10899_s10 + $0x1f8] sm:$0xff] }
 0x4b3   : > { %7795 = vmatprep.subr.bf16.mxu1 %v8412_v27  ;;  %v7853_v16 = vpack.c.bf16 %v5022_v11, %v5021_v61  ;;  %v5215_v61 = vld [vmem:[%s10899_s10 + $0x2c0] sm:$0xff] }
 0x4b6   : > { %7797 = vmatpush3.bf16.msra.mxu1 %v7796_v41  ;;  %v5107_v41 = vld [vmem:[%s10899_s10 + $0x200] sm:$0xff] }
 0x4b7   : > { %7798 = vmatprep.subr.bf16.mxu1 %v8412_v27  ;;  %v7856_v9 = vpack.c.bf16 %v5108_v12, %v5107_v41  ;;  %v5216_v41 = vld [vmem:[%s10899_s10 + $0x2c8] sm:$0xff] }
 0x4b8   : > { %v5647_v12 = vld [vmem:[%s10902_s13 + $0x88] sm:$0xff] }
 0x4ba   : > { %7800 = vmatpush3.bf16.msra.mxu1 %v7799_v10  ;;  %v5109_v10 = vld [vmem:[%s10899_s10 + $0x210] sm:$0xff] }
 0x4bb   : > { %7801 = vmatprep.subr.bf16.mxu1 %v8412_v27  ;;  %v7859_v59 = vpack.c.bf16 %v5110_v43, %v5109_v10  ;;  %v7892_v43 = vpack.c.bf16 %v5216_v41, %v5215_v61  ;;  %v5673_v61 = vld [vmem:[%s10902_s13 + $0x158] sm:$0xff] }
 0x4be   : > { %7803 = vmatpush3.bf16.msra.mxu1 %v7802_v32  ;;  %v5111_v32 = vld [vmem:[%s10899_s10 + $0x220] sm:$0xff] }
 0x4bf   : > { %7804 = vmatprep.subr.bf16.mxu1 %v8412_v27  ;;  %v7862_v47 = vpack.c.bf16 %v5112_v42, %v5111_v32  ;;  %v5646_v42 = vld [vmem:[%s10902_s13 + $0x80] sm:$0xff] }
 0x4c2   : > { %7806 = vmatpush3.bf16.msra.mxu1 %v7805_v24  ;;  %v5113_v24 = vld [vmem:[%s10899_s10 + $0x230] sm:$0xff] }
 0x4c3   : > { %7807 = vmatprep.subr.bf16.mxu1 %v8412_v27 }
 0x4c5   : > { %7253 = vmatmul.mubr.f32.vlgmr.msra.gmra.mrb[8].mxu1 %v8338_v22  ;;  %v5114_v22 = vld [vmem:[%s10899_s10 + $0x238] sm:$0xff] }
 0x4c6   : > { %7809 = vmatpush3.bf16.msra.mxu1 %v7808_v29  ;;  %7287 = vmatprep.mubr.msk.f32.mxu1 %vm8413_vm2, %v8410_v50  ;;  %v7865_v25 = vpack.c.bf16 %v5114_v22, %v5113_v24  ;;  %v5116_v29 = vld [vmem:[%s10899_s10 + $0x248] sm:$0xff]  ;;  %v5218_v24 = vld [vmem:[%s10899_s10 + $0x2d8] sm:$0xff] }
 0x4c7   : > { %7810 = vmatprep.subr.bf16.mxu1 %v8412_v27  ;;  %v7868_v37 = vpack.c.bf16 %v5116_v29, %v5115_v21  ;;  %v5651_v22 = vld [vmem:[%s10902_s13 + $0xa8] sm:$0xff] }
 0x4ca   : > { %7812 = vmatpush3.bf16.msra.mxu1 %v7811_v44  ;;  %v5118_v44 = vld [vmem:[%s10899_s10 + $0x258] sm:$0xff] }
 0x4cb   : > { %7813 = vmatprep.subr.bf16.mxu1 %v8412_v27  ;;  %v7871_v53 = vpack.c.bf16 %v5118_v44, %v5117_v20  ;;  %v5650_v44 = vld [vmem:[%s10902_s13 + $0xa0] sm:$0xff] }
 0x4ce   : > { %7815 = vmatpush3.bf16.msra.mxu1 %v7814_v63  ;;  %v5120_v63 = vld [vmem:[%s10899_s10 + $0x268] sm:$0xff] }
 0x4cf   : > { %7816 = vmatprep.subr.bf16.mxu1 %v8412_v27  ;;  %v7874_v45 = vpack.c.bf16 %v5120_v63, %v5119_v3  ;;  %v5220_v3 = vld [vmem:[%s10899_s10 + $0x2e8] sm:$0xff] }
 0x4d0   : > { %v5655_v63 = vld [vmem:[%s10902_s13 + $0xc8] sm:$0xff] }
 0x4d2   : > { %7818 = vmatpush3.bf16.msra.mxu1 %v7817_v56  ;;  %v5122_v56 = vld [vmem:[%s10899_s10 + $0x278] sm:$0xff] }
 0x4d3   : > { %7819 = vmatprep.subr.bf16.mxu1 %v8412_v27  ;;  %v7877_v39 = vpack.c.bf16 %v5122_v56, %v5121_v52 }
 0x4d6   : > { %7821 = vmatpush3.bf16.msra.mxu1 %v7820_v2  ;;  %v5207_v2 = vld [vmem:[%s10899_s10 + $0x280] sm:$0xff] }
 0x4d7   : > { %7822 = vmatprep.subr.bf16.mxu1 %v8412_v27  ;;  %v7880_v7 = vpack.c.bf16 %v5208_v40, %v5207_v2  ;;  %v5654_v2 = vld [vmem:[%s10902_s13 + $0xc0] sm:$0xff]  ;;  %v5656_v40 = vld [vmem:[%s10902_s13 + $0xd0] sm:$0xff] }
 0x4da   : > { %7824 = vmatpush3.bf16.msra.mxu1 %v7823_v46  ;;  %v5209_v46 = vld [vmem:[%s10899_s10 + $0x290] sm:$0xff] }
 0x4db   : > { %7825 = vmatprep.subr.bf16.mxu1 %v8412_v27 }
 0x4de   : > { %7827 = vmatpush3.bf16.msra.mxu1 %v7826_v6  ;;  %v5212_v6 = vld [vmem:[%s10899_s10 + $0x2a8] sm:$0xff] }
 0x4df   : > { %7828 = vmatprep.subr.bf16.mxu1 %v8412_v27 }
 0x4e2   : > { %7830 = vmatpush3.bf16.msra.mxu1 %v7829_v14  ;;  %v5630_v14 = vld [vmem:[%s10902_s13] sm:$0xff] }
 0x4e3   : > { %7831 = vmatprep.subr.bf16.mxu1 %v8412_v27  ;;  %v7977_v31 = vpack.c.bf16 %v5632_v33, %v5630_v14  ;;  %v5660_v14 = vld [vmem:[%s10902_s13 + $0xf0] sm:$0xff]  ;;  %v5309_v33 = vld [vmem:[%s10899_s10 + $0x308] sm:$0xff] }
 0x4e5   : > { %7288 = vmatmul.mubr.f32.vlgmr.msra.gmra.mrb[8].mxu1 %v8339_v57  ;;  %v7883_v57 = vpack.c.bf16 %v5210_v23, %v5209_v46  ;;  %7978 = vmatpush1.bf16.msra.mxu0 %v7977_v31  ;;  %v5659_v46 = vld [vmem:[%s10902_s13 + $0xe8] sm:$0xff]  ;;  %v5661_v23 = vld [vmem:[%s10902_s13 + $0xf8] sm:$0xff]  ;;  %v8005_v31 = vpack.c.bf16 %v5660_v14, %v5658_v15  ;;  %v5408_v14 = vld [vmem:[%s10899_s10 + $0x380] sm:$0xff] }
 0x4e6   : > { %7833 = vmatpush3.bf16.msra.mxu1 %v7832_v19  ;;  %7322 = vmatprep.mubr.msk.f32.mxu1 %vm8413_vm2, %v8410_v50  ;;  %v5635_v19 = vld [vmem:[%s10902_s13 + $0x28] sm:$0xff]  ;;  %v8003_v26 = vpack.c.bf16 %v5661_v23, %v5659_v46  ;;  %v8343_v15 = vld.sshfl [vmem:[#allocation4 + $0x8] sm:$0xf pattern:$0x76325410] }
 0x4e7   : > { %7834 = vmatprep.subr.bf16.mxu1 %v8412_v27  ;;  %v5321_v46 = vld [vmem:[%s10899_s10 + $0x368] sm:$0xff] }
 0x4ea   : > { %7836 = vmatpush3.bf16.msra.mxu1 %v7835_v0  ;;  %v7979_v0 = vpack.c.bf16 %v5637_v28, %v5635_v19  ;;  %v5663_v19 = vld [vmem:[%s10902_s13 + $0x108] sm:$0xff]  ;;  %v5665_v28 = vld [vmem:[%s10902_s13 + $0x118] sm:$0xff] }
 0x4eb   : > { %7837 = vmatprep.subr.bf16.mxu1 %v8412_v27 }
 0x4ec   : > { %7980 = vmatprep.subr.bf16.mxu0 %v7979_v0  ;;  %v7904_v0 = vpack.c.bf16 %v5309_v33, %v5308_v36  ;;  %v5410_v33 = vld [vmem:[%s10899_s10 + $0x390] sm:$0xff] }
 0x4ed   : > { %7982 = vmatpush1.bf16.msra.mxu0 %v7981_v17  ;;  %v8007_v17 = vpack.c.bf16 %v5665_v28, %v5663_v19  ;;  %v5411_v19 = vld [vmem:[%s10899_s10 + $0x398] sm:$0xff] }
 0x4ee   : > { %7839 = vmatpush3.bf16.msra.mxu1 %v7838_v49  ;;  %v5639_v49 = vld [vmem:[%s10902_s13 + $0x48] sm:$0xff]  ;;  %v7931_v28 = vpack.c.bf16 %v5411_v19, %v5410_v33  ;;  %v5697_v19 = vld [vmem:[%s10902_s13 + $0x218] sm:$0xff] }
 0x4ef   : > { %7840 = vmatprep.subr.bf16.mxu1 %v8412_v27  ;;  %v7983_v62 = vpack.c.bf16 %v5641_v51, %v5639_v49  ;;  %v5664_v49 = vld [vmem:[%s10902_s13 + $0x110] sm:$0xff]  ;;  %v5311_v51 = vld [vmem:[%s10899_s10 + $0x318] sm:$0xff]  ;;  %v5695_v33 = vld [vmem:[%s10902_s13 + $0x208] sm:$0xff] }
 0x4f1   : > { %7984 = vmatprep.subr.bf16.mxu0 %v7983_v62  ;;  %v8009_v62 = vpack.c.bf16 %v5664_v49, %v5662_v38  ;;  %v5414_v38 = vld [vmem:[%s10899_s10 + $0x3b0] sm:$0xff]  ;;  %v5415_v49 = vld [vmem:[%s10899_s10 + $0x3b8] sm:$0xff] }
 0x4f2   : > { %7842 = vmatpush3.bf16.msra.mxu1 %v7841_v55  ;;  %v7886_v55 = vpack.c.bf16 %v5212_v6, %v5211_v30  ;;  %v8001_v30 = vpack.c.bf16 %v5656_v40, %v5654_v2 }
 0x4f3   : > { %7843 = vmatprep.subr.bf16.mxu1 %v8412_v27 }
 0x4f6   : > { %7845 = vmatpush3.bf16.msra.mxu1 %v7844_v1  ;;  %v5638_v1 = vld [vmem:[%s10902_s13 + $0x40] sm:$0xff] }
 0x4f7   : > { %7846 = vmatprep.subr.bf16.mxu1 %v8412_v27  ;;  %v7985_v48 = vpack.c.bf16 %v5640_v8, %v5638_v1  ;;  %v7907_v1 = vpack.c.bf16 %v5311_v51, %v5310_v13  ;;  %v5312_v8 = vld [vmem:[%s10899_s10 + $0x320] sm:$0xff]  ;;  %v7937_v51 = vpack.c.bf16 %v5415_v49, %v5414_v38 }
 0x4f8   : > { %v6330_v38 = vld [vmem:[%s10900_s11] ss:$0 sm:$0xff] }
 0x4f9   : > { %7986 = vmatpush1.bf16.msra.mxu0 %v7985_v48  ;;  %v5313_v48 = vld [vmem:[%s10899_s10 + $0x328] sm:$0xff] }
 0x4fa   : > { %7848 = vmatpush3.bf16.msra.mxu1 %v7847_v54  ;;  %v5643_v54 = vld [vmem:[%s10902_s13 + $0x68] sm:$0xff] }
 0x4fb   : > { %7849 = vmatprep.subr.bf16.mxu1 %v8412_v27  ;;  %v7987_v11 = vpack.c.bf16 %v5645_v60, %v5643_v54  ;;  %v5666_v54 = vld [vmem:[%s10902_s13 + $0x120] sm:$0xff]  ;;  %v5668_v60 = vld [vmem:[%s10902_s13 + $0x130] sm:$0xff] }
 0x4fd   : > { %7988 = vmatprep.subr.bf16.mxu0 %v7987_v11  ;;  %v8013_v11 = vpack.c.bf16 %v5668_v60, %v5666_v54  ;;  %v5421_v54 = vld [vmem:[%s10899_s10 + $0x3e8] sm:$0xff] }
 0x4fe   : > { %7851 = vmatpush3.bf16.msra.mxu1 %v7850_v34  ;;  %v7889_v34 = vpack.c.bf16 %v5214_v35, %v5213_v58  ;;  %v5669_v58 = vld [vmem:[%s10902_s13 + $0x138] sm:$0xff] }
 0x4ff   : > { %7852 = vmatprep.subr.bf16.mxu1 %v8412_v27 }
 0x502   : > { %7854 = vmatpush3.bf16.msra.mxu1 %v7853_v16  ;;  %v5642_v16 = vld [vmem:[%s10902_s13 + $0x60] sm:$0xff] }
 0x503   : > { %7855 = vmatprep.subr.bf16.mxu1 %v8412_v27 }
 0x505   : > { %7323 = vmatmul.mubr.f32.vlgmr.msra.gmra.mrb[8].mxu1 %v8340_v4  ;;  %v5644_v4 = vld [vmem:[%s10902_s13 + $0x70] sm:$0xff] }
 0x506   : > { %7857 = vmatpush3.bf16.msra.mxu1 %v7856_v9  ;;  %7357 = vmatprep.mubr.msk.f32.mxu1 %vm8413_vm2, %v8410_v50  ;;  %v5649_v9 = vld [vmem:[%s10902_s13 + $0x98] sm:$0xff]  ;;  %v7989_v10 = vpack.c.bf16 %v5644_v4, %v5642_v16  ;;  %v7910_v16 = vpack.c.bf16 %v5313_v48, %v5312_v8  ;;  %v5314_v4 = vld [vmem:[%s10899_s10 + $0x330] sm:$0xff] }
 0x507   : > { %7858 = vmatprep.subr.bf16.mxu1 %v8412_v27  ;;  %v7991_v32 = vpack.c.bf16 %v5649_v9, %v5647_v12  ;;  %v5670_v12 = vld [vmem:[%s10902_s13 + $0x140] sm:$0xff]  ;;  %v5672_v9 = vld [vmem:[%s10902_s13 + $0x150] sm:$0xff] }
 0x508   : > { %7990 = vmatpush1.bf16.msra.mxu0 %v7989_v10  ;;  %v5315_v10 = vld [vmem:[%s10899_s10 + $0x338] sm:$0xff]  ;;  %v5422_v48 = vld [vmem:[%s10899_s10 + $0x3f0] sm:$0xff] }
 0x509   : > { %7992 = vmatprep.subr.bf16.mxu0 %v7991_v32  ;;  %v8017_v32 = vpack.c.bf16 %v5672_v9, %v5670_v12  ;;  %v5510_v12 = vld [vmem:[%s10899_s10 + $0x410] sm:$0xff]  ;;  %v5511_v9 = vld [vmem:[%s10899_s10 + $0x418] sm:$0xff] }
 0x50a   : > { %7860 = vmatpush3.bf16.msra.mxu1 %v7859_v59  ;;  %v5217_v59 = vld [vmem:[%s10899_s10 + $0x2d0] sm:$0xff] }
 0x50b   : > { %7861 = vmatprep.subr.bf16.mxu1 %v8412_v27  ;;  %v7895_v29 = vpack.c.bf16 %v5218_v24, %v5217_v59  ;;  %v5677_v59 = vld [vmem:[%s10902_s13 + $0x178] sm:$0xff] }
 0x50e   : > { %7863 = vmatpush3.bf16.msra.mxu1 %v7862_v47  ;;  %v5648_v47 = vld [vmem:[%s10902_s13 + $0x90] sm:$0xff] }
 0x50f   : > { %7864 = vmatprep.subr.bf16.mxu1 %v8412_v27  ;;  %v7993_v21 = vpack.c.bf16 %v5648_v47, %v5646_v42  ;;  %v7913_v42 = vpack.c.bf16 %v5315_v10, %v5314_v4  ;;  %v5316_v47 = vld [vmem:[%s10899_s10 + $0x340] sm:$0xff]  ;;  %v5509_v4 = vld [vmem:[%s10899_s10 + $0x408] sm:$0xff]  ;;  %v7955_v10 = vpack.c.bf16 %v5511_v9, %v5510_v12 }
 0x511   : > { %7994 = vmatpush1.bf16.msra.mxu0 %v7993_v21  ;;  %v5317_v21 = vld [vmem:[%s10899_s10 + $0x348] sm:$0xff] }
 0x512   : > { %7866 = vmatpush3.bf16.msra.mxu1 %v7865_v25  ;;  %v5653_v25 = vld [vmem:[%s10902_s13 + $0xb8] sm:$0xff] }
 0x513   : > { %7867 = vmatprep.subr.bf16.mxu1 %v8412_v27  ;;  %v7995_v20 = vpack.c.bf16 %v5653_v25, %v5651_v22  ;;  %v5674_v22 = vld [vmem:[%s10902_s13 + $0x160] sm:$0xff]  ;;  %v5676_v25 = vld [vmem:[%s10902_s13 + $0x170] sm:$0xff] }
 0x515   : > { %7996 = vmatprep.subr.bf16.mxu0 %v7995_v20  ;;  %v8021_v20 = vpack.c.bf16 %v5676_v25, %v5674_v22  ;;  %v5516_v22 = vld [vmem:[%s10899_s10 + $0x440] sm:$0xff]  ;;  %v5517_v25 = vld [vmem:[%s10899_s10 + $0x448] sm:$0xff] }
 0x516   : > { %7869 = vmatpush3.bf16.msra.mxu1 %v7868_v37  ;;  %v5219_v37 = vld [vmem:[%s10899_s10 + $0x2e0] sm:$0xff] }
 0x517   : > { %7870 = vmatprep.subr.bf16.mxu1 %v8412_v27  ;;  %v7898_v56 = vpack.c.bf16 %v5220_v3, %v5219_v37  ;;  %v5681_v37 = vld [vmem:[%s10902_s13 + $0x198] sm:$0xff] }
 0x51a   : > { %7872 = vmatpush3.bf16.msra.mxu1 %v7871_v53  ;;  %v5652_v53 = vld [vmem:[%s10902_s13 + $0xb0] sm:$0xff] }
 0x51b   : > { %7873 = vmatprep.subr.bf16.mxu1 %v8412_v27  ;;  %v7997_v52 = vpack.c.bf16 %v5652_v53, %v5650_v44  ;;  %v7916_v44 = vpack.c.bf16 %v5317_v21, %v5316_v47  ;;  %v5318_v53 = vld [vmem:[%s10899_s10 + $0x350] sm:$0xff]  ;;  %v5515_v47 = vld [vmem:[%s10899_s10 + $0x438] sm:$0xff]  ;;  %v7964_v21 = vpack.c.bf16 %v5517_v25, %v5516_v22  ;;  %v5702_v22 = vld [vmem:[%s10902_s13 + $0x240] sm:$0xff] }
 0x51c   : > { %v5704_v25 = vld [vmem:[%s10902_s13 + $0x250] sm:$0xff] }
 0x51d   : > { %7998 = vmatpush1.bf16.msra.mxu0 %v7997_v52  ;;  %v5319_v52 = vld [vmem:[%s10899_s10 + $0x358] sm:$0xff] }
 0x51e   : > { %7875 = vmatpush3.bf16.msra.mxu1 %v7874_v45  ;;  %v5657_v45 = vld [vmem:[%s10902_s13 + $0xd8] sm:$0xff]  ;;  %v7919_v2 = vpack.c.bf16 %v5319_v52, %v5318_v53  ;;  %v5521_v53 = vld [vmem:[%s10899_s10 + $0x468] sm:$0xff] }
 0x51f   : > { %7876 = vmatprep.subr.bf16.mxu1 %v8412_v27 }
 0x522   : > { %7878 = vmatpush3.bf16.msra.mxu1 %v7877_v39  ;;  %v5221_v39 = vld [vmem:[%s10899_s10 + $0x2f0] sm:$0xff] }
 0x523   : > { %7879 = vmatprep.subr.bf16.mxu1 %v8412_v27 }
 0x525   : > { %7358 = vmatmul.mubr.f32.vlgmr.msra.gmra.mrb[8].mxu1 %v8341_v18  ;;  %v7999_v18 = vpack.c.bf16 %v5657_v45, %v5655_v63  ;;  %v5678_v63 = vld [vmem:[%s10902_s13 + $0x180] sm:$0xff]  ;;  %v5680_v45 = vld [vmem:[%s10902_s13 + $0x190] sm:$0xff] }
 0x526   : > { %7881 = vmatpush3.bf16.msra.mxu1 %v7880_v7  ;;  %7392 = vmatprep.mubr.msk.f32.mxu1 %vm8413_vm2, %v8410_v50  ;;  %v5222_v7 = vld [vmem:[%s10899_s10 + $0x2f8] sm:$0xff] }
 0x527   : > { %7882 = vmatprep.subr.bf16.mxu1 %v8412_v27  ;;  %v7901_v6 = vpack.c.bf16 %v5222_v7, %v5221_v39  ;;  %8000 = vmatprep.subr.bf16.mxu0 %v7999_v18  ;;  %v5685_v39 = vld [vmem:[%s10902_s13 + $0x1b8] sm:$0xff]  ;;  %v8025_v18 = vpack.c.bf16 %v5680_v45, %v5678_v63  ;;  %v5320_v7 = vld [vmem:[%s10899_s10 + $0x360] sm:$0xff]  ;;  %v5522_v63 = vld [vmem:[%s10899_s10 + $0x470] sm:$0xff] }
 0x528   : > { %8002 = vmatpush1.bf16.msra.mxu0 %v8001_v30  ;;  %v7922_v23 = vpack.c.bf16 %v5321_v46, %v5320_v7  ;;  %v5322_v30 = vld [vmem:[%s10899_s10 + $0x370] sm:$0xff]  ;;  %v5523_v45 = vld [vmem:[%s10899_s10 + $0x478] sm:$0xff]  ;;  %v5686_v46 = vld [vmem:[%s10902_s13 + $0x1c0] sm:$0xff] }
 0x529   : > { %8004 = vmatprep.subr.bf16.mxu0 %v8003_v26  ;;  %v7973_v52 = vpack.c.bf16 %v5523_v45, %v5522_v63  ;;  %v5689_v7 = vld [vmem:[%s10902_s13 + $0x1d8] sm:$0xff] }
 0x52a   : > { %7884 = vmatpush3.bf16.msra.mxu1 %v7883_v57  ;;  %v8342_v57 = vld.sshfl [vmem:[#allocation4 + $0x6] sm:$0xf pattern:$0x76325410] }
 0x52b   : > { %7885 = vmatprep.subr.bf16.mxu1 %v8412_v27  ;;  %v5713_v63 = vld [vmem:[%s10902_s13 + $0x298] sm:$0xff] }
 0x52c   : > { %8006 = vmatpush1.bf16.msra.mxu0 %v8005_v31  ;;  %v5412_v31 = vld [vmem:[%s10899_s10 + $0x3a0] sm:$0xff] }
 0x52d   : > { %8008 = vmatprep.subr.bf16.mxu0 %v8007_v17  ;;  %v5416_v17 = vld [vmem:[%s10899_s10 + $0x3c0] sm:$0xff] }
 0x52e   : > { %7887 = vmatpush3.bf16.msra.mxu1 %v7886_v55  ;;  %v5667_v55 = vld [vmem:[%s10902_s13 + $0x128] sm:$0xff] }
 0x52f   : > { %7888 = vmatprep.subr.bf16.mxu1 %v8412_v27  ;;  %v8011_v35 = vpack.c.bf16 %v5669_v58, %v5667_v55  ;;  %v5417_v55 = vld [vmem:[%s10899_s10 + $0x3c8] sm:$0xff] }
 0x530   : > { %8010 = vmatpush1.bf16.msra.mxu0 %v8009_v62  ;;  %v7940_v58 = vpack.c.bf16 %v5417_v55, %v5416_v17  ;;  %v5418_v62 = vld [vmem:[%s10899_s10 + $0x3d0] sm:$0xff]  ;;  %v6331_v17 = vld [vmem:[%s10901_s12] ss:$0 sm:$0xff] }
 0x531   : > { %8012 = vmatprep.subr.bf16.mxu0 %v8011_v35  ;;  %v5420_v35 = vld [vmem:[%s10899_s10 + $0x3e0] sm:$0xff] }
 0x532   : > { %7890 = vmatpush3.bf16.msra.mxu1 %v7889_v34  ;;  %v5671_v34 = vld [vmem:[%s10902_s13 + $0x148] sm:$0xff]  ;;  %v7946_v60 = vpack.c.bf16 %v5421_v54, %v5420_v35  ;;  %v5766_v35 = vsub.s32 2, %v8739_v5  ;;  %v5762_v54 = vsub.s32 0, %v8739_v5 }
 0x533   : > { %7891 = vmatprep.subr.bf16.mxu1 %v8412_v27  ;;  %v8015_v41 = vpack.c.bf16 %v5673_v61, %v5671_v34  ;;  %v5423_v34 = vld [vmem:[%s10899_s10 + $0x3f8] sm:$0xff] }
 0x534   : > { %8014 = vmatpush1.bf16.msra.mxu0 %v8013_v11  ;;  %v7949_v61 = vpack.c.bf16 %v5423_v34, %v5422_v48  ;;  %v8344_v11 = vld.sshfl [vmem:[#allocation4 + $0x9] sm:$0xf pattern:$0x76325410]  ;;  %v5696_v48 = vld [vmem:[%s10902_s13 + $0x210] sm:$0xff] }
 0x535   : > { %8016 = vmatprep.subr.bf16.mxu0 %v8015_v41 }
 0x536   : > { %7893 = vmatpush3.bf16.msra.mxu1 %v7892_v43  ;;  %v5675_v43 = vld [vmem:[%s10902_s13 + $0x168] sm:$0xff] }
 0x537   : > { %7894 = vmatprep.subr.bf16.mxu1 %v8412_v27  ;;  %v8019_v24 = vpack.c.bf16 %v5677_v59, %v5675_v43  ;;  %v5512_v43 = vld [vmem:[%s10899_s10 + $0x420] sm:$0xff]  ;;  %v5513_v59 = vld [vmem:[%s10899_s10 + $0x428] sm:$0xff] }
 0x538   : > { %8018 = vmatpush1.bf16.msra.mxu0 %v8017_v32  ;;  %v7958_v32 = vpack.c.bf16 %v5513_v59, %v5512_v43  ;;  %v5700_v43 = vld [vmem:[%s10902_s13 + $0x230] sm:$0xff] }
 0x539   : > { %8020 = vmatprep.subr.bf16.mxu0 %v8019_v24 }
 0x53a   : > { %7896 = vmatpush3.bf16.msra.mxu1 %v7895_v29  ;;  %v5679_v29 = vld [vmem:[%s10902_s13 + $0x188] sm:$0xff] }
 0x53b   : > { %7897 = vmatprep.subr.bf16.mxu1 %v8412_v27  ;;  %v8023_v3 = vpack.c.bf16 %v5681_v37, %v5679_v29  ;;  %v5518_v29 = vld [vmem:[%s10899_s10 + $0x450] sm:$0xff]  ;;  %v5519_v37 = vld [vmem:[%s10899_s10 + $0x458] sm:$0xff] }
 0x53c   : > { %8022 = vmatpush1.bf16.msra.mxu0 %v8021_v20  ;;  %v7967_v20 = vpack.c.bf16 %v5519_v37, %v5518_v29  ;;  %v5709_v29 = vld [vmem:[%s10902_s13 + $0x278] sm:$0xff]  ;;  %v8049_v37 = vpack.c.bf16 %v5704_v25, %v5702_v22  ;;  %v5742_v25 = vld [vmem:[%s10902_s13 + $0x380] sm:$0xff] }
 0x53d   : > { %8024 = vmatprep.subr.bf16.mxu0 %v8023_v3 }
 0x53e   : > { %7899 = vmatpush3.bf16.msra.mxu1 %v7898_v56  ;;  %v5683_v56 = vld [vmem:[%s10902_s13 + $0x1a8] sm:$0xff] }
 0x53f   : > { %7900 = vmatprep.subr.bf16.mxu1 %v8412_v27  ;;  %v8027_v40 = vpack.c.bf16 %v5685_v39, %v5683_v56  ;;  %v8345_v56 = vld.sshfl [vmem:[#allocation4 + $0xa] sm:$0xf pattern:$0x76325410]  ;;  %v5682_v39 = vld [vmem:[%s10902_s13 + $0x1a0] sm:$0xff] }
 0x540   : > { %8026 = vmatpush1.bf16.msra.mxu0 %v8025_v18  ;;  %v5684_v18 = vld [vmem:[%s10902_s13 + $0x1b0] sm:$0xff] }
 0x541   : > { %8028 = vmatprep.subr.bf16.mxu0 %v8027_v40  ;;  %v8029_v40 = vpack.c.bf16 %v5684_v18, %v5682_v39  ;;  %v5712_v39 = vld [vmem:[%s10902_s13 + $0x290] sm:$0xff]  ;;  %v5715_v18 = vld [vmem:[%s10902_s13 + $0x2a8] sm:$0xff] }
 0x542   : > { %7902 = vmatpush3.bf16.msra.mxu1 %v7901_v6  ;;  %v5323_v6 = vld [vmem:[%s10899_s10 + $0x378] sm:$0xff] }
 0x543   : > { %7903 = vmatprep.subr.bf16.mxu1 %v8412_v27  ;;  %v7925_v26 = vpack.c.bf16 %v5323_v6, %v5322_v30  ;;  %v5691_v6 = vld [vmem:[%s10902_s13 + $0x1e8] sm:$0xff] }
 0x544   : > { %8030 = vmatpush1.bf16.msra.mxu0 %v8029_v40 }
 0x545   : > { %7393 = vmatmul.mubr.f32.vlgmr.msra.gmra.mrb[8].mxu1 %v8342_v57  ;;  %v5409_v57 = vld [vmem:[%s10899_s10 + $0x388] sm:$0xff] }
 0x546   : > { %7905 = vmatpush3.bf16.msra.mxu1 %v7904_v0  ;;  %7427 = vmatprep.mubr.msk.f32.mxu1 %vm8413_vm2, %v8410_v50  ;;  %v7928_v36 = vpack.c.bf16 %v5409_v57, %v5408_v14  ;;  %v5413_v0 = vld [vmem:[%s10899_s10 + $0x3a8] sm:$0xff]  ;;  %v5690_v57 = vld [vmem:[%s10902_s13 + $0x1e0] sm:$0xff] }
 0x547   : > { %7906 = vmatprep.subr.bf16.mxu1 %v8412_v27  ;;  %v7934_v13 = vpack.c.bf16 %v5413_v0, %v5412_v31  ;;  %v8039_v31 = vpack.c.bf16 %v5697_v19, %v5695_v33  ;;  %v8414_v0 = vmov 1935823168   ;;  %v5725_v33 = vld [vmem:[%s10902_s13 + $0x2f8] sm:$0xff] }
 0x54a   : > { %7908 = vmatpush3.bf16.msra.mxu1 %v7907_v1  ;;  %v5419_v1 = vld [vmem:[%s10899_s10 + $0x3d8] sm:$0xff] }
 0x54b   : > { %7909 = vmatprep.subr.bf16.mxu1 %v8412_v27  ;;  %v7943_v8 = vpack.c.bf16 %v5419_v1, %v5418_v62 }
 0x54e   : > { %7911 = vmatpush3.bf16.msra.mxu1 %v7910_v16  ;;  %v5508_v16 = vld [vmem:[%s10899_s10 + $0x400] sm:$0xff] }
 0x54f   : > { %7912 = vmatprep.subr.bf16.mxu1 %v8412_v27  ;;  %v7952_v41 = vpack.c.bf16 %v5509_v4, %v5508_v16  ;;  %v5701_v16 = vld [vmem:[%s10902_s13 + $0x238] sm:$0xff] }
 0x552   : > { %7914 = vmatpush3.bf16.msra.mxu1 %v7913_v42  ;;  %v5514_v42 = vld [vmem:[%s10899_s10 + $0x430] sm:$0xff] }
 0x553   : > { %7915 = vmatprep.subr.bf16.mxu1 %v8412_v27  ;;  %v7961_v24 = vpack.c.bf16 %v5515_v47, %v5514_v42  ;;  %v5705_v42 = vld [vmem:[%s10902_s13 + $0x258] sm:$0xff] }
 0x556   : > { %7917 = vmatpush3.bf16.msra.mxu1 %v7916_v44  ;;  %v5520_v44 = vld [vmem:[%s10899_s10 + $0x460] sm:$0xff] }
 0x557   : > { %7918 = vmatprep.subr.bf16.mxu1 %v8412_v27  ;;  %v7970_v3 = vpack.c.bf16 %v5521_v53, %v5520_v44  ;;  %v5706_v44 = vld [vmem:[%s10902_s13 + $0x260] sm:$0xff]  ;;  %v5708_v53 = vld [vmem:[%s10902_s13 + $0x270] sm:$0xff] }
 0x558   : > { %v8053_v45 = vpack.c.bf16 %v5708_v53, %v5706_v44  ;;  %v5746_v53 = vld [vmem:[%s10902_s13 + $0x3a0] sm:$0xff] }
 0x55a   : > { %7920 = vmatpush3.bf16.msra.mxu1 %v7919_v2  ;;  %v5687_v2 = vld [vmem:[%s10902_s13 + $0x1c8] sm:$0xff] }
 0x55b   : > { %7921 = vmatprep.subr.bf16.mxu1 %v8412_v27  ;;  %v8031_v30 = vpack.c.bf16 %v5689_v7, %v5687_v2  ;;  %v5717_v2 = vld [vmem:[%s10902_s13 + $0x2b8] sm:$0xff] }
 0x55c   : > { %v8059_v7 = vpack.c.bf16 %v5717_v2, %v5715_v18  ;;  %v5752_v18 = vld [vmem:[%s10902_s13 + $0x3d0] sm:$0xff]  ;;  %v5755_v2 = vld [vmem:[%s10902_s13 + $0x3e8] sm:$0xff] }
 0x55d   : > { %8032 = vmatprep.subr.bf16.mxu0 %v8031_v30  ;;  %v5719_v30 = vld [vmem:[%s10902_s13 + $0x2c8] sm:$0xff] }
 0x55e   : > { %7923 = vmatpush3.bf16.msra.mxu1 %v7922_v23  ;;  %v5688_v23 = vld [vmem:[%s10902_s13 + $0x1d0] sm:$0xff] }
 0x55f   : > { %7924 = vmatprep.subr.bf16.mxu1 %v8412_v27 }
 0x562   : > { %7926 = vmatpush3.bf16.msra.mxu1 %v7925_v26  ;;  %v5693_v26 = vld [vmem:[%s10902_s13 + $0x1f8] sm:$0xff] }
 0x563   : > { %7927 = vmatprep.subr.bf16.mxu1 %v8412_v27  ;;  %v8035_v14 = vpack.c.bf16 %v5693_v26, %v5691_v6  ;;  %v5721_v6 = vld [vmem:[%s10902_s13 + $0x2d8] sm:$0xff] }
 0x565   : > { %7428 = vmatmul.mubr.f32.vlgmr.msra.gmra.mrb[8].mxu1 %v8343_v15  ;;  %v8033_v15 = vpack.c.bf16 %v5688_v23, %v5686_v46  ;;  %v5714_v46 = vld [vmem:[%s10902_s13 + $0x2a0] sm:$0xff]  ;;  %v5716_v23 = vld [vmem:[%s10902_s13 + $0x2b0] sm:$0xff] }
 0x566   : > { %7929 = vmatpush3.bf16.msra.mxu1 %v7928_v36  ;;  %7462 = vmatprep.mubr.msk.f32.mxu1 %vm8413_vm2, %v8410_v50  ;;  %v5692_v36 = vld [vmem:[%s10902_s13 + $0x1f0] sm:$0xff]  ;;  %v8061_v26 = vpack.c.bf16 %v5716_v23, %v5714_v46  ;;  %v5754_v23 = vld [vmem:[%s10902_s13 + $0x3e0] sm:$0xff] }
 0x567   : > { %7930 = vmatprep.subr.bf16.mxu1 %v8412_v27  ;;  %8034 = vmatpush1.bf16.msra.mxu0 %v8033_v15  ;;  %v8063_v15 = vpack.c.bf16 %v5721_v6, %v5719_v30  ;;  %v5756_v30 = vld [vmem:[%s10902_s13 + $0x3f0] sm:$0xff]  ;;  %v5951_v6 = vld [vmem:[%s10904_s15 + $0x80] sm:$0xff] }
 0x568   : > { %8036 = vmatprep.subr.bf16.mxu0 %v8035_v14  ;;  %v5718_v14 = vld [vmem:[%s10902_s13 + $0x2c0] sm:$0xff] }
 0x56a   : > { %7932 = vmatpush3.bf16.msra.mxu1 %v7931_v28  ;;  %v8037_v28 = vpack.c.bf16 %v5692_v36, %v5690_v57  ;;  %v5720_v57 = vld [vmem:[%s10902_s13 + $0x2d0] sm:$0xff]  ;;  %v5723_v36 = vld [vmem:[%s10902_s13 + $0x2e8] sm:$0xff] }
 0x56b   : > { %7933 = vmatprep.subr.bf16.mxu1 %v8412_v27  ;;  %v8065_v19 = vpack.c.bf16 %v5720_v57, %v5718_v14  ;;  %v5770_v14 = vsub.s32 4, %v8739_v5 }
 0x56c   : > { %8038 = vmatpush1.bf16.msra.mxu0 %v8037_v28  ;;  %v8067_v28 = vpack.c.bf16 %v5725_v33, %v5723_v36  ;;  %v5935_v36 = vld [vmem:[%s10904_s15] sm:$0xff]  ;;  %v5936_v33 = vld [vmem:[%s10904_s15 + $0x8] sm:$0xff] }
 0x56d   : > { %8040 = vmatprep.subr.bf16.mxu0 %v8039_v31  ;;  %v5722_v31 = vld [vmem:[%s10902_s13 + $0x2e0] sm:$0xff] }
 0x56e   : > { %7935 = vmatpush3.bf16.msra.mxu1 %v7934_v13  ;;  %v5624_v13 = vunpack.c.l.s4 %v8414_v0  ;;  %v5724_v0 = vld [vmem:[%s10902_s13 + $0x2f0] sm:$0xff] }
 0x56f   : > { %7936 = vmatprep.subr.bf16.mxu1 %v8412_v27 }
 0x570   : > { %v5625_v49 = vunpack.c.0.s8 %v5624_v13  ;;  %v5727_v13 = vld [vmem:[%s10902_s13 + $0x308] sm:$0xff] }
 0x572   : > { %7938 = vmatpush3.bf16.msra.mxu1 %v7937_v51  ;;  %v5628_v1 = vsub.s32 %v5625_v49, %v8739_v5  ;;  %v8069_v49 = vpack.c.bf16 %v5724_v0, %v5722_v31  ;;  %v8105_v31 = vpack.c.bf16 %v5936_v33, %v5935_v36  ;;  %v6043_v36 = vld [vmem:[%s10906_s17 + $0x20] sm:$0xff]  ;;  %v6044_v33 = vld [vmem:[%s10906_s17 + $0x28] sm:$0xff] }
 0x573   : > { %7939 = vmatprep.subr.bf16.mxu1 %v8412_v27 }
 0x576   : > { %7941 = vmatpush3.bf16.msra.mxu1 %v7940_v58 }
 0x577   : > { %7942 = vmatprep.subr.bf16.mxu1 %v8412_v27 }
 0x57a   : > { %7944 = vmatpush3.bf16.msra.mxu1 %v7943_v8 }
 0x57b   : > { %7945 = vmatprep.subr.bf16.mxu1 %v8412_v27 }
 0x57e   : > { %7947 = vmatpush3.bf16.msra.mxu1 %v7946_v60  ;;  %v5694_v60 = vld [vmem:[%s10902_s13 + $0x200] sm:$0xff] }
 0x57f   : > { %7948 = vmatprep.subr.bf16.mxu1 %v8412_v27  ;;  %v8041_v12 = vpack.c.bf16 %v5696_v48, %v5694_v60  ;;  %v5732_v60 = vld [vmem:[%s10902_s13 + $0x330] sm:$0xff]  ;;  %v5735_v48 = vld [vmem:[%s10902_s13 + $0x348] sm:$0xff] }
 0x582   : > { %7950 = vmatpush3.bf16.msra.mxu1 %v7949_v61  ;;  %v5774_v61 = vsub.s32 6, %v8739_v5 }
 0x583   : > { %7951 = vmatprep.subr.bf16.mxu1 %v8412_v27 }
 0x585   : > { %7463 = vmatmul.mubr.f32.vlgmr.msra.gmra.mrb[8].mxu1 %v8344_v11  ;;  %v5699_v11 = vld [vmem:[%s10902_s13 + $0x228] sm:$0xff] }
 0x586   : > { %7953 = vmatpush3.bf16.msra.mxu1 %v7952_v41  ;;  %7497 = vmatprep.mubr.msk.f32.mxu1 %vm8413_vm2, %v8410_v50  ;;  %v8043_v9 = vpack.c.bf16 %v5701_v16, %v5699_v11 }
 0x587   : > { %7954 = vmatprep.subr.bf16.mxu1 %v8412_v27 }
 0x58a   : > { %7956 = vmatpush3.bf16.msra.mxu1 %v7955_v10  ;;  %v5698_v10 = vld [vmem:[%s10902_s13 + $0x220] sm:$0xff] }
 0x58b   : > { %7957 = vmatprep.subr.bf16.mxu1 %v8412_v27  ;;  %v8045_v47 = vpack.c.bf16 %v5700_v43, %v5698_v10 }
 0x58e   : > { %7959 = vmatpush3.bf16.msra.mxu1 %v7958_v32  ;;  %v5703_v32 = vld [vmem:[%s10902_s13 + $0x248] sm:$0xff] }
 0x58f   : > { %7960 = vmatprep.subr.bf16.mxu1 %v8412_v27 }
 0x592   : > { %7962 = vmatpush3.bf16.msra.mxu1 %v7961_v24  ;;  %v8047_v24 = vpack.c.bf16 %v5705_v42, %v5703_v32  ;;  %v5740_v32 = vld [vmem:[%s10902_s13 + $0x370] sm:$0xff]  ;;  %v5743_v42 = vld [vmem:[%s10902_s13 + $0x388] sm:$0xff] }
 0x593   : > { %7963 = vmatprep.subr.bf16.mxu1 %v8412_v27 }
 0x596   : > { %7965 = vmatpush3.bf16.msra.mxu1 %v7964_v21  ;;  %v5707_v21 = vld [vmem:[%s10902_s13 + $0x268] sm:$0xff] }
 0x597   : > { %7966 = vmatprep.subr.bf16.mxu1 %v8412_v27 }
 0x59a   : > { %7968 = vmatpush3.bf16.msra.mxu1 %v7967_v20  ;;  %v8051_v20 = vpack.c.bf16 %v5709_v29, %v5707_v21  ;;  %v5744_v21 = vld [vmem:[%s10902_s13 + $0x390] sm:$0xff]  ;;  %v5747_v29 = vld [vmem:[%s10902_s13 + $0x3a8] sm:$0xff] }
 0x59b   : > { %7969 = vmatprep.subr.bf16.mxu1 %v8412_v27 }
 0x59e   : > { %7971 = vmatpush3.bf16.msra.mxu1 %v7970_v3  ;;  %v5711_v3 = vld [vmem:[%s10902_s13 + $0x288] sm:$0xff] }
 0x59f   : > { %7972 = vmatprep.subr.bf16.mxu1 %v8412_v27 }
 0x5a2   : > { %7974 = vmatpush3.bf16.msra.mxu1 %v7973_v52  ;;  %v8055_v52 = vpack.c.bf16 %v5713_v63, %v5711_v3  ;;  %v5748_v3 = vld [vmem:[%s10902_s13 + $0x3b0] sm:$0xff]  ;;  %v5751_v63 = vld [vmem:[%s10902_s13 + $0x3c8] sm:$0xff] }
 0x5a5   : > { %7498 = vmatmul.mubr.f32.vlgmr.msra.gmra.mrb[8].mxu1 %v8345_v56  ;;  %v5710_v56 = vld [vmem:[%s10902_s13 + $0x280] sm:$0xff] }
 0x5a6   : > { %v8057_v40 = vpack.c.bf16 %v5712_v39, %v5710_v56  ;;  %v5750_v39 = vld [vmem:[%s10902_s13 + $0x3c0] sm:$0xff] }
 0x678   : > { %v5601_v51 = vpop.f32.mrb[8].mxu1 }
 0x679   : > { %v5613_v55 = vmul.f32 %v6330_v38, %v5601_v51  ;;  %v7499_v58 = vpop.f32.mrb[9].mxu1  ;;  %v5729_v38 = vld [vmem:[%s10902_s13 + $0x318] sm:$0xff] }
 0x67a   : > { %v8071_v51 = vpack.c.bf16 %v5729_v38, %v5727_v13  ;;  %v5731_v58 = vld [vmem:[%s10902_s13 + $0x328] sm:$0xff]  ;;  %v5937_v38 = vld [vmem:[%s10904_s15 + $0x10] sm:$0xff] }
 0x67b   : > { %v5621_v62 = vadd.f32 %v6331_v17, %v5613_v55  ;;  %v5726_v17 = vld [vmem:[%s10902_s13 + $0x300] sm:$0xff]  ;;  %v5728_v55 = vld [vmem:[%s10902_s13 + $0x310] sm:$0xff] }
 0x67d   : > { %v5622_v8 = vmax.f32 %v5621_v62, 0.0  ;;  %v5733_v62 = vld [vmem:[%s10902_s13 + $0x338] sm:$0xff] }
 0x67f   : > { %v10486_v34 = vrot.slane %v5622_v8, %v5628_v1  ;;  %v8073_v1 = vpack.c.bf16 %v5728_v55, %v5726_v17  ;;  %v8075_v8 = vpack.c.bf16 %v5733_v62, %v5731_v58  ;;  %v5956_v17 = vld [vmem:[%s10904_s15 + $0xa8] sm:$0xff]  ;;  %v5939_v58 = vld [vmem:[%s10904_s15 + $0x20] sm:$0xff] }
 0x680   : > { %v5940_v62 = vld [vmem:[%s10904_s15 + $0x28] sm:$0xff] }
 0x681   : > { %v5767_v4 = vrot.slane %v10486_v34, %v5766_v35  ;;  %v5763_v41 = vrot.slane %v10486_v34, %v5762_v54  ;;  %v5775_v59 = vrot.slane %v10486_v34, %v5774_v61  ;;  %v5730_v35 = vld [vmem:[%s10902_s13 + $0x320] sm:$0xff]  ;;  %v5737_v61 = vld [vmem:[%s10902_s13 + $0x358] sm:$0xff]  ;;  %v5771_v0 = vrot.slane %v10486_v34, %v5770_v14 }
 0x682   : > { %v8077_v11 = vpack.c.bf16 %v5732_v60, %v5730_v35  ;;  %v8079_v16 = vpack.c.bf16 %v5737_v61, %v5735_v48  ;;  %v8113_v35 = vpack.c.bf16 %v5940_v62, %v5939_v58  ;;  %v5941_v48 = vld [vmem:[%s10904_s15 + $0x30] sm:$0xff]  ;;  %v5942_v61 = vld [vmem:[%s10904_s15 + $0x38] sm:$0xff] }
 0x683   : > { %5855 = vmatprep.mubr.f32.mxu0 %v5767_v4  ;;  %v5734_v4 = vld [vmem:[%s10902_s13 + $0x340] sm:$0xff]  ;;  %v6053_v58 = vld [vmem:[%s10906_s17 + $0x70] sm:$0xff] }
 0x684   : > { %5856 = vmatmul.mubr.f32.vlgmr.msra.gmra.mrb[42].mxu0 %v5763_v41  ;;  %v5736_v41 = vld [vmem:[%s10902_s13 + $0x350] sm:$0xff] }
 0x685   : > { %8042 = vmatpush1.bf16.msra.mxu0 %v8041_v12  ;;  %5926 = vmatprep.mubr.f32.mxu0 %v5775_v59  ;;  %v5739_v12 = vld [vmem:[%s10902_s13 + $0x368] sm:$0xff]  ;;  %v8081_v10 = vpack.c.bf16 %v5736_v41, %v5734_v4  ;;  %v5738_v59 = vld [vmem:[%s10902_s13 + $0x360] sm:$0xff]  ;;  %v8117_v4 = vpack.c.bf16 %v5942_v61, %v5941_v48 }
 0x686   : > { %8044 = vmatprep.subr.bf16.mxu0 %v8043_v9  ;;  %v5741_v9 = vld [vmem:[%s10902_s13 + $0x378] sm:$0xff] }
 0x687   : > { %v8083_v43 = vpack.c.bf16 %v5741_v9, %v5739_v12  ;;  %v5943_v12 = vld [vmem:[%s10904_s15 + $0x40] sm:$0xff]  ;;  %v5944_v9 = vld [vmem:[%s10904_s15 + $0x48] sm:$0xff] }
 0x689   : > { %8046 = vmatpush1.bf16.msra.mxu0 %v8045_v47  ;;  %v5745_v47 = vld [vmem:[%s10902_s13 + $0x398] sm:$0xff] }
 0x68a   : > { %8048 = vmatprep.subr.bf16.mxu0 %v8047_v24  ;;  %v8085_v24 = vpack.c.bf16 %v5740_v32, %v5738_v59  ;;  %v8087_v22 = vpack.c.bf16 %v5745_v47, %v5743_v42  ;;  %v8121_v59 = vpack.c.bf16 %v5944_v9, %v5943_v12  ;;  %v5945_v42 = vld [vmem:[%s10904_s15 + $0x50] sm:$0xff]  ;;  %v5946_v47 = vld [vmem:[%s10904_s15 + $0x58] sm:$0xff] }
 0x68d   : > { %8050 = vmatpush1.bf16.msra.mxu0 %v8049_v37  ;;  %v5749_v37 = vld [vmem:[%s10902_s13 + $0x3b8] sm:$0xff] }
 0x68e   : > { %8052 = vmatprep.subr.bf16.mxu0 %v8051_v20  ;;  %v8089_v20 = vpack.c.bf16 %v5744_v21, %v5742_v25  ;;  %v8091_v44 = vpack.c.bf16 %v5749_v37, %v5747_v29  ;;  %v8125_v25 = vpack.c.bf16 %v5946_v47, %v5945_v42  ;;  %v5947_v29 = vld [vmem:[%s10904_s15 + $0x60] sm:$0xff]  ;;  %v5948_v37 = vld [vmem:[%s10904_s15 + $0x68] sm:$0xff] }
 0x691   : > { %8054 = vmatpush1.bf16.msra.mxu0 %v8053_v45  ;;  %v5753_v45 = vld [vmem:[%s10902_s13 + $0x3d8] sm:$0xff] }
 0x692   : > { %8056 = vmatprep.subr.bf16.mxu0 %v8055_v52  ;;  %v8093_v52 = vpack.c.bf16 %v5748_v3, %v5746_v53  ;;  %v8095_v56 = vpack.c.bf16 %v5753_v45, %v5751_v63  ;;  %v5966_v53 = vld [vmem:[%s10904_s15 + $0xf8] sm:$0xff]  ;;  %v5949_v3 = vld [vmem:[%s10904_s15 + $0x70] sm:$0xff] }
 0x693   : > { %v5950_v45 = vld [vmem:[%s10904_s15 + $0x78] sm:$0xff] }
 0x695   : > { %8058 = vmatpush1.bf16.msra.mxu0 %v8057_v40  ;;  %v5757_v40 = vld [vmem:[%s10902_s13 + $0x3f8] sm:$0xff] }
 0x696   : > { %8060 = vmatprep.subr.bf16.mxu0 %v8059_v7  ;;  %v8097_v7 = vpack.c.bf16 %v5752_v18, %v5750_v39  ;;  %v8099_v46 = vpack.c.bf16 %v5757_v40, %v5755_v2  ;;  %v5787_v39 = vsub.s32 1, %v8739_v5  ;;  %v6041_v5 = vld [vmem:[%s10906_s17 + $0x10] sm:$0xff] }
 0x699   : > { %8062 = vmatpush1.bf16.msra.mxu0 %v8061_v26  ;;  %v5952_v26 = vld [vmem:[%s10904_s15 + $0x88] sm:$0xff] }
 0x69a   : > { %8064 = vmatprep.subr.bf16.mxu0 %v8063_v15  ;;  %v8101_v15 = vpack.c.bf16 %v5756_v30, %v5754_v23  ;;  %v8103_v57 = vpack.c.bf16 %v5952_v26, %v5951_v6  ;;  %v6039_v23 = vld [vmem:[%s10906_s17] sm:$0xff]  ;;  %v6040_v30 = vld [vmem:[%s10906_s17 + $0x8] sm:$0xff] }
 0x69d   : > { %8066 = vmatpush1.bf16.msra.mxu0 %v8065_v19  ;;  %v5953_v19 = vld [vmem:[%s10904_s15 + $0x90] sm:$0xff] }
 0x69e   : > { %8068 = vmatprep.subr.bf16.mxu0 %v8067_v28  ;;  %v5954_v28 = vld [vmem:[%s10904_s15 + $0x98] sm:$0xff] }
 0x69f   : > { %v8107_v13 = vpack.c.bf16 %v5954_v28, %v5953_v19  ;;  %v8142_v19 = vpack.c.bf16 %v6044_v33, %v6043_v36  ;;  %v6045_v28 = vld [vmem:[%s10906_s17 + $0x30] sm:$0xff] }
 0x6a1   : > { %8070 = vmatpush1.bf16.msra.mxu0 %v8069_v49  ;;  %v5938_v49 = vld [vmem:[%s10904_s15 + $0x18] sm:$0xff] }
 0x6a2   : > { %8072 = vmatprep.subr.bf16.mxu0 %v8071_v51  ;;  %v5955_v51 = vld [vmem:[%s10904_s15 + $0xa0] sm:$0xff]  ;;  %v8109_v34 = vpack.c.bf16 %v5938_v49, %v5937_v38  ;;  %v6049_v49 = vld [vmem:[%s10906_s17 + $0x50] sm:$0xff] }
 0x6a3   : > { %v8111_v55 = vpack.c.bf16 %v5956_v17, %v5955_v51  ;;  %v6050_v51 = vld [vmem:[%s10906_s17 + $0x58] sm:$0xff] }
 0x6a4   : > { %v8151_v17 = vpack.c.bf16 %v6050_v51, %v6049_v49 }
 0x6a5   : > { %8074 = vmatpush1.bf16.msra.mxu0 %v8073_v1  ;;  %v5957_v1 = vld [vmem:[%s10904_s15 + $0xb0] sm:$0xff] }
 0x6a6   : > { %8076 = vmatprep.subr.bf16.mxu0 %v8075_v8  ;;  %v5958_v8 = vld [vmem:[%s10904_s15 + $0xb8] sm:$0xff] }
 0x6a7   : > { %v8115_v60 = vpack.c.bf16 %v5958_v8, %v5957_v1  ;;  %v6054_v1 = vld [vmem:[%s10906_s17 + $0x78] sm:$0xff] }
 0x6a8   : > { %v8157_v8 = vpack.c.bf16 %v6054_v1, %v6053_v58 }
 0x6a9   : > { %8078 = vmatpush1.bf16.msra.mxu0 %v8077_v11  ;;  %v5959_v11 = vld [vmem:[%s10904_s15 + $0xc0] sm:$0xff] }
 0x6aa   : > { %8080 = vmatprep.subr.bf16.mxu0 %v8079_v16  ;;  %v5960_v16 = vld [vmem:[%s10904_s15 + $0xc8] sm:$0xff] }
 0x6ab   : > { %v8119_v41 = vpack.c.bf16 %v5960_v16, %v5959_v11 }
 0x6ad   : > { %8082 = vmatpush1.bf16.msra.mxu0 %v8081_v10  ;;  %v5961_v10 = vld [vmem:[%s10904_s15 + $0xd0] sm:$0xff] }
 0x6ae   : > { %8084 = vmatprep.subr.bf16.mxu0 %v8083_v43  ;;  %v5962_v43 = vld [vmem:[%s10904_s15 + $0xd8] sm:$0xff] }
 0x6af   : > { %v8123_v32 = vpack.c.bf16 %v5962_v43, %v5961_v10 }
 0x6b1   : > { %8086 = vmatpush1.bf16.msra.mxu0 %v8085_v24  ;;  %v5963_v24 = vld [vmem:[%s10904_s15 + $0xe0] sm:$0xff] }
 0x6b2   : > { %8088 = vmatprep.subr.bf16.mxu0 %v8087_v22  ;;  %v5964_v22 = vld [vmem:[%s10904_s15 + $0xe8] sm:$0xff] }
 0x6b3   : > { %v8127_v21 = vpack.c.bf16 %v5964_v22, %v5963_v24 }
 0x6b5   : > { %8090 = vmatpush1.bf16.msra.mxu0 %v8089_v20  ;;  %v8129_v20 = vpack.c.bf16 %v5948_v37, %v5947_v29 }
 0x6b6   : > { %8092 = vmatprep.subr.bf16.mxu0 %v8091_v44  ;;  %v5965_v44 = vld [vmem:[%s10904_s15 + $0xf0] sm:$0xff] }
 0x6b7   : > { %v8131_v63 = vpack.c.bf16 %v5966_v53, %v5965_v44 }
 0x6b9   : > { %8094 = vmatpush1.bf16.msra.mxu0 %v8093_v52  ;;  %v8133_v52 = vpack.c.bf16 %v5950_v45, %v5949_v3 }
 0x6ba   : > { %8096 = vmatprep.subr.bf16.mxu0 %v8095_v56  ;;  %v5758_v56 = vld [vmem:[%s10903_s14] sm:$0x3] }
 0x6bb   : > { %v5784_v18 = vrot.slane %v5758_v56, %v5762_v54  ;;  %v5788_v2 = vrot.slane %v5758_v56, %v5787_v39  ;;  %v6042_v54 = vld [vmem:[%s10906_s17 + $0x18] sm:$0xff] }
 0x6bd   : > { %8098 = vmatpush1.bf16.msra.mxu0 %v8097_v7 }
 0x6be   : > { %8100 = vmatprep.subr.bf16.mxu0 %v8099_v46 }
 0x6c1   : > { %8102 = vmatpush1.bf16.msra.mxu0 %v8101_v15  ;;  %v8136_v15 = vpack.c.bf16 %v6040_v30, %v6039_v23 }
 0x6c2   : > { %8104 = vmatprep.subr.bf16.mxu0 %v8103_v57  ;;  %v8139_v57 = vpack.c.bf16 %v6042_v54, %v6041_v5 }
 0x6c4   : > { %5927 = vmatmul.mubr.f32.vlgmr.msra.gmra.mrb[42].mxu0 %v5771_v0  ;;  %v6047_v0 = vld [vmem:[%s10906_s17 + $0x40] sm:$0xff] }
 0x6c5   : > { %8106 = vmatpush3.bf16.msra.mxu0 %v8105_v31 }
 0x6c6   : > { %8108 = vmatprep.subr.bf16.mxu0 %v8107_v13  ;;  %v6048_v13 = vld [vmem:[%s10906_s17 + $0x48] sm:$0xff] }
 0x6c7   : > { %v8148_v38 = vpack.c.bf16 %v6048_v13, %v6047_v0 }
 0x6c9   : > { %8110 = vmatpush3.bf16.msra.mxu0 %v8109_v34  ;;  %v6051_v34 = vld [vmem:[%s10906_s17 + $0x60] sm:$0xff] }
 0x6ca   : > { %8112 = vmatprep.subr.bf16.mxu0 %v8111_v55  ;;  %v6052_v55 = vld [vmem:[%s10906_s17 + $0x68] sm:$0xff] }
 0x6cb   : > { %v8154_v62 = vpack.c.bf16 %v6052_v55, %v6051_v34 }
 0x6cd   : > { %8114 = vmatpush3.bf16.msra.mxu0 %v8113_v35 }
 0x6ce   : > { %8116 = vmatprep.subr.bf16.mxu0 %v8115_v60  ;;  %v5967_v60 = vld [vmem:[%s10905_s16] sm:$0x1] }
 0x6d1   : > { %8118 = vmatpush3.bf16.msra.mxu0 %v8117_v4  ;;  %v6055_v4 = vld [vmem:[%s10907_s18] sm:$0x1] }
 0x6d2   : > { %8120 = vmatprep.subr.bf16.mxu0 %v8119_v41 }
 0x6d5   : > { %8122 = vmatpush3.bf16.msra.mxu0 %v8121_v59 }
 0x6d6   : > { %8124 = vmatprep.subr.bf16.mxu0 %v8123_v32 }
 0x6d9   : > { %8126 = vmatpush3.bf16.msra.mxu0 %v8125_v25 }
 0x6da   : > { %8128 = vmatprep.subr.bf16.mxu0 %v8127_v21 }
 0x6dd   : > { %8130 = vmatpush3.bf16.msra.mxu0 %v8129_v20 }
 0x6de   : > { %8132 = vmatprep.subr.bf16.mxu0 %v8131_v63 }
 0x6e1   : > { %8134 = vmatpush3.bf16.msra.mxu0 %v8133_v52 }
 0x6e2   : > { %8135 = vmatprep.subr.bf16.mxu0 %v8412_v27 }
 0x797   : > { %v5928_v40 = vpop.f32.mrb[42].mxu0 }
 0x798   : > { %v8167_v7 = vadd.f32 %v5928_v40, %v5784_v18  ;;  %v5930_v46 = vpop.f32.mrb[43].mxu0 }
 0x799   : > { %v8168_v6 = vadd.f32 %v5930_v46, %v5788_v2 }
 0x79a   : > { %v5933_v14 = vmax.f32 %v8167_v7, 0.0 }
 0x79b   : > { %v5934_v26 = vmax.f32 %v8168_v6, 0.0 }
 0x79d   : > { %6032 = vmatprep.mubr.f32.mxu0 %v5934_v26 }
 0x79e   : > { %6033 = vmatmul.mubr.f32.vlgmr.msra.gmra.mrb[44].mxu0 %v5933_v14 }
 0x79f   : > { %8137 = vmatpush3.bf16.msra.mxu0 %v8136_v15  ;;  %7532 = vmatprep.mubr.msk.f32.mxu0 %vm8413_vm2, %v8410_v50  ;;  %v6046_v50 = vld [vmem:[%s10906_s17 + $0x38] sm:$0xff] }
 0x7a0   : > { %8138 = vmatprep.subr.bf16.mxu0 %v8412_v27  ;;  %v8145_v31 = vpack.c.bf16 %v6046_v50, %v6045_v28 }
 0x7a3   : > { %8140 = vmatpush3.bf16.msra.mxu0 %v8139_v57 }
 0x7a4   : > { %8141 = vmatprep.subr.bf16.mxu0 %v8412_v27 }
 0x7a7   : > { %8143 = vmatpush3.bf16.msra.mxu0 %v8142_v19 }
 0x7a8   : > { %8144 = vmatprep.subr.bf16.mxu0 %v8412_v27 }
 0x7ab   : > { %8146 = vmatpush3.bf16.msra.mxu0 %v8145_v31 }
 0x7ac   : > { %8147 = vmatprep.subr.bf16.mxu0 %v8412_v27 }
 0x7af   : > { %8149 = vmatpush3.bf16.msra.mxu0 %v8148_v38 }
 0x7b0   : > { %8150 = vmatprep.subr.bf16.mxu0 %v8412_v27 }
 0x7b3   : > { %8152 = vmatpush3.bf16.msra.mxu0 %v8151_v17 }
 0x7b4   : > { %8153 = vmatprep.subr.bf16.mxu0 %v8412_v27 }
 0x7b7   : > { %8155 = vmatpush3.bf16.msra.mxu0 %v8154_v62 }
 0x7b8   : > { %8156 = vmatprep.subr.bf16.mxu0 %v8412_v27 }
 0x7bb   : > { %8158 = vmatpush3.bf16.msra.mxu0 %v8157_v8 }
 0x871   : > { %v6756_v35 = vpop.f32.mrb[44].mxu0 }
 0x872   : > { %v6757_v48 = vpop.f32.mrb[45].mxu0 }
 0x873   : > { %v6758_v61 = vadd.f32 %v6757_v48, %v6756_v35 }
 0x875   : > { %v6035_v11 = vadd.f32 %v6758_v61, %v5967_v60 }
 0x877   : > { %v6038_v16 = vmax.f32 %v6035_v11, 0.0 }
 0x879   : > { %7533 = vmatmul.mubr.f32.vlgmr.msra.gmra.mrb[46].mxu0 %v6038_v16 }
 0x94c   : > { %v6122_v27 = vpop.f32.mrb[46].mxu0 }
 0x94d   : > { %v6123_v41 = vadd.f32 %v6122_v27, %v6055_v4  ;;  %v7534_v12 = vpop.f32.mrb[47].mxu0 }
 0x94f   : > { %6126 = vst [vmem:[%s594_s28] sm:$0x1] %v6123_v41 }
 0x950   : > { %8359 = shalt.err (!%p8356_p3)
}
 0x951   : > { %s8360_s20 = scalar_lea.hbm %s10847_s23, 16  ;;  %s8364_s22 = scalar_lea.hbm %s10908_s19, 32 }
 0x952   : > { %p8361_p4 = scmp.ne.s32.totalorder %s10847_s23, %s8360_s20  ;;  %p8365_p9 = scmp.lt.u32.totalorder %s10847_s23, %s10908_s19 }
 0x953   : > { %p8366_p10 = scmp.lt.u32.totalorder %s8364_s22, %s8360_s20  ;;  %p8368_p12 = scmp.lt.u32.totalorder %s8360_s20, %s10847_s23 }
 0x954   : > { %p8362_p7 = pnand %p8361_p4, %p8554_p5 }
 0x955   : > { %p8367_p11 = por %p8366_p10, %p8365_p9 }
 0x956   : > { %p8363_p8 = pneg %p8362_p7 }
 0x957   : > { %p8369_p13 = por %p8368_p12, %p8367_p11 }
 0x959   : > { %p8370_p0 = pnand %p8369_p13, %p8363_p8 }
 0x95b   : > { %8373 = shalt.err (!%p8370_p0)
}
 0x95c   : > { %8259 = dma.vmem_to_hbm [thread:$0]  (%p8554_p5), %s10849_s5, 16, %s10847_s23, %s6128_s25  }
 0x95d PF: > { %s10939_s0 = sld [smem:[#allocation8_spill]]  ;;  %p8265_p1 = scmp.ge.s32.totalorder %s8408_s21, 2 }
 0x95f   : > { %p8262_p2 = pnand %p8265_p1, %p8558_p6 }
 0x963   : > { %s6152_s27 = sand.u32 1, %s10939_s0  }
 0x964   : > { %s6153_s4 = scalar_lea.sflag [#allocation6], %s6152_s27 }
 0x965   : > { %8391 = dma.done.wait (!%p8262_p2), %s6153_s4, 16  }
 0x966   : > { %8393 = vsyncadd (!%p8262_p2), %s6153_s4, 4294967280  ;;  %s10941_s21 = sld [smem:[#allocation10_spill]]  ;;  %s10942_s20 = sld [smem:[#allocation9_spill]] }
 0x967   : > { %s10943_s28 = sld [smem:[#allocation11_spill]]  ;;  %s10944_s0 = smov %s8400_s30 }
 0x96c   : > { %p29_p3 = scmp.ge.s32.totalorder %s10941_s21, 4   ;;  %s10945_s30 = smov %s10942_s20 }
 0x96d   : > { %s10946_s20 = smov %s10943_s28 }
 0x96e   :  { %31 = sbr.rel (!%p29_p3) target bundleno = 11 (0xb), region = 140 }
 0x975   :  { %6157 = vsyncpa [#allocation6], 1 }
 0x976   :  { %6159 = vsyncpa [#allocation6 + $0x1], 1 }

</bundles_post_ra>
